<compile_context>
chip_gen: v7x
topology: tpu7x:2x2x1
jax: 0.10.0
libtpu: 0.0.40
codegen_flags: <defaults>
</compile_context>

<pallas_src>
import functools

import numpy as np
import jax
import jax.numpy as jnp
from jax.experimental import pallas as pl
from jax.experimental.pallas import tpu as pltpu

EPS_F32 = float(np.finfo(np.float32).eps)
BN_EPS = 1e-5
CLAMP_MAX = 88.722835


# ---------------------------------------------------------------------------
# Fused OffsetBlock kernel (one grid step == one image of the batch)
# ---------------------------------------------------------------------------
def _offset_block_kernel(x_ref, wcat_ref, bcat_ref, kern_ref, wpost_ref,
                         bpost_ref, bnscale_ref, bnshift_ref, o_ref, xpad_ref,
                         *, H, W, Cd, Cout, K):
    HW = H * W
    pad = K // 2
    Cin = x_ref.shape[-1]

    # --- fused input-side 1x1 convs: [pre_offset | atten(conv+BN) | downsample]
    x2d = x_ref[0].reshape(HW, Cin)                                   # (HW, Cin)
    y = jnp.dot(x2d, wcat_ref[...], preferred_element_type=jnp.float32)
    y = y + bcat_ref[...]                                             # (HW, 2Cd+Cout)
    pre = y[:, :Cd]                                                   # pre_offset
    att_logit = y[:, Cd:2 * Cd]                                       # atten conv+BN
    shortcut = y[:, 2 * Cd:]                                          # downsample

    # --- DynamicPooling: log( depthwise_gaussian_conv( exp(clamp(x)) ) + eps )
    expx = jnp.exp(jnp.minimum(pre, CLAMP_MAX)).reshape(H, W, Cd)
    xpad_ref[...] = jnp.zeros(xpad_ref.shape, jnp.float32)            # zero border
    xpad_ref[pad:pad + H, pad:pad + W, :] = expx
    kern = kern_ref[...]                                              # (K*K, Cd)
    acc = jnp.zeros((H, W, Cd), jnp.float32)
    for dy in range(K):
        for dx in range(K):
            idx = dy * K + dx
            wgt = kern[idx:idx + 1, :].reshape(1, 1, Cd)
            acc = acc + xpad_ref[dy:dy + H, dx:dx + W, :] * wgt
    out_dis = jnp.log(acc + EPS_F32).reshape(HW, Cd)

    # TODO(synk): DisplaceChannel treated as identity (no reference impl provided).

    # --- attention multiply + post_offset 1x1 conv
    out_atten = jax.nn.sigmoid(att_logit)
    post = jnp.dot(out_dis * out_atten, wpost_ref[...],
                   preferred_element_type=jnp.float32) + bpost_ref[...]

    # --- skip add + eval-BN (folded affine) + ReLU
    out = jnp.maximum((shortcut + post) * bnscale_ref[...] + bnshift_ref[...], 0.0)
    o_ref[0] = out.reshape(H, W, Cout)


# ---------------------------------------------------------------------------
# OffsetBlock wrapper
# ---------------------------------------------------------------------------
@functools.partial(jax.jit, static_argnames=("dpool_ksize",))
def offset_block_forward(x_nchw, params, *, dpool_ksize):
    B, Cin, H, W = x_nchw.shape
    Cd = params["w_pre"].shape[1]
    Cout = params["w_post"].shape[1]
    K = dpool_ksize
    assert K % 2 == 1
    pad = K // 2

    x_nhwc = jnp.transpose(x_nchw, (0, 2, 3, 1))                      # NHWC

    # fold attention BN (eval mode) into its conv; concat with pre / downsample
    att_scale = params["att_gamma"] / jnp.sqrt(params["att_var"] + BN_EPS)
    w_att_f = params["w_att"] * att_scale[None, :]
    b_att_f = ((params["b_att"] - params["att_mean"][None, :]) * att_scale[None, :]
               + params["att_beta"][None, :])
    w_cat = jnp.concatenate([params["w_pre"], w_att_f, params["w_down"]], axis=1)
    b_cat = jnp.concatenate(
        [params["b_pre"], b_att_f, jnp.zeros((1, Cout), jnp.float32)], axis=1)
    n_cat = 2 * Cd + Cout

    # final BN (eval mode) folded to per-channel affine
    bn_scale = (params["bn_gamma"] / jnp.sqrt(params["bn_var"] + BN_EPS))[None, :]
    bn_shift = params["bn_beta"][None, :] - params["bn_mean"][None, :] * bn_scale

    # DynamicPooling gaussian kernel (tiny per-channel weights; plain JAX)
    r = jnp.arange(-(K // 2), K // 2 + 1, dtype=jnp.float32)
    dissq = r[None, :] ** 2 + r[:, None] ** 2                         # (K, K)
    k = jnp.exp(-(dissq / 2.0)[None]
                / (params["dpool_sigma"] ** 2 + EPS_F32)[:, None, None])   # (Cd,K,K)
    k = k / jnp.sum(k, axis=(1, 2), keepdims=True)
    kern = jnp.transpose(k.reshape(Cd, K * K), (1, 0))                # (K*K, Cd)

    out_nhwc = pl.pallas_call(
        functools.partial(_offset_block_kernel, H=H, W=W, Cd=Cd, Cout=Cout, K=K),
        out_shape=jax.ShapeDtypeStruct((B, H, W, Cout), jnp.float32),
        grid_spec=pltpu.PrefetchScalarGridSpec(
            num_scalar_prefetch=0,
            grid=(B,),
            in_specs=[
                pl.BlockSpec((1, H, W, Cin), lambda b: (b, 0, 0, 0)),
                pl.BlockSpec((Cin, n_cat), lambda b: (0, 0)),
                pl.BlockSpec((1, n_cat), lambda b: (0, 0)),
                pl.BlockSpec((K * K, Cd), lambda b: (0, 0)),
                pl.BlockSpec((Cd, Cout), lambda b: (0, 0)),
                pl.BlockSpec((1, Cout), lambda b: (0, 0)),
                pl.BlockSpec((1, Cout), lambda b: (0, 0)),
                pl.BlockSpec((1, Cout), lambda b: (0, 0)),
            ],
            out_specs=pl.BlockSpec((1, H, W, Cout), lambda b: (b, 0, 0, 0)),
            scratch_shapes=[
                pltpu.VMEM((H + 2 * pad, W + 2 * pad, Cd), jnp.float32)],
        ),
        compiler_params=pltpu.CompilerParams(dimension_semantics=("parallel",)),
    )(x_nhwc, w_cat, b_cat, kern, params["w_post"], params["b_post"],
      bn_scale, bn_shift)

    return jnp.transpose(out_nhwc, (0, 3, 1, 2))                      # back to NCHW


# ---------------------------------------------------------------------------
# Parameter init (eval-mode BN running stats included)
# ---------------------------------------------------------------------------
def init_params(key, inplanes, outplanes, displace_planes, dpool_ksize):
    ks = jax.random.split(key, 12)
    p = {}
    p["w_pre"] = 0.1 * jax.random.normal(ks[0], (inplanes, displace_planes), jnp.float32)
    p["b_pre"] = 0.1 * jax.random.normal(ks[1], (1, displace_planes), jnp.float32)

    p["w_att"] = 0.1 * jax.random.normal(ks[2], (inplanes, displace_planes), jnp.float32)
    p["b_att"] = 0.1 * jax.random.normal(ks[3], (1, displace_planes), jnp.float32)
    p["att_gamma"] = 1.0 + 0.1 * jax.random.normal(ks[4], (displace_planes,), jnp.float32)
    p["att_beta"] = 0.1 * jax.random.normal(ks[5], (displace_planes,), jnp.float32)
    p["att_mean"] = 0.1 * jax.random.normal(ks[6], (displace_planes,), jnp.float32)
    p["att_var"] = jax.random.uniform(ks[7], (displace_planes,), jnp.float32, 0.5, 1.5)

    p["w_post"] = 0.1 * jax.random.normal(ks[8], (displace_planes, outplanes), jnp.float32)
    p["b_post"] = 0.1 * jax.random.normal(ks[9], (1, outplanes), jnp.float32)

    p["w_down"] = 0.1 * jax.random.normal(ks[10], (inplanes, outplanes), jnp.float32)

    k_bn = jax.random.split(ks[11], 4)
    p["bn_gamma"] = 1.0 + 0.1 * jax.random.normal(k_bn[0], (outplanes,), jnp.float32)
    p["bn_beta"] = 0.1 * jax.random.normal(k_bn[1], (outplanes,), jnp.float32)
    p["bn_mean"] = 0.1 * jax.random.normal(k_bn[2], (outplanes,), jnp.float32)
    p["bn_var"] = jax.random.uniform(k_bn[3], (outplanes,), jnp.float32, 0.5, 1.5)

    # DynamicPooling: sigma.data.fill_(kernel_size / 2 / 2)
    p["dpool_sigma"] = jnp.full((displace_planes,), dpool_ksize / 2.0 / 2.0, jnp.float32)
    return p


# ---------------------------------------------------------------------------
# Pure-JAX reference (mirrors the PyTorch module in eval mode)
# ---------------------------------------------------------------------------
def _reference_forward(x_nchw, params, dpool_ksize):
    B, Cin, H, W = x_nchw.shape
    Cd = params["w_pre"].shape[1]
    Cout = params["w_post"].shape[1]
    K = dpool_ksize
    pad = K // 2
    x = jnp.transpose(x_nchw, (0, 2, 3, 1)).reshape(B * H * W, Cin)

    out_pre = x @ params["w_pre"] + params["b_pre"]

    r = jnp.arange(-(K // 2), K // 2 + 1, dtype=jnp.float32)
    dissq = r[None, :] ** 2 + r[:, None] ** 2
    k = jnp.exp(-(dissq / 2.0)[None]
                / (params["dpool_sigma"] ** 2 + EPS_F32)[:, None, None])
    k = k / jnp.sum(k, axis=(1, 2), keepdims=True)
    expx = jnp.exp(jnp.minimum(out_pre, CLAMP_MAX)).reshape(B, H, W, Cd)
    xpad = jnp.pad(expx, ((0, 0), (pad, pad), (pad, pad), (0, 0)))
    acc = jnp.zeros((B, H, W, Cd), jnp.float32)
    for dy in range(K):
        for dx in range(K):
            acc = acc + (xpad[:, dy:dy + H, dx:dx + W, :]
                         * k[:, dy, dx][None, None, None, :])
    out_dis = jnp.log(acc + EPS_F32).reshape(B * H * W, Cd)

    att_scale = params["att_gamma"] / jnp.sqrt(params["att_var"] + BN_EPS)
    att = jax.nn.sigmoid(
        x @ (params["w_att"] * att_scale[None, :])
        + (params["b_att"] - params["att_mean"][None, :]) * att_scale[None, :]
        + params["att_beta"][None, :])

    post = (out_dis * att) @ params["w_post"] + params["b_post"]
    shortcut = x @ params["w_down"]
    bn_scale = params["bn_gamma"] / jnp.sqrt(params["bn_var"] + BN_EPS)
    bn_shift = params["bn_beta"] - params["bn_mean"] * bn_scale
    out = jnp.maximum((shortcut + post) * bn_scale[None, :] + bn_shift[None, :], 0.0)
    return jnp.transpose(out.reshape(B, H, W, Cout), (0, 3, 1, 2))


if __name__ == "__main__":
    B, Cin, H, W = 2, 4, 16, 16
    Cout = 8
    displace_planes = 16
    dpool_ksize = 3

    key = jax.random.PRNGKey(0)
    k_x, k_p = jax.random.split(key)
    x = jax.random.normal(k_x, (B, Cin, H, W), jnp.float32)
    params = init_params(k_p, Cin, Cout, displace_planes, dpool_ksize)

    out = offset_block_forward(x, params, dpool_ksize=dpool_ksize)
    jax.block_until_ready(out)
    assert out.shape == (B, Cout, H, W)

    ref = _reference_forward(x, params, dpool_ksize)
    np.testing.assert_allclose(np.asarray(out), np.asarray(ref),
                               rtol=1e-2, atol=1e-2)

    print("KERNEL_OK")
</pallas_src>

<mosaic_0001>
module attributes {stable_mosaic.version = 11 : i64} {
  func.func @_offset_block_kernel(%arg0: i32, %arg1: memref<1x16x16x4xf32, #tpu.memory_space<vmem>>, %arg2: memref<4x40xf32, #tpu.memory_space<vmem>>, %arg3: memref<1x40xf32, #tpu.memory_space<vmem>>, %arg4: memref<9x16xf32, #tpu.memory_space<vmem>>, %arg5: memref<16x8xf32, #tpu.memory_space<vmem>>, %arg6: memref<1x8xf32, #tpu.memory_space<vmem>>, %arg7: memref<1x8xf32, #tpu.memory_space<vmem>>, %arg8: memref<1x8xf32, #tpu.memory_space<vmem>>, %arg9: memref<1x16x16x8xf32, #tpu.memory_space<vmem>>, %arg10: memref<18x18x16xf32, #tpu.memory_space<vmem>>) attributes {dimension_semantics = [#tpu.dimension_semantics<parallel>], iteration_bounds = array<i64: 2>, scalar_prefetch = 0 : i64, scratch_operands = 1 : i64, tpu.core_type = #tpu.core_type<tc>, window_params = [{transform_indices = @transform_0, window_bounds = array<i64: 1, 16, 16, 4>}, {pipeline_mode = #tpu.pipeline_mode<synchronous>, transform_indices = @transform_1, window_bounds = array<i64: 4, 40>}, {pipeline_mode = #tpu.pipeline_mode<synchronous>, transform_indices = @transform_2, window_bounds = array<i64: 1, 40>}, {pipeline_mode = #tpu.pipeline_mode<synchronous>, transform_indices = @transform_3, window_bounds = array<i64: 9, 16>}, {pipeline_mode = #tpu.pipeline_mode<synchronous>, transform_indices = @transform_4, window_bounds = array<i64: 16, 8>}, {pipeline_mode = #tpu.pipeline_mode<synchronous>, transform_indices = @transform_5, window_bounds = array<i64: 1, 8>}, {pipeline_mode = #tpu.pipeline_mode<synchronous>, transform_indices = @transform_6, window_bounds = array<i64: 1, 8>}, {pipeline_mode = #tpu.pipeline_mode<synchronous>, transform_indices = @transform_7, window_bounds = array<i64: 1, 8>}, {transform_indices = @transform_8, window_bounds = array<i64: 1, 16, 16, 8>}]} {
    %c0 = arith.constant 0 : index
    %c0_0 = arith.constant 0 : index
    %c0_1 = arith.constant 0 : index
    %c0_2 = arith.constant 0 : index
    %0 = vector.load %arg1[%c0, %c0_0, %c0_1, %c0_2] : memref<1x16x16x4xf32, #tpu.memory_space<vmem>>, vector<1x16x16x4xf32>
    %1 = vector.shape_cast %0 : vector<1x16x16x4xf32> to vector<16x16x4xf32>
    %2 = vector.shape_cast %1 : vector<16x16x4xf32> to vector<256x4xf32>
    %c0_3 = arith.constant 0 : index
    %c0_4 = arith.constant 0 : index
    %3 = vector.load %arg2[%c0_3, %c0_4] : memref<4x40xf32, #tpu.memory_space<vmem>>, vector<4x40xf32>
    %cst = arith.constant dense<0.000000e+00> : vector<256x40xf32>
    %4 = tpu.matmul %2, %3, %cst {dimension_numbers = #tpu.dot_dimension_numbers<[1], [0], [0], [1], [0, 0, 1, 1], [], []>} : vector<256x4xf32>, vector<4x40xf32>, vector<256x40xf32> -> vector<256x40xf32>
    %c0_5 = arith.constant 0 : index
    %c0_6 = arith.constant 0 : index
    %5 = vector.load %arg3[%c0_5, %c0_6] : memref<1x40xf32, #tpu.memory_space<vmem>>, vector<1x40xf32>
    %6 = vector.broadcast %5 : vector<1x40xf32> to vector<256x40xf32>
    %7 = arith.addf %4, %6 : vector<256x40xf32>
    %8 = vector.extract_strided_slice %7 {offsets = [0, 0], sizes = [256, 16], strides = [1, 1]} : vector<256x40xf32> to vector<256x16xf32>
    %9 = vector.extract_strided_slice %7 {offsets = [0, 16], sizes = [256, 16], strides = [1, 1]} : vector<256x40xf32> to vector<256x16xf32>
    %10 = vector.extract_strided_slice %7 {offsets = [0, 32], sizes = [256, 8], strides = [1, 1]} : vector<256x40xf32> to vector<256x8xf32>
    %cst_7 = arith.constant 88.7228317 : f32
    %11 = vector.broadcast %cst_7 : f32 to vector<256x16xf32>
    %12 = arith.minimumf %8, %11 : vector<256x16xf32>
    %13 = math.exp %12 : vector<256x16xf32>
    %14 = vector.shape_cast %13 : vector<256x16xf32> to vector<16x16x16xf32>
    %cst_8 = arith.constant 0.000000e+00 : f32
    %15 = vector.broadcast %cst_8 : f32 to vector<18x18x16xf32>
    %c0_9 = arith.constant 0 : index
    %c0_10 = arith.constant 0 : index
    %c0_11 = arith.constant 0 : index
    %16 = vector.load %arg10[%c0_9, %c0_10, %c0_11] : memref<18x18x16xf32, #tpu.memory_space<vmem>>, vector<18x18x16xf32>
    tpu.vector_store %arg10[%c0_9, %c0_10, %c0_11], %15 {strides = array<i32>} : memref<18x18x16xf32, #tpu.memory_space<vmem>>, vector<18x18x16xf32>,
    %c1 = arith.constant 1 : index
    %c1_12 = arith.constant 1 : index
    %c0_13 = arith.constant 0 : index
    %17 = vector.load %arg10[%c1, %c1_12, %c0_13] : memref<18x18x16xf32, #tpu.memory_space<vmem>>, vector<16x16x16xf32>
    tpu.vector_store %arg10[%c1, %c1_12, %c0_13], %14 {strides = array<i32>} : memref<18x18x16xf32, #tpu.memory_space<vmem>>, vector<16x16x16xf32>,
    %c0_14 = arith.constant 0 : index
    %c0_15 = arith.constant 0 : index
    %18 = vector.load %arg4[%c0_14, %c0_15] : memref<9x16xf32, #tpu.memory_space<vmem>>, vector<9x16xf32>
    %cst_16 = arith.constant 0.000000e+00 : f32
    %19 = vector.broadcast %cst_16 : f32 to vector<16x16x16xf32>
    %20 = vector.extract_strided_slice %18 {offsets = [0, 0], sizes = [1, 16], strides = [1, 1]} : vector<9x16xf32> to vector<1x16xf32>
    %21 = vector.shape_cast %20 : vector<1x16xf32> to vector<1x1x16xf32>
    %c0_17 = arith.constant 0 : index
    %c0_18 = arith.constant 0 : index
    %c0_19 = arith.constant 0 : index
    %22 = vector.load %arg10[%c0_17, %c0_18, %c0_19] : memref<18x18x16xf32, #tpu.memory_space<vmem>>, vector<16x16x16xf32>
    %23 = vector.broadcast %21 : vector<1x1x16xf32> to vector<16x16x16xf32>
    %24 = arith.mulf %22, %23 : vector<16x16x16xf32>
    %25 = arith.addf %19, %24 : vector<16x16x16xf32>
    %26 = vector.extract_strided_slice %18 {offsets = [1, 0], sizes = [1, 16], strides = [1, 1]} : vector<9x16xf32> to vector<1x16xf32>
    %27 = vector.shape_cast %26 : vector<1x16xf32> to vector<1x1x16xf32>
    %c0_20 = arith.constant 0 : index
    %c1_21 = arith.constant 1 : index
    %c0_22 = arith.constant 0 : index
    %28 = vector.load %arg10[%c0_20, %c1_21, %c0_22] : memref<18x18x16xf32, #tpu.memory_space<vmem>>, vector<16x16x16xf32>
    %29 = vector.broadcast %27 : vector<1x1x16xf32> to vector<16x16x16xf32>
    %30 = arith.mulf %28, %29 : vector<16x16x16xf32>
    %31 = arith.addf %25, %30 : vector<16x16x16xf32>
    %32 = vector.extract_strided_slice %18 {offsets = [2, 0], sizes = [1, 16], strides = [1, 1]} : vector<9x16xf32> to vector<1x16xf32>
    %33 = vector.shape_cast %32 : vector<1x16xf32> to vector<1x1x16xf32>
    %c0_23 = arith.constant 0 : index
    %c2 = arith.constant 2 : index
    %c0_24 = arith.constant 0 : index
    %34 = vector.load %arg10[%c0_23, %c2, %c0_24] : memref<18x18x16xf32, #tpu.memory_space<vmem>>, vector<16x16x16xf32>
    %35 = vector.broadcast %33 : vector<1x1x16xf32> to vector<16x16x16xf32>
    %36 = arith.mulf %34, %35 : vector<16x16x16xf32>
    %37 = arith.addf %31, %36 : vector<16x16x16xf32>
    %38 = vector.extract_strided_slice %18 {offsets = [3, 0], sizes = [1, 16], strides = [1, 1]} : vector<9x16xf32> to vector<1x16xf32>
    %39 = vector.shape_cast %38 : vector<1x16xf32> to vector<1x1x16xf32>
    %c1_25 = arith.constant 1 : index
    %c0_26 = arith.constant 0 : index
    %c0_27 = arith.constant 0 : index
    %40 = vector.load %arg10[%c1_25, %c0_26, %c0_27] : memref<18x18x16xf32, #tpu.memory_space<vmem>>, vector<16x16x16xf32>
    %41 = vector.broadcast %39 : vector<1x1x16xf32> to vector<16x16x16xf32>
    %42 = arith.mulf %40, %41 : vector<16x16x16xf32>
    %43 = arith.addf %37, %42 : vector<16x16x16xf32>
    %44 = vector.extract_strided_slice %18 {offsets = [4, 0], sizes = [1, 16], strides = [1, 1]} : vector<9x16xf32> to vector<1x16xf32>
    %45 = vector.shape_cast %44 : vector<1x16xf32> to vector<1x1x16xf32>
    %c1_28 = arith.constant 1 : index
    %c1_29 = arith.constant 1 : index
    %c0_30 = arith.constant 0 : index
    %46 = vector.load %arg10[%c1_28, %c1_29, %c0_30] : memref<18x18x16xf32, #tpu.memory_space<vmem>>, vector<16x16x16xf32>
    %47 = vector.broadcast %45 : vector<1x1x16xf32> to vector<16x16x16xf32>
    %48 = arith.mulf %46, %47 : vector<16x16x16xf32>
    %49 = arith.addf %43, %48 : vector<16x16x16xf32>
    %50 = vector.extract_strided_slice %18 {offsets = [5, 0], sizes = [1, 16], strides = [1, 1]} : vector<9x16xf32> to vector<1x16xf32>
    %51 = vector.shape_cast %50 : vector<1x16xf32> to vector<1x1x16xf32>
    %c1_31 = arith.constant 1 : index
    %c2_32 = arith.constant 2 : index
    %c0_33 = arith.constant 0 : index
    %52 = vector.load %arg10[%c1_31, %c2_32, %c0_33] : memref<18x18x16xf32, #tpu.memory_space<vmem>>, vector<16x16x16xf32>
    %53 = vector.broadcast %51 : vector<1x1x16xf32> to vector<16x16x16xf32>
    %54 = arith.mulf %52, %53 : vector<16x16x16xf32>
    %55 = arith.addf %49, %54 : vector<16x16x16xf32>
    %56 = vector.extract_strided_slice %18 {offsets = [6, 0], sizes = [1, 16], strides = [1, 1]} : vector<9x16xf32> to vector<1x16xf32>
    %57 = vector.shape_cast %56 : vector<1x16xf32> to vector<1x1x16xf32>
    %c2_34 = arith.constant 2 : index
    %c0_35 = arith.constant 0 : index
    %c0_36 = arith.constant 0 : index
    %58 = vector.load %arg10[%c2_34, %c0_35, %c0_36] : memref<18x18x16xf32, #tpu.memory_space<vmem>>, vector<16x16x16xf32>
    %59 = vector.broadcast %57 : vector<1x1x16xf32> to vector<16x16x16xf32>
    %60 = arith.mulf %58, %59 : vector<16x16x16xf32>
    %61 = arith.addf %55, %60 : vector<16x16x16xf32>
    %62 = vector.extract_strided_slice %18 {offsets = [7, 0], sizes = [1, 16], strides = [1, 1]} : vector<9x16xf32> to vector<1x16xf32>
    %63 = vector.shape_cast %62 : vector<1x16xf32> to vector<1x1x16xf32>
    %c2_37 = arith.constant 2 : index
    %c1_38 = arith.constant 1 : index
    %c0_39 = arith.constant 0 : index
    %64 = vector.load %arg10[%c2_37, %c1_38, %c0_39] : memref<18x18x16xf32, #tpu.memory_space<vmem>>, vector<16x16x16xf32>
    %65 = vector.broadcast %63 : vector<1x1x16xf32> to vector<16x16x16xf32>
    %66 = arith.mulf %64, %65 : vector<16x16x16xf32>
    %67 = arith.addf %61, %66 : vector<16x16x16xf32>
    %68 = vector.extract_strided_slice %18 {offsets = [8, 0], sizes = [1, 16], strides = [1, 1]} : vector<9x16xf32> to vector<1x16xf32>
    %69 = vector.shape_cast %68 : vector<1x16xf32> to vector<1x1x16xf32>
    %c2_40 = arith.constant 2 : index
    %c2_41 = arith.constant 2 : index
    %c0_42 = arith.constant 0 : index
    %70 = vector.load %arg10[%c2_40, %c2_41, %c0_42] : memref<18x18x16xf32, #tpu.memory_space<vmem>>, vector<16x16x16xf32>
    %71 = vector.broadcast %69 : vector<1x1x16xf32> to vector<16x16x16xf32>
    %72 = arith.mulf %70, %71 : vector<16x16x16xf32>
    %73 = arith.addf %67, %72 : vector<16x16x16xf32>
    %cst_43 = arith.constant 1.1920929E-7 : f32
    %74 = vector.broadcast %cst_43 : f32 to vector<16x16x16xf32>
    %75 = arith.addf %73, %74 : vector<16x16x16xf32>
    %76 = math.log %75 : vector<16x16x16xf32>
    %77 = vector.shape_cast %76 : vector<16x16x16xf32> to vector<256x16xf32>
    %78 = arith.negf %9 : vector<256x16xf32>
    %79 = math.exp %78 : vector<256x16xf32>
    %cst_44 = arith.constant 1.000000e+00 : f32
    %80 = vector.broadcast %cst_44 : f32 to vector<256x16xf32>
    %81 = arith.addf %80, %79 : vector<256x16xf32>
    %82 = arith.divf %80, %81 : vector<256x16xf32>
    %83 = arith.mulf %77, %82 : vector<256x16xf32>
    %c0_45 = arith.constant 0 : index
    %c0_46 = arith.constant 0 : index
    %84 = vector.load %arg5[%c0_45, %c0_46] : memref<16x8xf32, #tpu.memory_space<vmem>>, vector<16x8xf32>
    %cst_47 = arith.constant dense<0.000000e+00> : vector<256x8xf32>
    %85 = tpu.matmul %83, %84, %cst_47 {dimension_numbers = #tpu.dot_dimension_numbers<[1], [0], [0], [1], [0, 0, 1, 1], [], []>} : vector<256x16xf32>, vector<16x8xf32>, vector<256x8xf32> -> vector<256x8xf32>
    %c0_48 = arith.constant 0 : index
    %c0_49 = arith.constant 0 : index
    %86 = vector.load %arg6[%c0_48, %c0_49] : memref<1x8xf32, #tpu.memory_space<vmem>>, vector<1x8xf32>
    %87 = vector.broadcast %86 : vector<1x8xf32> to vector<256x8xf32>
    %88 = arith.addf %85, %87 : vector<256x8xf32>
    %89 = arith.addf %10, %88 : vector<256x8xf32>
    %c0_50 = arith.constant 0 : index
    %c0_51 = arith.constant 0 : index
    %90 = vector.load %arg7[%c0_50, %c0_51] : memref<1x8xf32, #tpu.memory_space<vmem>>, vector<1x8xf32>
    %91 = vector.broadcast %90 : vector<1x8xf32> to vector<256x8xf32>
    %92 = arith.mulf %89, %91 : vector<256x8xf32>
    %c0_52 = arith.constant 0 : index
    %c0_53 = arith.constant 0 : index
    %93 = vector.load %arg8[%c0_52, %c0_53] : memref<1x8xf32, #tpu.memory_space<vmem>>, vector<1x8xf32>
    %94 = vector.broadcast %93 : vector<1x8xf32> to vector<256x8xf32>
    %95 = arith.addf %92, %94 : vector<256x8xf32>
    %cst_54 = arith.constant 0.000000e+00 : f32
    %96 = vector.broadcast %cst_54 : f32 to vector<256x8xf32>
    %97 = arith.maximumf %95, %96 : vector<256x8xf32>
    %98 = vector.shape_cast %97 : vector<256x8xf32> to vector<16x16x8xf32>
    %c0_55 = arith.constant 0 : index
    %c0_56 = arith.constant 0 : index
    %c0_57 = arith.constant 0 : index
    %c0_58 = arith.constant 0 : index
    %99 = vector.load %arg9[%c0_55, %c0_56, %c0_57, %c0_58] : memref<1x16x16x8xf32, #tpu.memory_space<vmem>>, vector<1x16x16x8xf32>
    %100 = vector.shape_cast %99 : vector<1x16x16x8xf32> to vector<16x16x8xf32>
    %101 = vector.shape_cast %98 : vector<16x16x8xf32> to vector<1x16x16x8xf32>
    tpu.vector_store %arg9[%c0_55, %c0_56, %c0_57, %c0_58], %101 {strides = array<i32>} : memref<1x16x16x8xf32, #tpu.memory_space<vmem>>, vector<1x16x16x8xf32>,
    return
  }
  func.func @transform_0(%arg0: i32) -> (i32, i32, i32, i32) {
    %c0_i32 = arith.constant 0 : i32
    %c0_i32_0 = arith.constant 0 : i32
    %c0_i32_1 = arith.constant 0 : i32
    %c0_i32_2 = arith.constant 0 : i32
    return %arg0, %c0_i32, %c0_i32_0, %c0_i32_1 : i32, i32, i32, i32
  }
  func.func @transform_1(%arg0: i32) -> (i32, i32) {
    %c0_i32 = arith.constant 0 : i32
    %c0_i32_0 = arith.constant 0 : i32
    %c0_i32_1 = arith.constant 0 : i32
    return %c0_i32, %c0_i32_0 : i32, i32
  }
  func.func @transform_2(%arg0: i32) -> (i32, i32) {
    %c0_i32 = arith.constant 0 : i32
    %c0_i32_0 = arith.constant 0 : i32
    %c0_i32_1 = arith.constant 0 : i32
    return %c0_i32, %c0_i32_0 : i32, i32
  }
  func.func @transform_3(%arg0: i32) -> (i32, i32) {
    %c0_i32 = arith.constant 0 : i32
    %c0_i32_0 = arith.constant 0 : i32
    %c0_i32_1 = arith.constant 0 : i32
    return %c0_i32, %c0_i32_0 : i32, i32
  }
  func.func @transform_4(%arg0: i32) -> (i32, i32) {
    %c0_i32 = arith.constant 0 : i32
    %c0_i32_0 = arith.constant 0 : i32
    %c0_i32_1 = arith.constant 0 : i32
    return %c0_i32, %c0_i32_0 : i32, i32
  }
  func.func @transform_5(%arg0: i32) -> (i32, i32) {
    %c0_i32 = arith.constant 0 : i32
    %c0_i32_0 = arith.constant 0 : i32
    %c0_i32_1 = arith.constant 0 : i32
    return %c0_i32, %c0_i32_0 : i32, i32
  }
  func.func @transform_6(%arg0: i32) -> (i32, i32) {
    %c0_i32 = arith.constant 0 : i32
    %c0_i32_0 = arith.constant 0 : i32
    %c0_i32_1 = arith.constant 0 : i32
    return %c0_i32, %c0_i32_0 : i32, i32
  }
  func.func @transform_7(%arg0: i32) -> (i32, i32) {
    %c0_i32 = arith.constant 0 : i32
    %c0_i32_0 = arith.constant 0 : i32
    %c0_i32_1 = arith.constant 0 : i32
    return %c0_i32, %c0_i32_0 : i32, i32
  }
  func.func @transform_8(%arg0: i32) -> (i32, i32, i32, i32) {
    %c0_i32 = arith.constant 0 : i32
    %c0_i32_0 = arith.constant 0 : i32
    %c0_i32_1 = arith.constant 0 : i32
    %c0_i32_2 = arith.constant 0 : i32
    return %arg0, %c0_i32, %c0_i32_0, %c0_i32_1 : i32, i32, i32, i32
  }
}

</mosaic_0001>

<bundles_post_ra>
// kernel: offset_block_forward.1
= control target key start
LH: loop header
LB: loop body
LE: loop exit
PB: predicated region body
PF: predicated region fallthrough
CT: control target
= control target key end

     0   :  { %s3643_s27 = smov 0   ;;  %s5353_s0 = inlined_call_operand.vmem [shape: f32[2,16,16,4], index: 0, kind: input, shape index: {}]   ;;  %s5354_s1 = inlined_call_operand.vmem [shape: f32[4,40], index: 1, kind: input, shape index: {}]   ;;  %s5355_s2 = inlined_call_operand.vmem [shape: f32[1,40], index: 2, kind: input, shape index: {}]   ;;  %s5356_s3 = inlined_call_operand.vmem [shape: f32[9,16], index: 3, kind: input, shape index: {}]   ;;  %s5357_s4 = inlined_call_operand.vmem [shape: f32[16,8], index: 4, kind: input, shape index: {}]   ;;  %s5358_s5 = inlined_call_operand.vmem [shape: f32[1,8], index: 5, kind: input, shape index: {}]   ;;  %s5359_s6 = inlined_call_operand.vmem [shape: f32[1,8], index: 6, kind: input, shape index: {}]   ;;  %s5360_s7 = inlined_call_operand.vmem [shape: f32[1,8], index: 7, kind: input, shape index: {}]   ;;  %s5361_s8 = inlined_call_operand.vmem [shape: f32[2,16,16,8], index: 8, kind: output, shape index: {}]  }
   0x1 LB: > { %s3028_s28 = sadd.s32 4294967295, %s3592_s27   ;;  %p3032_p0 = scmp.ge.s32.totalorder %s3592_s27, 1  ;;  %s3592_s27 = sphi %s3643_s27, %s18_s27  }
   0x2   : > { %p262_p1 = scmp.lt.s32.totalorder %s3592_s27, 3 }
   0x4   : > { %p263_p2 = pnand %p3032_p0, %p262_p1 }
   0x6   : > { %266 = sbr.rel (%p263_p2) target bundleno = 1007 (0x3ef), region = 52 }
   0xd   : > { %v338_v0 = vld [vmem:[%s5354_s1] sm:$0xf]  ;;  %vm443_vm0 = vcmask 1043456   ;;  %p296_p3 = scmp.lt.s32.totalorder %s3028_s28, 1  ;;  %vm346_vm1 = vcmask 31744   ;;  %vm768_vm2 = vcmask 130048   ;;  %v891_v34 = vlaneseq }
   0xe   : > { %3210 = vmatprep.subr.msk.mxu0 %vm443_vm0, %v338_v0  ;;  %vm771_vm3 = vcmask 123904   ;;  %v3594_v33 = vmov 0.0   ;;  %v3789_v38 = vld [vmem:[%s5356_s3] sm:$0xff]  ;;  %s3595_s21 = smov 112   ;;  %s3596_s11 = smov 32   ;;  %vm2940_vm4 = vcmask 64512  }
   0xf   : > { %3211 = vmatpush3.msk.msra.mxu0 %vm443_vm0, %v338_v0  ;;  %s5447_s28 = smov (!%p296_p3, %s3028_s28), 1  ;;  %769 = vst.msk [vmem:[#allocation2] sm:$0xff] %vm768_vm2, %v3594_v33  ;;  %770 = vst.msk [vmem:[#allocation2 + $0x8] sm:$0xff] %vm768_vm2, %v3594_v33  ;;  %v3782_v35 = vshrl.u32 %v891_v34, 7  ;;  %v3794_v39 = vld [vmem:[%s5355_s2] ss:$0 sm:$0xff] }
  0x10   : > { %s3141_s9 = sshll.u32 %s5447_s28, 8  ;;  %773 = vst.msk [vmem:[#allocation2 + $0x18] sm:$0xff] %vm768_vm2, %v3594_v33  ;;  %774 = vst.msk [vmem:[#allocation2 + $0x20] sm:$0xff] %vm768_vm2, %v3594_v33  ;;  %s3597_s16 = smov 96  }
  0x11   : > { %s3662_s12 = scalar_lea.vmem %s5353_s0, %s3141_s9  ;;  %775 = vst.msk [vmem:[#allocation2 + $0x28] sm:$0x3] %vm771_vm3, %v3594_v33  ;;  %778 = vst.msk [vmem:[#allocation2 + $0x40] sm:$0x3] %vm771_vm3, %v3594_v33  ;;  %v893_v36 = vsub.s32 0, %v3782_v35  ;;  %v993_v37 = vsub.s32 1, %v3782_v35  ;;  %s5284_s19 = scalar_lea.vmem %s5361_s8, %s3141_s9 }
  0x12   : > { %v306_v1 = vld [vmem:[%s3662_s12] sm:$0xff]  ;;  %v307_v2 = vld [vmem:[%s3662_s12 + $0x8] sm:$0xff]  ;;  %v308_v3 = vld [vmem:[%s3662_s12 + $0x10] sm:$0xff]  ;;  %776 = vst.msk [vmem:[#allocation2 + $0x30] sm:$0xff] %vm768_vm2, %v3594_v33  ;;  %v1093_v47 = vsub.s32 2, %v3782_v35  ;;  %v1293_v51 = vsub.s32 4, %v3782_v35 }
  0x13   : > { %3212 = vmatprep.mubr.msk.f32.mxu0 %vm346_vm1, %v306_v1  ;;  %v309_v4 = vld [vmem:[%s3662_s12 + $0x18] sm:$0xff]  ;;  %v310_v5 = vld [vmem:[%s3662_s12 + $0x20] sm:$0xff]  ;;  %v311_v6 = vld [vmem:[%s3662_s12 + $0x28] sm:$0xff]  ;;  %777 = vst.msk [vmem:[#allocation2 + $0x38] sm:$0xff] %vm768_vm2, %v3594_v33  ;;  %v3797_v41 = vrot.slane %v3789_v38, %v893_v36  ;;  %v3800_v42 = vrot.slane %v3789_v38, %v993_v37  ;;  %v1393_v52 = vsub.s32 5, %v3782_v35  ;;  %v1193_v1 = vsub.s32 3, %v3782_v35 }
  0x14   : > { %3213 = vmatmul.mubr.msk.f32.vlgmr.msra.gmra.mrb[0].mxu0 %vm346_vm1, %v307_v2  ;;  %v312_v7 = vld [vmem:[%s3662_s12 + $0x30] sm:$0xff]  ;;  %v313_v8 = vld [vmem:[%s3662_s12 + $0x38] sm:$0xff]  ;;  %v314_v9 = vld [vmem:[%s3662_s12 + $0x40] sm:$0xff]  ;;  %772 = vst.msk [vmem:[#allocation2 + $0x10] sm:$0x3] %vm771_vm3, %v3594_v33  ;;  %v3821_v61 = vrot.slane %v3789_v38, %v1093_v47 }
  0x15   : > { %3215 = vmatprep.mubr.msk.f32.mxu0 %vm346_vm1, %v308_v3  ;;  %v315_v10 = vld [vmem:[%s3662_s12 + $0x48] sm:$0xff]  ;;  %v316_v11 = vld [vmem:[%s3662_s12 + $0x50] sm:$0xff]  ;;  %v317_v12 = vld [vmem:[%s3662_s12 + $0x58] sm:$0xff]  ;;  %779 = vst.msk [vmem:[#allocation2 + $0x48] sm:$0xff] %vm768_vm2, %v3594_v33 }
  0x16   : > { %v318_v13 = vld [vmem:[%s3662_s12 + $0x60] sm:$0xff]  ;;  %v319_v14 = vld [vmem:[%s3662_s12 + $0x68] sm:$0xff]  ;;  %v320_v15 = vld [vmem:[%s3662_s12 + $0x70] sm:$0xff]  ;;  %780 = vst.msk [vmem:[#allocation2 + $0x50] sm:$0xff] %vm768_vm2, %v3594_v33 }
  0x17   : > { %v321_v16 = vld [vmem:[%s3662_s12 + $0x78] sm:$0xff]  ;;  %v322_v17 = vld [vmem:[%s3662_s12 + $0x80] sm:$0xff]  ;;  %v323_v18 = vld [vmem:[%s3662_s12 + $0x88] sm:$0xff]  ;;  %781 = vst.msk [vmem:[#allocation2 + $0x58] sm:$0x3] %vm771_vm3, %v3594_v33 }
  0x18   : > { %3216 = vmatmul.mubr.msk.f32.gmra.mrb[2].mxu0 %vm346_vm1, %v309_v4  ;;  %v324_v19 = vld [vmem:[%s3662_s12 + $0x90] sm:$0xff]  ;;  %v325_v20 = vld [vmem:[%s3662_s12 + $0x98] sm:$0xff]  ;;  %v326_v21 = vld [vmem:[%s3662_s12 + $0xa0] sm:$0xff]  ;;  %782 = vst.msk [vmem:[#allocation2 + $0x60] sm:$0xff] %vm768_vm2, %v3594_v33  ;;  %v3830_v4 = vrot.slane %v3789_v38, %v1293_v51 }
  0x19   : > { %3218 = vmatprep.mubr.msk.f32.mxu0 %vm346_vm1, %v310_v5  ;;  %v327_v22 = vld [vmem:[%s3662_s12 + $0xa8] sm:$0xff]  ;;  %v328_v23 = vld [vmem:[%s3662_s12 + $0xb0] sm:$0xff]  ;;  %v329_v24 = vld [vmem:[%s3662_s12 + $0xb8] sm:$0xff]  ;;  %783 = vst.msk [vmem:[#allocation2 + $0x68] sm:$0xff] %vm768_vm2, %v3594_v33 }
  0x1a   : > { %v330_v25 = vld [vmem:[%s3662_s12 + $0xc0] sm:$0xff]  ;;  %v331_v26 = vld [vmem:[%s3662_s12 + $0xc8] sm:$0xff]  ;;  %v332_v27 = vld [vmem:[%s3662_s12 + $0xd0] sm:$0xff]  ;;  %784 = vst.msk [vmem:[#allocation2 + $0x70] sm:$0x3] %vm771_vm3, %v3594_v33 }
  0x1b   : > { %v333_v28 = vld [vmem:[%s3662_s12 + $0xd8] sm:$0xff]  ;;  %v334_v29 = vld [vmem:[%s3662_s12 + $0xe0] sm:$0xff]  ;;  %v335_v30 = vld [vmem:[%s3662_s12 + $0xe8] sm:$0xff]  ;;  %785 = vst.msk [vmem:[#allocation2 + $0x78] sm:$0xff] %vm768_vm2, %v3594_v33 }
  0x1c   : > { %3219 = vmatmul.mubr.msk.f32.gmra.mrb[4].mxu0 %vm346_vm1, %v311_v6  ;;  %v336_v31 = vld [vmem:[%s3662_s12 + $0xf0] sm:$0xff]  ;;  %v337_v32 = vld [vmem:[%s3662_s12 + $0xf8] sm:$0xff]  ;;  %786 = vst.msk [vmem:[#allocation2 + $0x80] sm:$0xff] %vm768_vm2, %v3594_v33  ;;  %788 = vst.msk [vmem:[#allocation2 + $0x90] sm:$0xff] %vm768_vm2, %v3594_v33 }
  0x1d   : > { %3221 = vmatprep.mubr.msk.f32.mxu0 %vm346_vm1, %v312_v7  ;;  %787 = vst.msk [vmem:[#allocation2 + $0x88] sm:$0x3] %vm771_vm3, %v3594_v33  ;;  %790 = vst.msk [vmem:[#allocation2 + $0xa0] sm:$0x3] %vm771_vm3, %v3594_v33  ;;  %v859_v45 = vld [vmem:[#allocation2] sm:$0xff]  ;;  %v1060_v47 = vld [vmem:[#allocation2 + $0xa] sm:$0xff] }
  0x1e   : > { %789 = vst.msk [vmem:[#allocation2 + $0x98] sm:$0xff] %vm768_vm2, %v3594_v33  ;;  %791 = vst.msk [vmem:[#allocation2 + $0xa8] sm:$0xff] %vm768_vm2, %v3594_v33  ;;  %v959_v46 = vld [vmem:[#allocation2 + $0x1] sm:$0xff]  ;;  %v895_v56 = vmul.f32 %v3797_v41, %v859_v45 }
  0x1f   : > { %792 = vst.msk [vmem:[#allocation2 + $0xb0] sm:$0xff] %vm768_vm2, %v3594_v33  ;;  %794 = vst.msk [vmem:[#allocation2 + $0xc0] sm:$0xff] %vm768_vm2, %v3594_v33  ;;  %v995_v57 = vmul.f32 %v3800_v42, %v959_v46  ;;  %v1059_v0 = vld [vmem:[#allocation2 + $0x2] sm:$0xff]  ;;  %v1494_v46 = vsub.s32 6, %v3782_v35 }
  0x20   : > { %3222 = vmatmul.mubr.msk.f32.gmra.mrb[6].mxu0 %vm346_vm1, %v313_v8  ;;  %793 = vst.msk [vmem:[#allocation2 + $0xb8] sm:$0x3] %vm771_vm3, %v3594_v33  ;;  %796 = vst.msk [vmem:[#allocation2 + $0xd0] sm:$0x3] %vm771_vm3, %v3594_v33 }
  0x21   : > { %3224 = vmatprep.mubr.msk.f32.mxu0 %vm346_vm1, %v314_v9  ;;  %795 = vst.msk [vmem:[#allocation2 + $0xc8] sm:$0xff] %vm768_vm2, %v3594_v33  ;;  %797 = vst.msk [vmem:[#allocation2 + $0xd8] sm:$0xff] %vm768_vm2, %v3594_v33  ;;  %v1027_v8 = vadd.f32 %v995_v57, %v895_v56 }
  0x22   : > { %798 = vst.msk [vmem:[#allocation2 + $0xe0] sm:$0xff] %vm768_vm2, %v3594_v33  ;;  %800 = vst.msk [vmem:[#allocation2 + $0xf0] sm:$0xff] %vm768_vm2, %v3594_v33 }
  0x23   : > { %799 = vst.msk [vmem:[#allocation2 + $0xe8] sm:$0x3] %vm771_vm3, %v3594_v33  ;;  %802 = vst.msk [vmem:[#allocation2 + $0x100] sm:$0x3] %vm771_vm3, %v3594_v33 }
  0x24   : > { %3225 = vmatmul.mubr.msk.f32.gmra.mrb[8].mxu0 %vm346_vm1, %v315_v10  ;;  %801 = vst.msk [vmem:[#allocation2 + $0xf8] sm:$0xff] %vm768_vm2, %v3594_v33  ;;  %803 = vst.msk [vmem:[#allocation2 + $0x108] sm:$0xff] %vm768_vm2, %v3594_v33 }
  0x25   : > { %3227 = vmatprep.mubr.msk.f32.mxu0 %vm346_vm1, %v316_v11  ;;  %804 = vst.msk [vmem:[#allocation2 + $0x110] sm:$0xff] %vm768_vm2, %v3594_v33  ;;  %806 = vst.msk [vmem:[#allocation2 + $0x120] sm:$0xff] %vm768_vm2, %v3594_v33 }
  0x26   : > { %805 = vst.msk [vmem:[#allocation2 + $0x118] sm:$0x3] %vm771_vm3, %v3594_v33  ;;  %808 = vst.msk [vmem:[#allocation2 + $0x130] sm:$0x3] %vm771_vm3, %v3594_v33 }
  0x27   : > { %807 = vst.msk [vmem:[#allocation2 + $0x128] sm:$0xff] %vm768_vm2, %v3594_v33  ;;  %809 = vst.msk [vmem:[#allocation2 + $0x138] sm:$0xff] %vm768_vm2, %v3594_v33 }
  0x28   : > { %3228 = vmatmul.mubr.msk.f32.gmra.mrb[10].mxu0 %vm346_vm1, %v317_v12  ;;  %810 = vst.msk [vmem:[#allocation2 + $0x140] sm:$0xff] %vm768_vm2, %v3594_v33  ;;  %812 = vst.msk [vmem:[#allocation2 + $0x150] sm:$0xff] %vm768_vm2, %v3594_v33  ;;  %v1095_v12 = vmul.f32 %v3821_v61, %v1059_v0 }
  0x29   : > { %3230 = vmatprep.mubr.msk.f32.mxu0 %vm346_vm1, %v318_v13  ;;  %811 = vst.msk [vmem:[#allocation2 + $0x148] sm:$0x3] %vm771_vm3, %v3594_v33  ;;  %814 = vst.msk [vmem:[#allocation2 + $0x160] sm:$0x3] %vm771_vm3, %v3594_v33 }
  0x2a   : > { %813 = vst.msk [vmem:[#allocation2 + $0x158] sm:$0xff] %vm768_vm2, %v3594_v33  ;;  %815 = vst.msk [vmem:[#allocation2 + $0x168] sm:$0xff] %vm768_vm2, %v3594_v33 }
  0x2b   : > { %816 = vst.msk [vmem:[#allocation2 + $0x170] sm:$0xff] %vm768_vm2, %v3594_v33  ;;  %818 = vst.msk [vmem:[#allocation2 + $0x180] sm:$0xff] %vm768_vm2, %v3594_v33 }
  0x2c   : > { %3231 = vmatmul.mubr.msk.f32.gmra.mrb[12].mxu0 %vm346_vm1, %v319_v14  ;;  %817 = vst.msk [vmem:[#allocation2 + $0x178] sm:$0x3] %vm771_vm3, %v3594_v33  ;;  %820 = vst.msk [vmem:[#allocation2 + $0x190] sm:$0x3] %vm771_vm3, %v3594_v33 }
  0x2d   : > { %3233 = vmatprep.mubr.msk.f32.mxu0 %vm346_vm1, %v320_v15  ;;  %819 = vst.msk [vmem:[#allocation2 + $0x188] sm:$0xff] %vm768_vm2, %v3594_v33  ;;  %821 = vst.msk [vmem:[#allocation2 + $0x198] sm:$0xff] %vm768_vm2, %v3594_v33  ;;  %v3842_v15 = vrot.slane %v3789_v38, %v1393_v52 }
  0x2e   : > { %822 = vst.msk [vmem:[#allocation2 + $0x1a0] sm:$0xff] %vm768_vm2, %v3594_v33 }
  0x2f   : > { %823 = vst.msk [vmem:[#allocation2 + $0x1a8] sm:$0x3] %vm771_vm3, %v3594_v33 }
  0x30   : > { %3234 = vmatmul.mubr.msk.f32.gmra.mrb[14].mxu0 %vm346_vm1, %v321_v16 }
  0x31   : > { %3236 = vmatprep.mubr.msk.f32.mxu0 %vm346_vm1, %v322_v17 }
  0x34   : > { %3237 = vmatmul.mubr.msk.f32.gmra.mrb[16].mxu0 %vm346_vm1, %v323_v18  ;;  %v1594_v18 = vsub.s32 7, %v3782_v35 }
  0x35   : > { %3239 = vmatprep.mubr.msk.f32.mxu0 %vm346_vm1, %v324_v19  ;;  %v860_v19 = vld [vmem:[#allocation2 + $0x8] sm:$0xff] }
  0x38   : > { %3240 = vmatmul.mubr.msk.f32.gmra.mrb[18].mxu0 %vm346_vm1, %v325_v20 }
  0x39   : > { %3242 = vmatprep.mubr.msk.f32.mxu0 %vm346_vm1, %v326_v21 }
  0x3c   : > { %3243 = vmatmul.mubr.msk.f32.gmra.mrb[20].mxu0 %vm346_vm1, %v327_v22 }
  0x3d   : > { %3245 = vmatprep.mubr.msk.f32.mxu0 %vm346_vm1, %v328_v23  ;;  %v3850_v23 = vrot.slane %v3789_v38, %v1193_v1 }
  0x40   : > { %3246 = vmatmul.mubr.msk.f32.gmra.mrb[22].mxu0 %vm346_vm1, %v329_v24  ;;  %v960_v24 = vld [vmem:[#allocation2 + $0x9] sm:$0xff] }
  0x41   : > { %3248 = vmatprep.mubr.msk.f32.mxu0 %vm346_vm1, %v330_v25  ;;  %v996_v36 = vmul.f32 %v3800_v42, %v960_v24 }
  0x44   : > { %3249 = vmatmul.mubr.msk.f32.gmra.mrb[24].mxu0 %vm346_vm1, %v331_v26 }
  0x45   : > { %3251 = vmatprep.mubr.msk.f32.mxu0 %vm346_vm1, %v332_v27 }
  0x48   : > { %3252 = vmatmul.mubr.msk.f32.gmra.mrb[26].mxu0 %vm346_vm1, %v333_v28  ;;  %v3855_v28 = vadd.f32 %v1095_v12, %v1027_v8 }
  0x49   : > { %3254 = vmatprep.mubr.msk.f32.mxu0 %vm346_vm1, %v334_v29 }
  0x4c   : > { %3255 = vmatmul.mubr.msk.f32.gmra.mrb[28].mxu0 %vm346_vm1, %v335_v30 }
  0x4d   : > { %3257 = vmatprep.mubr.msk.f32.mxu0 %vm346_vm1, %v336_v31  ;;  %v896_v31 = vmul.f32 %v3797_v41, %v860_v19 }
  0x4f   : > { %v1028_v1 = vadd.f32 %v996_v36, %v896_v31 }
  0x50   : > { %3258 = vmatmul.mubr.msk.f32.gmra.mrb[30].mxu0 %vm346_vm1, %v337_v32 }
  0xe7   : > { %v3214_v40 = vpop.f32.mrb[0].mxu0 }
  0xe8   : > { %v3803_v43 = vadd.f32 %v3214_v40, %v3794_v39  ;;  %v513_v44 = vpop.f32.mrb[1].mxu0 }
  0xe9   : > { %v3807_v48 = vadd.f32 %v3794_v39, %v513_v44 }
  0xea   : > { %v673_v49 = vmin.f32 %v3803_v43, 88.72283  ;;  %v3073_v50 = vmul.f32 -1.442695, %v3803_v43 }
  0xeb   : > { %v672_v53 = vmin.f32 %v3807_v48, 88.72283  ;;  %v3072_v54 = vmul.f32 -1.442695, %v3807_v48  ;;  %v3217_v55 = vpop.f32.mrb[2].mxu0 }
  0xec   : > { %v706_v58 = vmul.f32 1.442695, %v673_v49  ;;  %3328 = vpow2.f32 %v3073_v50  ;;  %v3818_v59 = vadd.f32 %v3217_v55, %v3794_v39  ;;  %v523_v60 = vpop.f32.mrb[3].mxu0  ;;  %v2209_v55 = vld [vmem:[%s5357_s4 + $0x8] sm:$0xff] }
  0xed   : > { %v704_v62 = vmul.f32 1.442695, %v672_v53  ;;  %3330 = vpow2.f32 %v3072_v54  ;;  %v3824_v63 = vadd.f32 %v3794_v39, %v523_v60  ;;  %v2208_v54 = vld [vmem:[%s5357_s4] sm:$0xff] }
  0xee   : > { %3332 = vpow2.f32 %v706_v58  ;;  %v675_v2 = vmin.f32 %v3818_v59, 88.72283  ;;  %v3075_v3 = vmul.f32 -1.442695, %v3818_v59  ;;  %v3312_v60 = vpack.c.bf16 %v2209_v55, %v2208_v54 }
  0xef   : > { %3334 = vpow2.f32 %v704_v62  ;;  %v674_v5 = vmin.f32 %v3824_v63, 88.72283  ;;  %v3074_v6 = vmul.f32 -1.442695, %v3824_v63  ;;  %v3220_v7 = vpop.f32.mrb[4].mxu0 }
  0xf0   : > { %v710_v9 = vmul.f32 1.442695, %v675_v2  ;;  %3336 = vpow2.f32 %v3075_v3  ;;  %v3835_v10 = vadd.f32 %v3220_v7, %v3794_v39  ;;  %v533_v11 = vpop.f32.mrb[5].mxu0  ;;  %v1096_v2 = vmul.f32 %v3821_v61, %v1060_v47  ;;  %3313 = vmatprep.subr.bf16.mxu1 %v3312_v60 }
  0xf1   : > { %v708_v13 = vmul.f32 1.442695, %v674_v5  ;;  %3338 = vpow2.f32 %v3074_v6  ;;  %v3839_v14 = vadd.f32 %v3794_v39, %v533_v11  ;;  %3315 = vmatpush3.bf16.msra.mxu1 %v3312_v60 }
  0xf2   : > { %5390 = vst [vmem:[#allocation3_spill] sm:$0xff] %v3835_v10  ;;  %3340 = vpow2.f32 %v710_v9  ;;  %v677_v16 = vmin.f32 %v3835_v10, 88.72283  ;;  %v3077_v17 = vmul.f32 -1.442695, %v3835_v10 }
  0xf3   : > { %5391 = vst [vmem:[#allocation4_spill] sm:$0xff] %v3839_v14  ;;  %3342 = vpow2.f32 %v708_v13  ;;  %v676_v20 = vmin.f32 %v3839_v14, 88.72283  ;;  %v3076_v21 = vmul.f32 -1.442695, %v3839_v14  ;;  %v3223_v22 = vpop.f32.mrb[6].mxu0 }
  0xf4   : > { %v714_v25 = vmul.f32 1.442695, %v677_v16  ;;  %3344 = vpow2.f32 %v3077_v17  ;;  %v3853_v26 = vadd.f32 %v3223_v22, %v3794_v39  ;;  %v543_v27 = vpop.f32.mrb[7].mxu0 }
  0xf5   : > { %v712_v29 = vmul.f32 1.442695, %v676_v20  ;;  %3346 = vpow2.f32 %v3076_v21  ;;  %v3858_v30 = vadd.f32 %v3794_v39, %v543_v27  ;;  %v3892_v20 = vrot.slane %v3789_v38, %v1494_v46 }
  0xf6   : > { %5392 = vst [vmem:[#allocation5_spill] sm:$0xff] %v3853_v26  ;;  %v3329_v32 = vpop.eup %3328  ;;  %3348 = vpow2.f32 %v714_v25  ;;  %v679_v33 = vmin.f32 %v3853_v26, 88.72283  ;;  %v3079_v34 = vmul.f32 -1.442695, %v3853_v26  ;;  %v3897_v21 = vrot.slane %v3789_v38, %v1594_v18 }
  0xf7   : > { %5393 = vst [vmem:[#allocation6_spill] sm:$0xff] %v3858_v30  ;;  %v3331_v37 = vpop.eup %3330  ;;  %v1953_v40 = vadd.f32 1.0, %v3329_v32  ;;  %3350 = vpow2.f32 %v712_v29  ;;  %v678_v44 = vmin.f32 %v3858_v30, 88.72283  ;;  %v3226_v45 = vpop.f32.mrb[8].mxu0  ;;  %v3902_v27 = vadd.f32 %v1096_v2, %v1028_v1 }
  0xf8   : > { %v3333_v49 = vpop.eup %3332  ;;  %v1952_v50 = vadd.f32 1.0, %v3331_v37  ;;  %v718_v51 = vmul.f32 1.442695, %v679_v33  ;;  %3352 = vpow2.f32 %v3079_v34  ;;  %v3867_v52 = vadd.f32 %v3226_v45, %v3794_v39  ;;  %v553_v53 = vpop.f32.mrb[9].mxu0 }
  0xf9   : > { %v3335_v56 = vpop.eup %3334  ;;  %3354 = vrcp.f32 %v1953_v40  ;;  %v716_v57 = vmul.f32 1.442695, %v678_v44  ;;  %v3876_v58 = vadd.f32 %v3794_v39, %v553_v53  ;;  %826 = vst.msk [vmem:[#allocation2 + $0x21] sm:$0xff] %vm768_vm2, %v3333_v49  ;;  %v3078_v6 = vmul.f32 -1.442695, %v3858_v30 }
  0xfa   : > { %5394 = vst [vmem:[#allocation7_spill] sm:$0xff] %v3867_v52  ;;  %v3337_v62 = vpop.eup %3336  ;;  %3356 = vrcp.f32 %v1952_v50  ;;  %v681_v0 = vmin.f32 %v3867_v52, 88.72283  ;;  %825 = vst.msk [vmem:[#allocation2 + $0x19] sm:$0xff] %vm768_vm2, %v3335_v56  ;;  %v3081_v24 = vmul.f32 -1.442695, %v3867_v52 }
  0xfb   : > { %5395 = vst [vmem:[#allocation8_spill] sm:$0xff] %v3876_v58  ;;  %v3339_v3 = vpop.eup %3338  ;;  %v1955_v5 = vadd.f32 1.0, %v3337_v62  ;;  %3358 = vpow2.f32 %v718_v51  ;;  %v680_v7 = vmin.f32 %v3876_v58, 88.72283  ;;  %v3229_v8 = vpop.f32.mrb[10].mxu0 }
  0xfc   : > { %v3341_v9 = vpop.eup %3340  ;;  %v1954_v11 = vadd.f32 1.0, %v3339_v3  ;;  %3360 = vpow2.f32 %v716_v57  ;;  %v722_v12 = vmul.f32 1.442695, %v681_v0  ;;  %v3885_v13 = vadd.f32 %v3229_v8, %v3794_v39  ;;  %v563_v16 = vpop.f32.mrb[11].mxu0 }
  0xfd   : > { %v3343_v17 = vpop.eup %3342  ;;  %3362 = vrcp.f32 %v1955_v5  ;;  %v3888_v19 = vadd.f32 %v3794_v39, %v563_v16  ;;  %828 = vst.msk [vmem:[#allocation2 + $0x39] sm:$0xff] %vm768_vm2, %v3341_v9  ;;  %v3080_v32 = vmul.f32 -1.442695, %v3876_v58  ;;  %v720_v34 = vmul.f32 1.442695, %v680_v7 }
  0xfe   : > { %5396 = vst [vmem:[#allocation9_spill] sm:$0xff] %v3885_v13  ;;  %v3345_v22 = vpop.eup %3344  ;;  %3364 = vrcp.f32 %v1954_v11  ;;  %v683_v25 = vmin.f32 %v3885_v13, 88.72283  ;;  %827 = vst.msk [vmem:[#allocation2 + $0x31] sm:$0xff] %vm768_vm2, %v3343_v17  ;;  %v3083_v44 = vmul.f32 -1.442695, %v3885_v13 }
  0xff   : > { %5397 = vst [vmem:[#allocation10_spill] sm:$0xff] %v3888_v19  ;;  %v3347_v29 = vpop.eup %3346  ;;  %v1957_v31 = vadd.f32 1.0, %v3345_v22  ;;  %3366 = vpow2.f32 %v3078_v6  ;;  %v682_v35 = vmin.f32 %v3888_v19, 88.72283  ;;  %v3232_v33 = vpop.f32.mrb[12].mxu0 }
 0x100   : > { %v3349_v38 = vpop.eup %3348  ;;  %v1956_v18 = vadd.f32 1.0, %v3347_v29  ;;  %3368 = vpow2.f32 %v722_v12  ;;  %v3907_v36 = vadd.f32 %v3232_v33, %v3794_v39  ;;  %v573_v37 = vpop.f32.mrb[13].mxu0  ;;  %v3911_v45 = vmul.f32 -1.442695, %v3888_v19  ;;  %v3923_v54 = vld [vmem:[#allocation2 + $0x21] sm:$0xff] }
 0x101   : > { %v3351_v40 = vpop.eup %3350  ;;  %3370 = vrcp.f32 %v1957_v31  ;;  %v3914_v46 = vadd.f32 %v3794_v39, %v573_v37  ;;  %v3916_v47 = vld [vmem:[#allocation2 + $0x18] sm:$0xff]  ;;  %830 = vst.msk [vmem:[#allocation2 + $0x51] sm:$0xff] %vm768_vm2, %v3349_v38  ;;  %v726_v50 = vmul.f32 1.442695, %v683_v25  ;;  %v724_v57 = vmul.f32 1.442695, %v682_v35 }
 0x102   : > { %5398 = vst [vmem:[#allocation11_spill] sm:$0xff] %v3907_v36  ;;  %v3353_v49 = vpop.eup %3352  ;;  %3372 = vrcp.f32 %v1956_v18  ;;  %v685_v51 = vmin.f32 %v3907_v36, 88.72283  ;;  %v1195_v53 = vmul.f32 %v3850_v23, %v3916_v47  ;;  %829 = vst.msk [vmem:[#allocation2 + $0x49] sm:$0xff] %vm768_vm2, %v3351_v40  ;;  %v3085_v1 = vmul.f32 -1.442695, %v3907_v36 }
 0x103   : > { %5399 = vst [vmem:[#allocation12_spill] sm:$0xff] %v3914_v46  ;;  %v3355_v55 = vpop.eup %3354  ;;  %v1959_v56 = vadd.f32 1.0, %v3353_v49  ;;  %3374 = vpow2.f32 %v3081_v24  ;;  %v684_v60 = vmin.f32 %v3914_v46, 88.72283  ;;  %v3235_v62 = vpop.f32.mrb[14].mxu0  ;;  %v3933_v6 = vld [vmem:[#allocation2 + $0x19] sm:$0xff]  ;;  %v3948_v25 = vmul.f32 %v3830_v4, %v3923_v54 }
 0x104   : > { %v3357_v0 = vpop.eup %3356  ;;  %3376 = vpow2.f32 %v720_v34  ;;  %v3928_v2 = vmul.f32 -1.442695, %v3914_v46  ;;  %v3931_v3 = vadd.f32 %v3235_v62, %v3794_v39  ;;  %v583_v5 = vpop.f32.mrb[15].mxu0  ;;  %v730_v8 = vmul.f32 1.442695, %v685_v51  ;;  %v3962_v38 = vld [vmem:[#allocation2 + $0x1a] sm:$0xff] }
 0x105   : > { %v3359_v7 = vpop.eup %3358  ;;  %3378 = vrcp.f32 %v1959_v56  ;;  %v3936_v9 = vadd.f32 %v3794_v39, %v583_v5  ;;  %2080 = vrot.lane.b32.xlu0 %v3357_v0, %s3595_s21  ;;  %v3939_v11 = vld [vmem:[#allocation2 + $0x30] sm:$0xff]  ;;  %v1227_v12 = vadd.f32 %v1195_v53, %v3855_v28  ;;  %v728_v17 = vmul.f32 1.442695, %v684_v60  ;;  %v3956_v28 = vld [vmem:[%s5356_s3 + $0x8] ss:$0 sm:$0xff]  ;;  %v4187_v26 = vld [vmem:[#allocation2 + $0x39] sm:$0xff] }
 0x106   : > { %5400 = vst [vmem:[#allocation13_spill] sm:$0xff] %v3931_v3  ;;  %v3361_v16 = vpop.eup %3360  ;;  %3380 = vpow2.f32 %v3080_v32  ;;  %v687_v22 = vmin.f32 %v3931_v3, 88.72283  ;;  %v3943_v24 = vld [vmem:[#allocation2 + $0x31] sm:$0xff]  ;;  %832 = vst.msk [vmem:[#allocation2 + $0x69] sm:$0xff] %vm768_vm2, %v3359_v7  ;;  %v1496_v32 = vmul.f32 %v3892_v20, %v3939_v11  ;;  %v1295_v33 = vmul.f32 %v3830_v4, %v3933_v6 }
 0x107   : > { %5401 = vst [vmem:[#allocation14_spill] sm:$0xff] %v3936_v9  ;;  %v3363_v29 = vpop.eup %3362  ;;  %3382 = vpow2.f32 %v726_v50  ;;  %v3951_v31 = vmul.f32 -1.442695, %v3931_v3  ;;  %v3238_v35 = vpop.f32.mrb[16].mxu0  ;;  %831 = vst.msk [vmem:[#allocation2 + $0x61] sm:$0xff] %vm768_vm2, %v3361_v16  ;;  %v3972_v50 = vld [vmem:[#allocation2 + $0x32] sm:$0xff]  ;;  %v997_v19 = vmul.f32 %v3933_v6, %v3800_v42 }
 0x108   : > { %v3365_v18 = vpop.eup %3364  ;;  %3384 = vpow2.f32 %v3083_v44  ;;  %v686_v34 = vmin.f32 %v3936_v9, 88.72283  ;;  %v3967_v37 = vmul.f32 -1.442695, %v3936_v9  ;;  %v3970_v40 = vadd.f32 %v3238_v35, %v3794_v39  ;;  %v593_v49 = vpop.f32.mrb[17].mxu0 }
 0x109   : > { %v3367_v51 = vpop.eup %3366  ;;  %3386 = vpow2.f32 %v724_v57  ;;  %v3975_v53 = vadd.f32 %v3794_v39, %v593_v49  ;;  %2084 = vrot.lane.b32.xlu1 %v3365_v18, %s3595_s21  ;;  %2082 = vrot.lane.b32.xlu0 %v3355_v55, %s3595_s21  ;;  %v1596_v44 = vmul.f32 %v3897_v21, %v3943_v24  ;;  %v1327_v56 = vadd.f32 %v1295_v33, %v1227_v12  ;;  %v4006_v9 = vld [vmem:[#allocation2 + $0x48] sm:$0xff] }
 0x10a   : > { %5402 = vst [vmem:[#allocation15_spill] sm:$0xff] %v3970_v40  ;;  %v3369_v60 = vpop.eup %3368  ;;  %v1958_v62 = vadd.f32 1.0, %v3367_v51  ;;  %3388 = vpow2.f32 %v3911_v45  ;;  %v734_v0 = vmul.f32 1.442695, %v687_v22  ;;  %v689_v5 = vmin.f32 %v3970_v40, 88.72283 }
 0x10b   : > { %5403 = vst [vmem:[#allocation16_spill] sm:$0xff] %v3975_v53  ;;  %v3371_v7 = vpop.eup %3370  ;;  %3390 = vpow2.f32 %v730_v8  ;;  %v688_v57 = vmin.f32 %v3975_v53, 88.72283  ;;  %v3241_v16 = vpop.f32.mrb[18].mxu0  ;;  %v1696_v35 = vmul.f32 %v3956_v28, %v3972_v50  ;;  %v1395_v55 = vmul.f32 %v3842_v15, %v3962_v38  ;;  %834 = vst.msk [vmem:[#allocation2 + $0x81] sm:$0xff] %vm768_vm2, %v3369_v60 }
 0x10c   : > { %v3373_v12 = vpop.eup %3372  ;;  %3392 = vrcp.f32 %v1958_v62  ;;  %v732_v33 = vmul.f32 1.442695, %v686_v34  ;;  %v3990_v45 = vmul.f32 -1.442695, %v3970_v40  ;;  %v3993_v22 = vadd.f32 %v3241_v16, %v3794_v39  ;;  %v603_v8 = vpop.f32.mrb[19].mxu0 }
 0x10d   : > { %v3375_v18 = vpop.eup %3374  ;;  %3394 = vpow2.f32 %v3085_v1  ;;  %v3996_v49 = vmul.f32 -1.442695, %v3975_v53  ;;  %v3999_v51 = vadd.f32 %v3794_v39, %v603_v8  ;;  %2086 = vrot.lane.b32.xlu1 %v3363_v29, %s3595_s21  ;;  %2088 = vrot.lane.b32.xlu0 %v3373_v12, %s3595_s21  ;;  %v1427_v34 = vadd.f32 %v1395_v55, %v1327_v56 }
 0x10e   : > { %5404 = vst [vmem:[#allocation17_spill] sm:$0xff] %v3993_v22  ;;  %v3377_v60 = vpop.eup %3376  ;;  %v1961_v62 = vadd.f32 1.0, %v3375_v18  ;;  %3396 = vpow2.f32 %v728_v17  ;;  %v4003_v40 = vmul.f32 1.442695, %v689_v5  ;;  %v691_v16 = vmin.f32 %v3993_v22, 88.72283 }
 0x10f   : > { %5405 = vst [vmem:[#allocation18_spill] sm:$0xff] %v3999_v51  ;;  %v3379_v1 = vpop.eup %3378  ;;  %3398 = vpow2.f32 %v3928_v2  ;;  %v4009_v53 = vmul.f32 1.442695, %v688_v57  ;;  %v3244_v8 = vpop.f32.mrb[20].mxu0  ;;  %v1528_v3 = vadd.f32 %v1496_v32, %v1427_v34  ;;  %833 = vst.msk [vmem:[#allocation2 + $0x79] sm:$0xff] %vm768_vm2, %v3377_v60  ;;  %v4014_v29 = vmul.f32 %v3892_v20, %v4006_v9 }
 0x110   : > { %v3381_v17 = vpop.eup %3380  ;;  %3400 = vrcp.f32 %v1961_v62  ;;  %v4017_v56 = vmul.f32 -1.442695, %v3993_v22  ;;  %v690_v5 = vmin.f32 %v3999_v51, 88.72283  ;;  %v4021_v55 = vadd.f32 %v3244_v8, %v3794_v39  ;;  %v613_v2 = vpop.f32.mrb[21].mxu0 }
 0x111   : > { %v3383_v57 = vpop.eup %3382  ;;  %v1960_v12 = vadd.f32 1.0, %v3381_v17  ;;  %3402 = vpow2.f32 %v734_v0  ;;  %v4024_v32 = vmul.f32 -1.442695, %v3999_v51  ;;  %v4027_v18 = vadd.f32 %v3794_v39, %v613_v2  ;;  %2090 = vrot.lane.b32.xlu1 %v3371_v7, %s3595_s21  ;;  %v4035_v17 = vld [vmem:[#allocation2 + $0x49] sm:$0xff] }
 0x112   : > { %5406 = vst [vmem:[#allocation19_spill] sm:$0xff] %v4021_v55  ;;  %v3385_v34 = vpop.eup %3384  ;;  %3404 = vpow2.f32 %v3951_v31  ;;  %v4031_v60 = vmul.f32 1.442695, %v691_v16  ;;  %v693_v62 = vmin.f32 %v4021_v55, 88.72283  ;;  %v1628_v8 = vadd.f32 %v1596_v44, %v1528_v3  ;;  %836 = vst.msk [vmem:[#allocation2 + $0x99] sm:$0xff] %vm768_vm2, %v3383_v57 }
 0x113   : > { %5407 = vst [vmem:[#allocation20_spill] sm:$0xff] %v4027_v18  ;;  %v3387_v0 = vpop.eup %3386  ;;  %3406 = vrcp.f32 %v1960_v12  ;;  %v1963_v51 = vadd.f32 1.0, %v3385_v34  ;;  %v692_v2 = vmin.f32 %v4027_v18, 88.72283  ;;  %v3247_v22 = vpop.f32.mrb[22].mxu0  ;;  %v4040_v7 = vmul.f32 %v3897_v21, %v4035_v17 }
 0x114   : > { %v3389_v31 = vpop.eup %3388  ;;  %3408 = vpow2.f32 %v732_v33  ;;  %v4042_v16 = vmul.f32 1.442695, %v690_v5  ;;  %v4045_v3 = vadd.f32 %v3247_v22, %v3794_v39  ;;  %v623_v44 = vpop.f32.mrb[23].mxu0  ;;  %v1728_v57 = vadd.f32 %v1696_v35, %v1628_v8  ;;  %835 = vst.msk [vmem:[#allocation2 + $0x91] sm:$0xff] %vm768_vm2, %v3387_v0  ;;  %v4055_v33 = vld [vmem:[#allocation2 + $0x4a] sm:$0xff] }
 0x115   : > { %v3391_v12 = vpop.eup %3390  ;;  %3410 = vrcp.f32 %v1963_v51  ;;  %v1962_v34 = vadd.f32 1.0, %v3389_v31  ;;  %v4049_v46 = vmul.f32 -1.442695, %v4021_v55  ;;  %v4052_v36 = vadd.f32 %v3794_v39, %v623_v44  ;;  %2094 = vrot.lane.b32.xlu1 %v3379_v1, %s3595_s21 }
 0x116   : > { %5408 = vst [vmem:[#allocation21_spill] sm:$0xff] %v4045_v3  ;;  %v3393_v5 = vpop.eup %3392  ;;  %3412 = vpow2.f32 %v3967_v37  ;;  %v4058_v22 = vmul.f32 1.442695, %v693_v62  ;;  %v4061_v35 = vmul.f32 -1.442695, %v4027_v18  ;;  %838 = vst.msk [vmem:[#allocation2 + $0xb1] sm:$0xff] %vm768_vm2, %v3391_v12 }
 0x117   : > { %5409 = vst [vmem:[#allocation22_spill] sm:$0xff] %v4052_v36  ;;  %v695_v51 = vmin.f32 %v4045_v3, 88.72283  ;;  %v3395_v8 = vpop.eup %3394  ;;  %3414 = vrcp.f32 %v1962_v34  ;;  %v4065_v0 = vmul.f32 1.442695, %v692_v2  ;;  %2092 = vrot.lane.b32.xlu0 %v3393_v5, %s3595_s21  ;;  %v3250_v31 = vpop.f32.mrb[24].mxu0 }
 0x118   : > { %v4069_v1 = vmul.f32 -1.442695, %v4045_v3  ;;  %v4071_v37 = vadd.f32 1.1920929e-07, %v1728_v57  ;;  %v3397_v62 = vpop.eup %3396  ;;  %v1965_v44 = vadd.f32 1.0, %v3395_v8  ;;  %3416 = vpow2.f32 %v4003_v40  ;;  %v633_v34 = vpop.f32.mrb[25].mxu0 }
 0x119   : > { %v694_v18 = vmin.f32 %v4052_v36, 88.72283  ;;  %v4076_v12 = vadd.f32 %v3250_v31, %v3794_v39  ;;  %v3399_v2 = vpop.eup %3398  ;;  %3418 = vpow2.f32 %v3990_v45  ;;  %v4080_v5 = vmul.f32 -1.442695, %v4052_v36  ;;  %837 = vst.msk [vmem:[#allocation2 + $0xa9] sm:$0xff] %vm768_vm2, %v3397_v62 }
 0x11a   : > { %v4083_v3 = vadd.f32 %v3794_v39, %v633_v34  ;;  %v4088_v40 = vmul.f32 %v3956_v28, %v4055_v33  ;;  %v3401_v57 = vpop.eup %3400  ;;  %3420 = vrcp.f32 %v1965_v44  ;;  %v1964_v8 = vadd.f32 1.0, %v3399_v2 }
 0x11b   : > { %5410 = vst [vmem:[#allocation23_spill] sm:$0xff] %v4076_v12  ;;  %v4090_v31 = vmul.f32 1.442695, %v695_v51  ;;  %v897_v45 = vmul.f32 %v3916_v47, %v3797_v41  ;;  %v3403_v55 = vpop.eup %3402  ;;  %3422 = vpow2.f32 %v4009_v53  ;;  %v697_v34 = vmin.f32 %v4076_v12, 88.72283  ;;  %2098 = vrot.lane.b32.xlu1 %v3401_v57, %s3595_s21  ;;  %v3253_v62 = vpop.f32.mrb[26].mxu0 }
 0x11c   : > { %5411 = vst [vmem:[#allocation24_spill] sm:$0xff] %v4083_v3  ;;  %v696_v36 = vmin.f32 %v4083_v3, 88.72283  ;;  %v3405_v44 = vpop.eup %3404  ;;  %3424 = vrcp.f32 %v1964_v8  ;;  %v4100_v51 = vmul.f32 1.442695, %v694_v18  ;;  %v4106_v47 = vadd.f32 %v3253_v62, %v3794_v39  ;;  %v643_v53 = vpop.f32.mrb[27].mxu0 }
 0x11d   : > { %v4103_v2 = vmul.f32 -1.442695, %v4076_v12  ;;  %840 = vst.msk [vmem:[#allocation2 + $0xc9] sm:$0xff] %vm768_vm2, %v3403_v55  ;;  %v3407_v13 = vpop.eup %3406  ;;  %v1967_v58 = vadd.f32 1.0, %v3405_v44  ;;  %3426 = vpow2.f32 %v3996_v49  ;;  %v4111_v57 = vmul.f32 -1.442695, %v4083_v3 }
 0x11e   : > { %5412 = vst [vmem:[#allocation25_spill] sm:$0xff] %v4106_v47  ;;  %v4114_v6 = vadd.f32 %v3794_v39, %v643_v53  ;;  %v3409_v18 = vpop.eup %3408  ;;  %3428 = vpow2.f32 %v4031_v60  ;;  %2096 = vrot.lane.b32.xlu0 %v3407_v13, %s3595_s21  ;;  %v699_v8 = vmin.f32 %v4106_v47, 88.72283  ;;  %v1029_v62 = vadd.f32 %v997_v19, %v897_v45 }
 0x11f   : > { %v1097_v55 = vmul.f32 %v3962_v38, %v3821_v61  ;;  %v3411_v44 = vpop.eup %3410  ;;  %3430 = vrcp.f32 %v1967_v58  ;;  %v4121_v49 = vmul.f32 1.442695, %v697_v34  ;;  %v4123_v3 = vmul.f32 1.442695, %v696_v36  ;;  %v3256_v12 = vpop.f32.mrb[28].mxu0  ;;  %839 = vst.msk [vmem:[#allocation2 + $0xc1] sm:$0xff] %vm768_vm2, %v3409_v18 }
 0x120   : > { %5413 = vst [vmem:[#allocation26_spill] sm:$0xff] %v4114_v6  ;;  %v1197_v60 = vmul.f32 %v3939_v11, %v3850_v23  ;;  %v3413_v53 = vpop.eup %3412  ;;  %3432 = vpow2.f32 %v4017_v56  ;;  %v698_v13 = vmin.f32 %v4114_v6, 88.72283  ;;  %2102 = vrot.lane.b32.xlu1 %v3411_v44, %s3595_s21  ;;  %v4132_v19 = vadd.f32 %v3256_v12, %v3794_v39  ;;  %v653_v58 = vpop.f32.mrb[29].mxu0 }
 0x121   : > { %v1129_v38 = vadd.f32 %v1097_v55, %v1029_v62  ;;  %v3415_v36 = vpop.eup %3414  ;;  %v1966_v45 = vadd.f32 1.0, %v3413_v53  ;;  %3434 = vpow2.f32 %v4042_v16  ;;  %v4136_v34 = vmul.f32 -1.442695, %v4106_v47 }
 0x122   : > { %5414 = vst [vmem:[#allocation27_spill] sm:$0xff] %v4132_v19  ;;  %v4139_v18 = vadd.f32 %v3794_v39, %v653_v58  ;;  %v3417_v56 = vpop.eup %3416  ;;  %3436 = vpow2.f32 %v4024_v32  ;;  %2100 = vrot.lane.b32.xlu0 %v3415_v36, %s3595_s21  ;;  %v4143_v44 = vmul.f32 1.442695, %v699_v8  ;;  %v4146_v12 = vmul.f32 -1.442695, %v4114_v6 }
 0x123   : > { %v1229_v62 = vadd.f32 %v1197_v60, %v1129_v38  ;;  %v3419_v55 = vpop.eup %3418  ;;  %3438 = vrcp.f32 %v1966_v45  ;;  %v701_v16 = vmin.f32 %v4132_v19, 88.72283  ;;  %v3259_v47 = vpop.f32.mrb[30].mxu0  ;;  %842 = vst.msk [vmem:[#allocation2 + $0xe1] sm:$0xff] %vm768_vm2, %v3417_v56  ;;  %v1297_v32 = vmul.f32 %v3943_v24, %v3830_v4 }
 0x124   : > { %5415 = vst [vmem:[#allocation28_spill] sm:$0xff] %v4139_v18  ;;  %v700_v53 = vmin.f32 %v4139_v18, 88.72283  ;;  %v3421_v58 = vpop.eup %3420  ;;  %v1969_v36 = vadd.f32 1.0, %v3419_v55  ;;  %3440 = vpow2.f32 %v4058_v22  ;;  %v4154_v8 = vmul.f32 1.442695, %v698_v13 }
 0x125   : > { %v4157_v60 = vadd.f32 %v3259_v47, %v3794_v39  ;;  %v663_v38 = vpop.f32.mrb[31].mxu0  ;;  %v3423_v45 = vpop.eup %3422  ;;  %3442 = vpow2.f32 %v4049_v46  ;;  %v4161_v6 = vmul.f32 -1.442695, %v4132_v19  ;;  %2106 = vrot.lane.b32.xlu1 %v3421_v58, %s3595_s21  ;;  %v1329_v55 = vadd.f32 %v1297_v32, %v1229_v62  ;;  %v1360_v13 = vld [vmem:[#allocation2 + $0x22] sm:$0xff] }
 0x126   : > { %v4165_v56 = vadd.f32 %v3794_v39, %v663_v38  ;;  %v3425_v52 = vpop.eup %3424  ;;  %3444 = vrcp.f32 %v1969_v36  ;;  %v4168_v22 = vmul.f32 -1.442695, %v4139_v18  ;;  %841 = vst.msk [vmem:[#allocation2 + $0xd9] sm:$0xff] %vm768_vm2, %v3423_v45  ;;  %v1397_v46 = vmul.f32 %v3972_v50, %v3842_v15  ;;  %v1160_v19 = vld [vmem:[#allocation2 + $0x20] sm:$0xff]  ;;  %v4185_v18 = vld [vmem:[#allocation2 + $0x38] sm:$0xff] }
 0x127   : > { %5416 = vst [vmem:[#allocation29_spill] sm:$0xff] %v4157_v60  ;;  %v703_v47 = vmin.f32 %v4157_v60, 88.72283  ;;  %v3427_v30 = vpop.eup %3426  ;;  %3446 = vpow2.f32 %v4065_v0  ;;  %2104 = vrot.lane.b32.xlu0 %v3425_v52, %s3595_s21  ;;  %v4176_v39 = vmul.f32 1.442695, %v701_v16 }
 0x128   : > { %5417 = vst [vmem:[#allocation30_spill] sm:$0xff] %v4165_v56  ;;  %v4178_v62 = vmul.f32 1.442695, %v700_v53  ;;  %v702_v32 = vmin.f32 %v4165_v56, 88.72283  ;;  %v3429_v58 = vpop.eup %3428  ;;  %v1968_v36 = vadd.f32 1.0, %v3427_v30  ;;  %3448 = vpow2.f32 %v4061_v35 }
 0x129   : > { %v4183_v38 = vmul.f32 -1.442695, %v4157_v60  ;;  %v1429_v45 = vadd.f32 %v1397_v46, %v1329_v55  ;;  %v3431_v0 = vpop.eup %3430  ;;  %3450 = vpow2.f32 %v4090_v31  ;;  %v4190_v52 = vmul.f32 1.442695, %v703_v47  ;;  %844 = vst.msk [vmem:[#allocation2 + $0xf9] sm:$0xff] %vm768_vm2, %v3429_v58  ;;  %v4197_v35 = vld [vmem:[#allocation2 + $0x3a] sm:$0xff] }
 0x12a   : > { %v4193_v16 = vmul.f32 -1.442695, %v4165_v56  ;;  %v1396_v30 = vmul.f32 %v3842_v15, %v1360_v13  ;;  %v3433_v53 = vpop.eup %3432  ;;  %3452 = vrcp.f32 %v1968_v36  ;;  %v4199_v55 = vmul.f32 1.442695, %v702_v32  ;;  %2110 = vrot.lane.b32.xlu1 %v3431_v0, %s3595_s21 }
 0x12b   : > { %v1530_v46 = vadd.f32 %v4014_v29, %v1429_v45  ;;  %v1196_v31 = vmul.f32 %v3850_v23, %v1160_v19  ;;  %v3435_v47 = vpop.eup %3434  ;;  %v1971_v60 = vadd.f32 1.0, %v3433_v53  ;;  %3454 = vpow2.f32 %v4069_v1 }
 0x12c   : > { %v1497_v58 = vmul.f32 %v3892_v20, %v4185_v18  ;;  %v1597_v56 = vmul.f32 %v3897_v21, %v4187_v26  ;;  %v3437_v14 = vpop.eup %3436  ;;  %3456 = vpow2.f32 %v4100_v51  ;;  %843 = vst.msk [vmem:[#allocation2 + $0xf1] sm:$0xff] %vm768_vm2, %v3435_v47  ;;  %v1697_v29 = vmul.f32 %v3956_v28, %v4197_v35 }
 0x12d   : > { %v1630_v32 = vadd.f32 %v4040_v7, %v1530_v46  ;;  %v1228_v36 = vadd.f32 %v1196_v31, %v3902_v27  ;;  %v3439_v45 = vpop.eup %3438  ;;  %3458 = vrcp.f32 %v1971_v60  ;;  %v1970_v1 = vadd.f32 1.0, %v3437_v14  ;;  %v4227_v14 = vld [vmem:[#allocation2 + $0x50] sm:$0xff] }
 0x12e   : > { %v998_v0 = vmul.f32 %v3923_v54, %v3800_v42  ;;  %v1098_v53 = vmul.f32 %v1360_v13, %v3821_v61  ;;  %v3441_v10 = vpop.eup %3440  ;;  %3460 = vpow2.f32 %v4080_v5  ;;  %2108 = vrot.lane.b32.xlu0 %v3439_v45, %s3595_s21  ;;  %v1298_v51 = vmul.f32 %v4187_v26, %v3830_v4 }
 0x12f   : > { %v1328_v7 = vadd.f32 %v3948_v25, %v1228_v36  ;;  %v4225_v27 = vmul.f32 %v4197_v35, %v3842_v15  ;;  %v3443_v60 = vpop.eup %3442  ;;  %3462 = vrcp.f32 %v1970_v1  ;;  %846 = vst.msk [vmem:[#allocation2 + $0x111] sm:$0xff] %vm768_vm2, %v3441_v10  ;;  %v1730_v54 = vadd.f32 %v4088_v40, %v1630_v32  ;;  %v4241_v10 = vld [vmem:[#allocation2 + $0x52] sm:$0xff] }
 0x130   : > { %v4233_v5 = vmul.f32 %v3892_v20, %v4227_v14  ;;  %v898_v25 = vmul.f32 %v1160_v19, %v3797_v41  ;;  %v3445_v13 = vpop.eup %3444  ;;  %v1973_v46 = vadd.f32 1.0, %v3443_v60  ;;  %3464 = vpow2.f32 %v4121_v49 }
 0x131   : > { %v1428_v31 = vadd.f32 %v1396_v30, %v1328_v7  ;;  %v1198_v47 = vmul.f32 %v4185_v18, %v3850_v23  ;;  %v3447_v36 = vpop.eup %3446  ;;  %3466 = vpow2.f32 %v4103_v2  ;;  %2114 = vrot.lane.b32.xlu1 %v3445_v13, %s3595_s21  ;;  %v899_v32 = vmul.f32 %v3939_v11, %v3797_v41 }
 0x132   : > { %v1030_v40 = vadd.f32 %v998_v0, %v898_v25  ;;  %v999_v19 = vmul.f32 %v3943_v24, %v3800_v42  ;;  %v3449_v45 = vpop.eup %3448  ;;  %3468 = vrcp.f32 %v1973_v46  ;;  %845 = vst.msk [vmem:[#allocation2 + $0x109] sm:$0xff] %vm768_vm2, %v3447_v36  ;;  %v1099_v30 = vmul.f32 %v3972_v50, %v3821_v61  ;;  %v4253_v0 = vld [vmem:[#allocation2 + $0x51] sm:$0xff] }
 0x133   : > { %v1529_v49 = vadd.f32 %v1497_v58, %v1428_v31  ;;  %v1199_v2 = vmul.f32 %v4006_v9, %v3850_v23  ;;  %v3451_v1 = vpop.eup %3450  ;;  %v1972_v7 = vadd.f32 1.0, %v3449_v45  ;;  %3470 = vpow2.f32 %v4123_v3 }
 0x134   : > { %v1130_v11 = vadd.f32 %v1098_v53, %v1030_v40  ;;  %v1031_v60 = vadd.f32 %v999_v19, %v899_v32  ;;  %v3453_v24 = vpop.eup %3452  ;;  %3472 = vpow2.f32 %v4111_v57  ;;  %848 = vst.msk [vmem:[#allocation2 + $0x129] sm:$0xff] %vm768_vm2, %v3451_v1  ;;  %v1599_v50 = vmul.f32 %v3897_v21, %v4253_v0  ;;  %v4266_v57 = vld [vmem:[#allocation2 + $0x62] sm:$0xff] }
 0x135   : > { %v1629_v58 = vadd.f32 %v1597_v56, %v1529_v49  ;;  %v4261_v25 = vmul.f32 %v3956_v28, %v4241_v10  ;;  %v3455_v13 = vpop.eup %3454  ;;  %3474 = vrcp.f32 %v1972_v7  ;;  %2112 = vrot.lane.b32.xlu0 %v3453_v24, %s3595_s21  ;;  %v1299_v46 = vmul.f32 %v4035_v17, %v3830_v4  ;;  %v4275_v49 = vld [vmem:[#allocation2 + $0x60] sm:$0xff] }
 0x136   : > { %v1230_v3 = vadd.f32 %v1198_v47, %v1130_v11  ;;  %v1131_v53 = vadd.f32 %v1099_v30, %v1031_v60  ;;  %v3457_v31 = vpop.eup %3456  ;;  %v1975_v56 = vadd.f32 1.0, %v3455_v13  ;;  %3476 = vpow2.f32 %v4143_v44  ;;  %v4277_v30 = vld [vmem:[#allocation2 + $0x61] sm:$0xff] }
 0x137   : > { %v4269_v36 = vadd.f32 1.1920929e-07, %v1730_v54  ;;  %v1729_v40 = vadd.f32 %v1697_v29, %v1629_v58  ;;  %v3459_v32 = vpop.eup %3458  ;;  %3478 = vpow2.f32 %v4136_v34  ;;  %847 = vst.msk [vmem:[#allocation2 + $0x121] sm:$0xff] %vm768_vm2, %v3457_v31  ;;  %v1399_v45 = vmul.f32 %v4055_v33, %v3842_v15 }
 0x138   : > { %v1330_v19 = vadd.f32 %v1298_v51, %v1230_v3  ;;  %v1231_v47 = vadd.f32 %v1199_v2, %v1131_v53  ;;  %v3461_v1 = vpop.eup %3460  ;;  %3480 = vrcp.f32 %v1975_v56  ;;  %2118 = vrot.lane.b32.xlu1 %v3459_v32, %s3595_s21  ;;  %v1500_v44 = vmul.f32 %v3892_v20, %v4275_v49 }
 0x139   : > { %v1600_v34 = vmul.f32 %v3897_v21, %v4277_v30  ;;  %v4286_v29 = vmul.f32 %v3956_v28, %v4266_v57  ;;  %v3463_v51 = vpop.eup %3462  ;;  %v1974_v54 = vadd.f32 1.0, %v3461_v1  ;;  %3482 = vpow2.f32 %v4154_v8  ;;  %v4324_v1 = vld [vmem:[#allocation2 + $0x68] sm:$0xff] }
 0x13a   : > { %v1430_v2 = vadd.f32 %v4225_v27, %v1330_v19  ;;  %v1331_v7 = vadd.f32 %v1299_v46, %v1231_v47  ;;  %v3465_v11 = vpop.eup %3464  ;;  %3484 = vpow2.f32 %v4146_v12  ;;  %2116 = vrot.lane.b32.xlu0 %v3463_v51, %s3595_s21  ;;  %v4292_v60 = vadd.f32 1.1920929e-07, %v1729_v40 }
 0x13b   : > { %v1000_v24 = vmul.f32 %v4187_v26, %v3800_v42  ;;  %v1100_v58 = vmul.f32 %v4197_v35, %v3821_v61  ;;  %v3467_v13 = vpop.eup %3466  ;;  %3486 = vrcp.f32 %v1974_v54  ;;  %850 = vst.msk [vmem:[#allocation2 + $0x141] sm:$0xff] %vm768_vm2, %v3465_v11  ;;  %v1200_v12 = vmul.f32 %v4227_v14, %v3850_v23 }
 0x13c   : > { %v1531_v8 = vadd.f32 %v4233_v5, %v1430_v2  ;;  %v1431_v27 = vadd.f32 %v1399_v45, %v1331_v7  ;;  %v3469_v3 = vpop.eup %3468  ;;  %v1977_v53 = vadd.f32 1.0, %v3467_v13  ;;  %3488 = vpow2.f32 %v4176_v39 }
 0x13d   : > { %v1300_v26 = vmul.f32 %v4253_v0, %v3830_v4  ;;  %v4307_v35 = vmul.f32 %v4241_v10, %v3842_v15  ;;  %v3471_v46 = vpop.eup %3470  ;;  %3490 = vpow2.f32 %v4161_v6  ;;  %2122 = vrot.lane.b32.xlu1 %v3469_v3, %s3595_s21  ;;  %v900_v56 = vmul.f32 %v4185_v18, %v3797_v41 }
 0x13e   : > { %v1631_v5 = vadd.f32 %v1599_v50, %v1531_v8  ;;  %v1532_v31 = vadd.f32 %v1500_v44, %v1431_v27  ;;  %v3473_v40 = vpop.eup %3472  ;;  %3492 = vrcp.f32 %v1977_v53  ;;  %849 = vst.msk [vmem:[#allocation2 + $0x139] sm:$0xff] %vm768_vm2, %v3471_v46  ;;  %v901_v39 = vmul.f32 %v4006_v9, %v3797_v41  ;;  %v4326_v9 = vld [vmem:[#allocation2 + $0x69] sm:$0xff] }
 0x13f   : > { %v1001_v32 = vmul.f32 %v4035_v17, %v3800_v42  ;;  %v1101_v6 = vmul.f32 %v4055_v33, %v3821_v61  ;;  %v3475_v19 = vpop.eup %3474  ;;  %v1976_v47 = vadd.f32 1.0, %v3473_v40  ;;  %3494 = vpow2.f32 %v4178_v62  ;;  %v4328_v17 = vld [vmem:[#allocation2 + $0x6a] sm:$0xff] }
 0x140   : > { %v1731_v50 = vadd.f32 %v4261_v25, %v1631_v5  ;;  %v1632_v18 = vadd.f32 %v1600_v34, %v1532_v31  ;;  %v3477_v45 = vpop.eup %3476  ;;  %3496 = vpow2.f32 %v4168_v22  ;;  %2120 = vrot.lane.b32.xlu0 %v3475_v19, %s3595_s21  ;;  %v1032_v44 = vadd.f32 %v1000_v24, %v900_v56 }
 0x141   : > { %v1033_v33 = vadd.f32 %v1001_v32, %v901_v39  ;;  %v1201_v51 = vmul.f32 %v4275_v49, %v3850_v23  ;;  %v3479_v62 = vpop.eup %3478  ;;  %3498 = vrcp.f32 %v1976_v47  ;;  %852 = vst.msk [vmem:[#allocation2 + $0x159] sm:$0xff] %vm768_vm2, %v3477_v45  ;;  %v1501_v22 = vmul.f32 %v3892_v20, %v4324_v1  ;;  %v4363_v39 = vld [vmem:[#allocation2 + $0x79] sm:$0xff] }
 0x142   : > { %v4337_v25 = vmul.f32 %v3897_v21, %v4326_v9  ;;  %v1301_v34 = vmul.f32 %v4277_v30, %v3830_v4  ;;  %v3481_v54 = vpop.eup %3480  ;;  %v1979_v2 = vadd.f32 1.0, %v3479_v62  ;;  %3500 = vpow2.f32 %v4190_v52  ;;  %v4365_v32 = vld [vmem:[#allocation2 + $0x7a] sm:$0xff] }
 0x143   : > { %v1132_v7 = vadd.f32 %v1100_v58, %v1032_v44  ;;  %v1133_v11 = vadd.f32 %v1101_v6, %v1033_v33  ;;  %v3483_v24 = vpop.eup %3482  ;;  %3502 = vpow2.f32 %v4183_v38  ;;  %2126 = vrot.lane.b32.xlu1 %v3481_v54, %s3595_s21  ;;  %v4344_v13 = vadd.f32 1.1920929e-07, %v1731_v50  ;;  %v4354_v38 = vld [vmem:[#allocation2 + $0x78] sm:$0xff] }
 0x144   : > { %v1732_v8 = vadd.f32 %v4286_v29, %v1632_v18  ;;  %v4349_v27 = vmul.f32 %v3956_v28, %v4328_v17  ;;  %v3485_v3 = vpop.eup %3484  ;;  %3504 = vrcp.f32 %v1979_v2  ;;  %851 = vst.msk [vmem:[#allocation2 + $0x151] sm:$0xff] %vm768_vm2, %v3483_v24  ;;  %v1401_v53 = vmul.f32 %v4266_v57, %v3842_v15  ;;  %v4388_v2 = vld [vmem:[#allocation2 + $0x80] sm:$0xff] }
 0x145   : > { %v1232_v52 = vadd.f32 %v1200_v12, %v1132_v7  ;;  %v1233_v58 = vadd.f32 %v1201_v51, %v1133_v11  ;;  %v3487_v46 = vpop.eup %3486  ;;  %v1978_v5 = vadd.f32 1.0, %v3485_v3  ;;  %3506 = vpow2.f32 %v4199_v55 }
 0x146   : > { %v1502_v29 = vmul.f32 %v3892_v20, %v4354_v38  ;;  %v902_v31 = vmul.f32 %v4227_v14, %v3797_v41  ;;  %v3489_v56 = vpop.eup %3488  ;;  %3508 = vpow2.f32 %v4193_v16  ;;  %2124 = vrot.lane.b32.xlu0 %v3487_v46, %s3595_s21  ;;  %v1002_v55 = vmul.f32 %v4253_v0, %v3800_v42 }
 0x147   : > { %v1332_v12 = vadd.f32 %v1300_v26, %v1232_v52  ;;  %v1333_v40 = vadd.f32 %v1301_v34, %v1233_v58  ;;  %v3491_v6 = vpop.eup %3490  ;;  %3510 = vrcp.f32 %v1978_v5  ;;  %854 = vst.msk [vmem:[#allocation2 + $0x171] sm:$0xff] %vm768_vm2, %v3489_v56  ;;  %v1764_v19 = vadd.f32 1.1920929e-07, %v1732_v8 }
 0x148   : > { %v1602_v14 = vmul.f32 %v3897_v21, %v4363_v39  ;;  %v1102_v16 = vmul.f32 %v4241_v10, %v3821_v61  ;;  %v3493_v26 = vpop.eup %3492  ;;  %v1981_v47 = vadd.f32 1.0, %v3491_v6  ;;  %3512 = vlog2.f32 %v4071_v37  ;;  %v4409_v6 = vld [vmem:[#allocation2 + $0x81] sm:$0xff] }
 0x149   : > { %v1432_v50 = vadd.f32 %v4307_v35, %v1332_v12  ;;  %v1433_v18 = vadd.f32 %v1401_v53, %v1333_v40  ;;  %v3495_v45 = vpop.eup %3494  ;;  %2130 = vrot.lane.b32.xlu1 %v3493_v26, %s3595_s21  ;;  %3514 = vlog2.f32 %v4269_v36  ;;  %v1702_v0 = vmul.f32 %v3956_v28, %v4365_v32  ;;  %v4407_v40 = vld [vmem:[#allocation2 + $0x82] sm:$0xff] }
 0x14a   : > { %v1034_v44 = vadd.f32 %v1002_v55, %v902_v31  ;;  %v1202_v33 = vmul.f32 %v4324_v1, %v3850_v23  ;;  %v3497_v10 = vpop.eup %3496  ;;  %3516 = vrcp.f32 %v1981_v47  ;;  %853 = vst.msk [vmem:[#allocation2 + $0x169] sm:$0xff] %vm768_vm2, %v3495_v45  ;;  %v1302_v35 = vmul.f32 %v4326_v9, %v3830_v4 }
 0x14b   : > { %v1533_v37 = vadd.f32 %v1501_v22, %v1432_v50  ;;  %v1534_v51 = vadd.f32 %v1502_v29, %v1433_v18  ;;  %v3499_v62 = vpop.eup %3498  ;;  %v1980_v34 = vadd.f32 1.0, %v3497_v10  ;;  %3518 = vlog2.f32 %v4292_v60 }
 0x14c   : > { %v1134_v36 = vadd.f32 %v1102_v16, %v1034_v44  ;;  %v1402_v54 = vmul.f32 %v4328_v17, %v3842_v15  ;;  %v3501_v7 = vpop.eup %3500  ;;  %2128 = vrot.lane.b32.xlu0 %v3499_v62, %s3595_s21  ;;  %v1503_v24 = vmul.f32 %v3892_v20, %v4388_v2  ;;  %v903_v8 = vmul.f32 %v4275_v49, %v3797_v41  ;;  %v4420_v44 = vld [vmem:[#allocation2 + $0x92] sm:$0xff] }
 0x14d   : > { %v1633_v11 = vadd.f32 %v4337_v25, %v1533_v37  ;;  %v1634_v22 = vadd.f32 %v1602_v14, %v1534_v51  ;;  %v3503_v3 = vpop.eup %3502  ;;  %3520 = vrcp.f32 %v1980_v34  ;;  %856 = vst.msk [vmem:[#allocation2 + $0x189] sm:$0xff] %vm768_vm2, %v3501_v7  ;;  %v1003_v52 = vmul.f32 %v4277_v30, %v3800_v42  ;;  %v4424_v37 = vld [vmem:[#allocation2 + $0x90] sm:$0xff] }
 0x14e   : > { %v1234_v60 = vadd.f32 %v1202_v33, %v1134_v36  ;;  %v1103_v58 = vmul.f32 %v4266_v57, %v3821_v61  ;;  %v3505_v53 = vpop.eup %3504  ;;  %v1983_v25 = vadd.f32 1.0, %v3503_v3  ;;  %3522 = vlog2.f32 %v4344_v13  ;;  %v4426_v51 = vld [vmem:[#allocation2 + $0x91] sm:$0xff] }
 0x14f   : > { %v1733_v46 = vadd.f32 %v4349_v27, %v1633_v11  ;;  %v1734_v5 = vadd.f32 %v1702_v0, %v1634_v22  ;;  %v3507_v29 = vpop.eup %3506  ;;  %2134 = vrot.lane.b32.xlu1 %v3505_v53, %s3595_s21  ;;  %3524 = vlog2.f32 %v1764_v19  ;;  %v1035_v31 = vadd.f32 %v1003_v52, %v903_v8 }
 0x150   : > { %v1334_v49 = vadd.f32 %v1302_v35, %v1234_v60  ;;  %v1203_v56 = vmul.f32 %v4354_v38, %v3850_v23  ;;  %v3509_v30 = vpop.eup %3508  ;;  %3526 = vrcp.f32 %v1983_v25  ;;  %855 = vst.msk [vmem:[#allocation2 + $0x181] sm:$0xff] %vm768_vm2, %v3507_v29  ;;  %v1303_v19 = vmul.f32 %v4363_v39, %v3830_v4 }
 0x151   : > { %v1765_v57 = vadd.f32 1.1920929e-07, %v1733_v46  ;;  %v1766_v12 = vadd.f32 1.1920929e-07, %v1734_v5  ;;  %v3511_v13 = vpop.eup %3510  ;;  %v1982_v27 = vadd.f32 1.0, %v3509_v30  ;;  %v1135_v14 = vadd.f32 %v1103_v58, %v1035_v31  ;;  %v4450_v46 = vld [vmem:[#allocation2 + $0x9a] sm:$0xff] }
 0x152   : > { %v1434_v55 = vadd.f32 %v1402_v54, %v1334_v49  ;;  %v3513_v16 = vpop.eup %3512  ;;  %2132 = vrot.lane.b32.xlu0 %v3511_v13, %s3595_s21  ;;  %v1603_v26 = vmul.f32 %v3897_v21, %v4409_v6  ;;  %v904_v47 = vmul.f32 %v4324_v1, %v3797_v41  ;;  %v1703_v45 = vmul.f32 %v3956_v28, %v4407_v40  ;;  %v4458_v30 = vld [vmem:[#allocation2 + $0x98] sm:$0xff] }
 0x153   : > { %3528 = vlog2.f32 %v1765_v57  ;;  %v3515_v50 = vpop.eup %3514  ;;  %v1235_v0 = vadd.f32 %v1203_v56, %v1135_v14  ;;  %v1403_v10 = vmul.f32 %v4365_v32, %v3842_v15  ;;  %v1004_v1 = vmul.f32 %v4326_v9, %v3800_v42 }
 0x154   : > { %3530 = vrcp.f32 %v1982_v27  ;;  %v1535_v18 = vadd.f32 %v1503_v24, %v1434_v55  ;;  %v3517_v33 = vpop.eup %3516  ;;  %v1104_v35 = vmul.f32 %v4328_v17, %v3821_v61  ;;  %v1504_v54 = vmul.f32 %v3892_v20, %v4424_v37 }
 0x155   : > { %3532 = vlog2.f32 %v1766_v12  ;;  %v3519_v62 = vpop.eup %3518  ;;  %2138 = vrot.lane.b32.xlu1 %v3517_v33, %s3595_s21  ;;  %v1335_v36 = vadd.f32 %v1303_v19, %v1235_v0  ;;  %v1604_v7 = vmul.f32 %v3897_v21, %v4426_v51  ;;  %v4437_v11 = vmul.f32 0.6931472, %v3513_v16 }
 0x156   : > { %v1635_v34 = vadd.f32 %v1603_v26, %v1535_v18  ;;  %v1704_v22 = vmul.f32 %v3956_v28, %v4420_v44  ;;  %v1036_v9 = vadd.f32 %v1004_v1, %v904_v47  ;;  %v1204_v17 = vmul.f32 %v4388_v2, %v3850_v23  ;;  %v4484_v1 = vld [vmem:[#allocation2 + $0xaa] sm:$0xff] }
 0x157   : > { %v3521_v24 = vpop.eup %3520  ;;  %v4443_v8 = vmul.f32 0.6931472, %v3515_v50  ;;  %v1435_v60 = vadd.f32 %v1403_v10, %v1335_v36  ;;  %v1304_v52 = vmul.f32 %v4409_v6, %v3830_v4  ;;  %v4448_v53 = vmul.f32 0.6931472, %v3519_v62 }
 0x158   : > { %v1735_v3 = vadd.f32 %v1703_v45, %v1635_v34  ;;  %v3523_v58 = vpop.eup %3522  ;;  %2136 = vrot.lane.b32.xlu0 %v3521_v24, %s3595_s21  ;;  %v1136_v25 = vadd.f32 %v1104_v35, %v1036_v9  ;;  %v905_v28 = vmul.f32 %v4354_v38, %v3797_v41  ;;  %v1005_v5 = vmul.f32 %v4363_v39, %v3800_v42  ;;  %v4464_v38 = vld [vmem:[#allocation2 + $0x99] sm:$0xff]  ;;  %v1470_v9 = vld [vmem:[#allocation2 + $0xa8] sm:$0xff] }
 0x159   : > { %v3525_v29 = vpop.eup %3524  ;;  %v1536_v31 = vadd.f32 %v1504_v54, %v1435_v60  ;;  %v1404_v56 = vmul.f32 %v4407_v40, %v3842_v15  ;;  %v1105_v57 = vmul.f32 %v4365_v32, %v3821_v61  ;;  %v1505_v27 = vmul.f32 %v3892_v20, %v4458_v30  ;;  %v4476_v32 = vld [vmem:[%s5356_s3 + $0x8] ss:$0 sm:$0xff] }
 0x15a   : > { %v1767_v49 = vadd.f32 1.1920929e-07, %v1735_v3  ;;  %v3527_v12 = vpop.eup %3526  ;;  %v1236_v13 = vadd.f32 %v1204_v17, %v1136_v25  ;;  %v1037_v55 = vadd.f32 %v1005_v5, %v905_v28  ;;  %v1205_v39 = vmul.f32 %v4424_v37, %v3850_v23  ;;  %v1570_v3 = vld [vmem:[#allocation2 + $0xa9] sm:$0xff] }
 0x15b   : > { %2142 = vrot.lane.b32.xlu1 %v3527_v12, %s3595_s21  ;;  %v4469_v14 = vmul.f32 0.6931472, %v3523_v58  ;;  %v1636_v19 = vadd.f32 %v1604_v7, %v1536_v31  ;;  %v1605_v16 = vmul.f32 %v3897_v21, %v4464_v38  ;;  %v1705_v26 = vmul.f32 %v4476_v32, %v4450_v46 }
 0x15c   : > { %v4480_v50 = vmul.f32 0.6931472, %v3525_v29  ;;  %v1336_v18 = vadd.f32 %v1304_v52, %v1236_v13  ;;  %v1137_v45 = vadd.f32 %v1105_v57, %v1037_v55  ;;  %v1305_v0 = vmul.f32 %v4426_v51, %v3830_v4 }
 0x15d   : > { %v3529_v47 = vpop.eup %3528  ;;  %3534 = vlog2.f32 %v1767_v49  ;;  %v1736_v10 = vadd.f32 %v1704_v22, %v1636_v19  ;;  %v906_v35 = vmul.f32 %v4388_v2, %v3797_v41  ;;  %v1006_v62 = vmul.f32 %v4409_v6, %v3800_v42 }
 0x15e   : > { %v3531_v33 = vpop.eup %3530  ;;  %v1436_v36 = vadd.f32 %v1404_v56, %v1336_v18  ;;  %v1237_v54 = vadd.f32 %v1205_v39, %v1137_v45  ;;  %v1405_v7 = vmul.f32 %v4420_v44, %v3842_v15  ;;  %v1106_v22 = vmul.f32 %v4407_v40, %v3821_v61  ;;  %v4507_v56 = vld [vmem:[#allocation2 + $0xb2] sm:$0xff] }
 0x15f   : > { %v3533_v34 = vpop.eup %3532  ;;  %2140 = vrot.lane.b32.xlu0 %v3531_v33, %s3595_s21  ;;  %v1768_v17 = vadd.f32 1.1920929e-07, %v1736_v10  ;;  %v1506_v24 = vmul.f32 %v3892_v20, %v1470_v9  ;;  %v1038_v2 = vadd.f32 %v1006_v62, %v906_v35  ;;  %v1206_v6 = vmul.f32 %v4458_v30, %v3850_v23 }
 0x160   : > { %v1537_v60 = vadd.f32 %v1505_v27, %v1436_v36  ;;  %v1337_v52 = vadd.f32 %v1305_v0, %v1237_v54  ;;  %v1606_v58 = vmul.f32 %v3897_v21, %v1570_v3  ;;  %v1706_v25 = vmul.f32 %v4476_v32, %v4484_v1  ;;  %v4526_v36 = vld [vmem:[#allocation2 + $0xc0] sm:$0xff] }
 0x161   : > { %v4501_v28 = vmul.f32 0.6931472, %v3529_v47  ;;  %v4503_v5 = vmul.f32 0.6931472, %v3533_v34  ;;  %v1138_v40 = vadd.f32 %v1106_v22, %v1038_v2  ;;  %v1306_v29 = vmul.f32 %v4464_v38, %v3830_v4  ;;  %v4517_v47 = vld [vmem:[#allocation2 + $0xb1] sm:$0xff]  ;;  %v4528_v54 = vld [vmem:[#allocation2 + $0xc2] sm:$0xff] }
 0x162   : > { %v1637_v49 = vadd.f32 %v1605_v16, %v1537_v60  ;;  %v1437_v31 = vadd.f32 %v1405_v7, %v1337_v52  ;;  %v907_v57 = vmul.f32 %v4424_v37, %v3797_v41  ;;  %v1007_v12 = vmul.f32 %v4426_v51, %v3800_v42  ;;  %v1471_v16 = vld [vmem:[#allocation2 + $0xb0] sm:$0xff] }
 0x163   : > { %3536 = vlog2.f32 %v1768_v17  ;;  %v1238_v13 = vadd.f32 %v1206_v6, %v1138_v40  ;;  %v1406_v27 = vmul.f32 %v4450_v46, %v3842_v15  ;;  %v1107_v55 = vmul.f32 %v4420_v44, %v3821_v61 }
 0x164   : > { %v1737_v39 = vadd.f32 %v1705_v26, %v1637_v49  ;;  %v1538_v19 = vadd.f32 %v1506_v24, %v1437_v31  ;;  %v1039_v18 = vadd.f32 %v1007_v12, %v907_v57  ;;  %v1207_v45 = vmul.f32 %v1470_v9, %v3850_v23 }
 0x165   : > { %v1338_v37 = vadd.f32 %v1306_v29, %v1238_v13  ;;  %v1507_v0 = vmul.f32 %v3892_v20, %v1471_v16  ;;  %v1607_v51 = vmul.f32 %v3897_v21, %v4517_v47  ;;  %v1707_v33 = vmul.f32 %v4476_v32, %v4507_v56 }
 0x166   : > { %v1769_v10 = vadd.f32 1.1920929e-07, %v1737_v39  ;;  %v1638_v35 = vadd.f32 %v1606_v58, %v1538_v19  ;;  %v1139_v44 = vadd.f32 %v1107_v55, %v1039_v18  ;;  %v1307_v26 = vmul.f32 %v1570_v3, %v3830_v4  ;;  %v1572_v58 = vld [vmem:[#allocation2 + $0xc1] sm:$0xff]  ;;  %v4551_v39 = vld [vmem:[#allocation2 + $0xca] sm:$0xff] }
 0x167   : > { %v3535_v62 = vpop.eup %3534  ;;  %v1438_v34 = vadd.f32 %v1406_v27, %v1338_v37  ;;  %v908_v7 = vmul.f32 %v4458_v30, %v3797_v41  ;;  %v1008_v22 = vmul.f32 %v4464_v38, %v3800_v42  ;;  %v1108_v17 = vmul.f32 %v4450_v46, %v3821_v61 }
 0x168   : > { %v1738_v24 = vadd.f32 %v1706_v25, %v1638_v35  ;;  %v1239_v2 = vadd.f32 %v1207_v45, %v1139_v44  ;;  %v1407_v6 = vmul.f32 %v4484_v1, %v3842_v15  ;;  %v1508_v60 = vmul.f32 %v3892_v20, %v4526_v36  ;;  %v4560_v35 = vld [vmem:[#allocation2 + $0xc9] sm:$0xff] }
 0x169   : > { %3538 = vlog2.f32 %v1769_v10  ;;  %v1539_v52 = vadd.f32 %v1507_v0, %v1438_v34  ;;  %v1040_v40 = vadd.f32 %v1008_v22, %v908_v7  ;;  %v1208_v30 = vmul.f32 %v1471_v16, %v3850_v23  ;;  %v4554_v0 = vld [vmem:[#allocation2 + $0xc8] sm:$0xff] }
 0x16a   : > { %v1770_v29 = vadd.f32 1.1920929e-07, %v1738_v24  ;;  %v1339_v49 = vadd.f32 %v1307_v26, %v1239_v2  ;;  %v1608_v38 = vmul.f32 %v3897_v21, %v1572_v58  ;;  %v1708_v46 = vmul.f32 %v4476_v32, %v4528_v54 }
 0x16b   : > { %v1639_v25 = vadd.f32 %v1607_v51, %v1539_v52  ;;  %v1140_v31 = vadd.f32 %v1108_v17, %v1040_v40  ;;  %v1308_v57 = vmul.f32 %v4517_v47, %v3830_v4  ;;  %v909_v12 = vmul.f32 %v1470_v9, %v3797_v41 }
 0x16c   : > { %v4547_v13 = vmul.f32 0.6931472, %v3535_v62  ;;  %v1439_v27 = vadd.f32 %v1407_v6, %v1339_v49  ;;  %v1408_v55 = vmul.f32 %v4507_v56, %v3842_v15  ;;  %v1009_v19 = vmul.f32 %v1570_v3, %v3800_v42  ;;  %v4572_v6 = vld [vmem:[#allocation2 + $0xd8] sm:$0xff] }
 0x16d   : > { %v3537_v18 = vpop.eup %3536  ;;  %3540 = vlog2.f32 %v1770_v29  ;;  %v1739_v45 = vadd.f32 %v1707_v33, %v1639_v25  ;;  %v1240_v37 = vadd.f32 %v1208_v30, %v1140_v31  ;;  %v1109_v51 = vmul.f32 %v4484_v1, %v3821_v61 }
 0x16e   : > { %v1540_v9 = vadd.f32 %v1508_v60, %v1439_v27  ;;  %v1509_v10 = vmul.f32 %v3892_v20, %v4554_v0  ;;  %v1041_v44 = vadd.f32 %v1009_v19, %v909_v12  ;;  %v1209_v26 = vmul.f32 %v4526_v36, %v3850_v23  ;;  %v4574_v60 = vld [vmem:[#allocation2 + $0xda] sm:$0xff] }
 0x16f   : > { %v1340_v3 = vadd.f32 %v1308_v57, %v1240_v37  ;;  %v1609_v33 = vmul.f32 %v3897_v21, %v4560_v35  ;;  %v1709_v62 = vmul.f32 %v4476_v32, %v4551_v39  ;;  %v1309_v34 = vmul.f32 %v1572_v58, %v3830_v4 }
 0x170   : > { %v1771_v1 = vadd.f32 1.1920929e-07, %v1739_v45  ;;  %v1640_v7 = vadd.f32 %v1608_v38, %v1540_v9  ;;  %v1141_v22 = vadd.f32 %v1109_v51, %v1041_v44  ;;  %v910_v17 = vmul.f32 %v1471_v16, %v3797_v41  ;;  %v4584_v38 = vld [vmem:[#allocation2 + $0xd9] sm:$0xff] }
 0x171   : > { %v4570_v24 = vmul.f32 0.6931472, %v3537_v18  ;;  %v1440_v2 = vadd.f32 %v1408_v55, %v1340_v3  ;;  %v1010_v52 = vmul.f32 %v4517_v47, %v3800_v42  ;;  %v1110_v40 = vmul.f32 %v4507_v56, %v3821_v61  ;;  %v4598_v9 = vld [vmem:[#allocation2 + $0xe0] sm:$0xff] }
 0x172   : > { %v1740_v30 = vadd.f32 %v1708_v46, %v1640_v7  ;;  %v1241_v29 = vadd.f32 %v1209_v26, %v1141_v22  ;;  %v1409_v49 = vmul.f32 %v4528_v54, %v3842_v15  ;;  %v1510_v16 = vmul.f32 %v3892_v20, %v4572_v6  ;;  %v4607_v7 = vld [vmem:[#allocation2 + $0xe2] sm:$0xff] }
 0x173   : > { %v3539_v25 = vpop.eup %3538  ;;  %v1541_v31 = vadd.f32 %v1509_v10, %v1440_v2  ;;  %v1610_v57 = vmul.f32 %v3897_v21, %v4584_v38  ;;  %v1042_v12 = vadd.f32 %v1010_v52, %v910_v17  ;;  %v1210_v47 = vmul.f32 %v4554_v0, %v3850_v23 }
 0x174   : > { %3542 = vlog2.f32 %v1771_v1  ;;  %v1772_v56 = vadd.f32 1.1920929e-07, %v1740_v30  ;;  %v1341_v46 = vadd.f32 %v1309_v34, %v1241_v29  ;;  %v1710_v27 = vmul.f32 %v4476_v32, %v4574_v60 }
 0x175   : > { %v1641_v55 = vadd.f32 %v1609_v33, %v1541_v31  ;;  %v1142_v19 = vadd.f32 %v1110_v40, %v1042_v12  ;;  %v1310_v18 = vmul.f32 %v4560_v35, %v3830_v4  ;;  %v911_v45 = vmul.f32 %v4526_v36, %v3797_v41 }
 0x176   : > { %v4596_v37 = vmul.f32 0.6931472, %v3539_v25  ;;  %v1441_v51 = vadd.f32 %v1409_v49, %v1341_v46  ;;  %v1011_v10 = vmul.f32 %v1572_v58, %v3800_v42  ;;  %v1111_v44 = vmul.f32 %v4528_v54, %v3821_v61  ;;  %v4610_v58 = vld [vmem:[#allocation2 + $0xe1] sm:$0xff] }
 0x177   : > { %v3541_v26 = vpop.eup %3540  ;;  %v2081_v3 = vpop.permute.xlu0 %2080  ;;  %v1741_v33 = vadd.f32 %v1709_v62, %v1641_v55  ;;  %v1242_v34 = vadd.f32 %v1210_v47, %v1142_v19  ;;  %v1410_v1 = vmul.f32 %v4551_v39, %v3842_v15  ;;  %v1511_v36 = vmul.f32 %v3892_v20, %v4598_v9 }
 0x178   : > { %v2176_v22 = vmul.f32 %v2081_v3, %v4437_v11  ;;  %3544 = vlog2.f32 %v1772_v56  ;;  %v1542_v17 = vadd.f32 %v1510_v16, %v1441_v51  ;;  %v1043_v2 = vadd.f32 %v1011_v10, %v911_v45  ;;  %v4629_v45 = vld [vmem:[#allocation2 + $0xf0] sm:$0xff] }
 0x179   : > { %v1773_v54 = vadd.f32 1.1920929e-07, %v1741_v33  ;;  %v1342_v52 = vadd.f32 %v1310_v18, %v1242_v34  ;;  %v1611_v62 = vmul.f32 %v3897_v21, %v4610_v58  ;;  %v1211_v40 = vmul.f32 %v4572_v6, %v3850_v23  ;;  %v4631_v51 = vld [vmem:[#allocation2 + $0xf2] sm:$0xff] }
 0x17a   : > { %3264 = vmatprep.mubr.msk.f32.mxu1 %vm768_vm2, %v2176_v22  ;;  %v4617_v30 = vmul.f32 0.6931472, %v3541_v26  ;;  %v1642_v29 = vadd.f32 %v1610_v57, %v1542_v17  ;;  %v1711_v11 = vmul.f32 %v4476_v32, %v4607_v7  ;;  %v1143_v49 = vadd.f32 %v1111_v44, %v1043_v2 }
 0x17b   : > { %v2085_v16 = vpop.permute.xlu1 %2084  ;;  %v2083_v25 = vpop.permute.xlu0 %2082  ;;  %v1442_v31 = vadd.f32 %v1410_v1, %v1342_v52  ;;  %v1311_v12 = vmul.f32 %v4584_v38, %v3830_v4  ;;  %v912_v47 = vmul.f32 %v4554_v0, %v3797_v41  ;;  %v1012_v56 = vmul.f32 %v4560_v35, %v3800_v42 }
 0x17c   : > { %v2178_v46 = vmul.f32 %v2085_v16, %v4443_v8  ;;  %v2177_v57 = vmul.f32 %v2083_v25, %v4448_v53  ;;  %3546 = vlog2.f32 %v1773_v54  ;;  %v1742_v55 = vadd.f32 %v1710_v27, %v1642_v29  ;;  %v4656_v16 = vld [vmem:[#allocation2 + $0xf8] sm:$0xff] }
 0x17d   : > { %v1543_v19 = vadd.f32 %v1511_v36, %v1442_v31  ;;  %v1243_v18 = vadd.f32 %v1211_v40, %v1143_v49  ;;  %v1044_v10 = vadd.f32 %v1012_v56, %v912_v47  ;;  %v1112_v44 = vmul.f32 %v4551_v39, %v3821_v61  ;;  %v4643_v39 = vld [vmem:[#allocation2 + $0xf1] sm:$0xff] }
 0x17e   : > { %v3543_v0 = vpop.eup %3542  ;;  %3265 = vmatmul.mubr.msk.f32.vlgmr.msra.gmra.mrb[0].mxu1 %vm768_vm2, %v2177_v57  ;;  %v1774_v35 = vadd.f32 1.1920929e-07, %v1742_v55  ;;  %v1411_v8 = vmul.f32 %v4574_v60, %v3842_v15  ;;  %v1512_v53 = vmul.f32 %v3892_v20, %v4629_v45  ;;  %v1212_v27 = vmul.f32 %v4598_v9, %v3850_v23  ;;  %v4672_v55 = vld [vmem:[#allocation2 + $0xf9] sm:$0xff] }
 0x17f   : > { %v2087_v26 = vpop.permute.xlu1 %2086  ;;  %v2089_v3 = vpop.permute.xlu0 %2088  ;;  %3267 = vmatprep.mubr.msk.f32.mxu1 %vm768_vm2, %v2178_v46  ;;  %v1643_v33 = vadd.f32 %v1611_v62, %v1543_v19  ;;  %v1343_v34 = vadd.f32 %v1311_v12, %v1243_v18  ;;  %v1144_v1 = vadd.f32 %v1112_v44, %v1044_v10  ;;  %v1312_v36 = vmul.f32 %v4610_v58, %v3830_v4  ;;  %v4667_v46 = vld [vmem:[#allocation2 + $0xfa] sm:$0xff] }
 0x180   : > { %v2179_v22 = vmul.f32 %v2087_v26, %v4469_v14  ;;  %v2180_v17 = vmul.f32 %v2089_v3, %v4480_v50  ;;  %v1612_v2 = vmul.f32 %v3897_v21, %v4643_v39  ;;  %v1712_v54 = vmul.f32 %v4476_v32, %v4631_v51  ;;  %v4685_v3 = vld [vmem:[#allocation2 + $0x108] sm:$0xff] }
 0x181   : > { %3548 = vlog2.f32 %v1774_v35  ;;  %v1743_v52 = vadd.f32 %v1711_v11, %v1643_v33  ;;  %v1443_v62 = vadd.f32 %v1411_v8, %v1343_v34  ;;  %v1244_v40 = vadd.f32 %v1212_v27, %v1144_v1 }
 0x182   : > { %v3545_v29 = vpop.eup %3544  ;;  %3268 = vmatmul.mubr.msk.f32.gmra.mrb[2].mxu1 %vm768_vm2, %v2179_v22  ;;  %v1412_v49 = vmul.f32 %v4607_v7, %v3842_v15  ;;  %v913_v14 = vmul.f32 %v4572_v6, %v3797_v41  ;;  %v1013_v50 = vmul.f32 %v4584_v38, %v3800_v42  ;;  %v1113_v25 = vmul.f32 %v4574_v60, %v3821_v61 }
 0x183   : > { %v2091_v11 = vpop.permute.xlu1 %2090  ;;  %3270 = vmatprep.mubr.msk.f32.mxu1 %vm768_vm2, %v2180_v17  ;;  %v1775_v31 = vadd.f32 1.1920929e-07, %v1743_v52  ;;  %v1544_v12 = vadd.f32 %v1512_v53, %v1443_v62  ;;  %v1344_v47 = vadd.f32 %v1312_v36, %v1244_v40  ;;  %v1513_v56 = vmul.f32 %v3892_v20, %v4656_v16  ;;  %v4698_v62 = vld [vmem:[#allocation2 + $0x10a] sm:$0xff] }
 0x184   : > { %v2181_v57 = vmul.f32 %v2091_v11, %v4501_v28  ;;  %v4670_v6 = vmul.f32 0.6931472, %v3543_v0  ;;  %v1045_v38 = vadd.f32 %v1013_v50, %v913_v14  ;;  %v1213_v60 = vmul.f32 %v4629_v45, %v3850_v23  ;;  %v4705_v50 = vld [vmem:[#allocation2 + $0x109] sm:$0xff] }
 0x185   : > { %v4676_v19 = vmul.f32 0.6931472, %v3545_v29  ;;  %v1644_v18 = vadd.f32 %v1612_v2, %v1544_v12  ;;  %v1444_v10 = vadd.f32 %v1412_v49, %v1344_v47  ;;  %v1613_v44 = vmul.f32 %v3897_v21, %v4672_v55 }
 0x186   : > { %v3547_v35 = vpop.eup %3546  ;;  %3271 = vmatmul.mubr.msk.f32.gmra.mrb[4].mxu1 %vm768_vm2, %v2181_v57  ;;  %3550 = vlog2.f32 %v1775_v31  ;;  %v1713_v28 = vmul.f32 %v4476_v32, %v4667_v46  ;;  %v1145_v0 = vadd.f32 %v1113_v25, %v1045_v38  ;;  %v1313_v8 = vmul.f32 %v4643_v39, %v3830_v4 }
 0x187   : > { %v2095_v53 = vpop.permute.xlu1 %2094  ;;  %v1744_v27 = vadd.f32 %v1712_v54, %v1644_v18  ;;  %v1545_v26 = vadd.f32 %v1513_v56, %v1444_v10  ;;  %v914_v33 = vmul.f32 %v4598_v9, %v3797_v41  ;;  %v1014_v34 = vmul.f32 %v4610_v58, %v3800_v42  ;;  %v4719_v18 = vld [vmem:[#allocation2 + $0x110] sm:$0xff] }
 0x188   : > { %v1245_v1 = vadd.f32 %v1213_v60, %v1145_v0  ;;  %v1413_v36 = vmul.f32 %v4631_v51, %v3842_v15  ;;  %v1514_v22 = vmul.f32 %v3892_v20, %v4685_v3  ;;  %v1114_v17 = vmul.f32 %v4607_v7, %v3821_v61  ;;  %v4721_v10 = vld [vmem:[#allocation2 + $0x112] sm:$0xff] }
 0x189   : > { %v2093_v2 = vpop.permute.xlu0 %2092  ;;  %v2183_v54 = vmul.f32 %v2095_v53, %v4547_v13  ;;  %v1645_v52 = vadd.f32 %v1613_v44, %v1545_v26  ;;  %v1046_v9 = vadd.f32 %v1014_v34, %v914_v33  ;;  %v1214_v58 = vmul.f32 %v4656_v16, %v3850_v23  ;;  %v4731_v53 = vld [vmem:[#allocation2 + $0x111] sm:$0xff] }
 0x18a   : > { %v2182_v40 = vmul.f32 %v2093_v2, %v4503_v5  ;;  %v4703_v29 = vmul.f32 0.6931472, %v3547_v35  ;;  %v1776_v49 = vadd.f32 1.1920929e-07, %v1744_v27  ;;  %v1345_v14 = vadd.f32 %v1313_v8, %v1245_v1 }
 0x18b   : > { %v3549_v25 = vpop.eup %3548  ;;  %v1745_v7 = vadd.f32 %v1713_v28, %v1645_v52  ;;  %v1614_v13 = vmul.f32 %v3897_v21, %v4705_v50  ;;  %v1146_v11 = vadd.f32 %v1114_v17, %v1046_v9  ;;  %v1314_v31 = vmul.f32 %v4672_v55, %v3830_v4 }
 0x18c   : > { %3273 = vmatprep.mubr.msk.f32.mxu1 %vm768_vm2, %v2182_v40  ;;  %v1445_v12 = vadd.f32 %v1413_v36, %v1345_v14  ;;  %v1714_v5 = vmul.f32 %v4476_v32, %v4698_v62  ;;  %v1414_v47 = vmul.f32 %v4667_v46, %v3842_v15  ;;  %v915_v56 = vmul.f32 %v4629_v45, %v3797_v41 }
 0x18d   : > { %3274 = vmatmul.mubr.msk.f32.gmra.mrb[6].mxu1 %vm768_vm2, %v2183_v54  ;;  %v2099_v57 = vpop.permute.xlu1 %2098  ;;  %v1777_v38 = vadd.f32 1.1920929e-07, %v1745_v7  ;;  %v1246_v60 = vadd.f32 %v1214_v58, %v1146_v11  ;;  %v1015_v44 = vmul.f32 %v4643_v39, %v3800_v42  ;;  %v1115_v35 = vmul.f32 %v4631_v51, %v3821_v61  ;;  %v4754_v7 = vld [vmem:[#allocation2 + $0x122] sm:$0xff] }
 0x18e   : > { %v4727_v28 = vmul.f32 0.6931472, %v3549_v25  ;;  %3552 = vlog2.f32 %v1776_v49  ;;  %v1546_v0 = vadd.f32 %v1514_v22, %v1445_v12  ;;  %v1515_v45 = vmul.f32 %v3892_v20, %v4719_v18  ;;  %v4758_v11 = vld [vmem:[#allocation2 + $0x120] sm:$0xff] }
 0x18f   : > { %3554 = vlog2.f32 %v1777_v38  ;;  %v1346_v8 = vadd.f32 %v1314_v31, %v1246_v60  ;;  %v1047_v27 = vadd.f32 %v1015_v44, %v915_v56  ;;  %v1215_v26 = vmul.f32 %v4685_v3, %v3850_v23 }
 0x190   : > { %v3551_v33 = vpop.eup %3550  ;;  %v2097_v39 = vpop.permute.xlu0 %2096  ;;  %v2185_v34 = vmul.f32 %v2099_v57, %v4596_v37  ;;  %v1646_v51 = vadd.f32 %v1614_v13, %v1546_v0  ;;  %v1615_v1 = vmul.f32 %v3897_v21, %v4731_v53  ;;  %v1715_v36 = vmul.f32 %v4476_v32, %v4721_v10  ;;  %v4765_v57 = vld [vmem:[#allocation2 + $0x121] sm:$0xff] }
 0x191   : > { %v2184_v22 = vmul.f32 %v2097_v39, %v4570_v24  ;;  %v1446_v17 = vadd.f32 %v1414_v47, %v1346_v8  ;;  %v1147_v2 = vadd.f32 %v1115_v35, %v1047_v27  ;;  %v1315_v54 = vmul.f32 %v4705_v50, %v3830_v4  ;;  %v4781_v39 = vld [vmem:[#allocation2 + $0x12a] sm:$0xff] }
 0x192   : > { %v2103_v52 = vpop.permute.xlu1 %2102  ;;  %v1746_v9 = vadd.f32 %v1714_v5, %v1646_v51  ;;  %v916_v58 = vmul.f32 %v4656_v16, %v3797_v41  ;;  %v1016_v37 = vmul.f32 %v4672_v55, %v3800_v42  ;;  %v1116_v40 = vmul.f32 %v4667_v46, %v3821_v61 }
 0x193   : > { %3276 = vmatprep.mubr.msk.f32.mxu1 %vm768_vm2, %v2184_v22  ;;  %v4750_v49 = vmul.f32 0.6931472, %v3551_v33  ;;  %v1547_v24 = vadd.f32 %v1515_v45, %v1446_v17  ;;  %v1247_v14 = vadd.f32 %v1215_v26, %v1147_v2  ;;  %v1415_v25 = vmul.f32 %v4698_v62, %v3842_v15  ;;  %v4779_v33 = vld [vmem:[#allocation2 + $0x128] sm:$0xff] }
 0x194   : > { %v2101_v13 = vpop.permute.xlu0 %2100  ;;  %3277 = vmatmul.mubr.msk.f32.gmra.mrb[8].mxu1 %vm768_vm2, %v2185_v34  ;;  %v2187_v16 = vmul.f32 %v2103_v52, %v4670_v6  ;;  %v1778_v55 = vadd.f32 1.1920929e-07, %v1746_v9  ;;  %v1048_v46 = vadd.f32 %v1016_v37, %v916_v58  ;;  %v1216_v31 = vmul.f32 %v4719_v18, %v3850_v23  ;;  %v4791_v9 = vld [vmem:[#allocation2 + $0x129] sm:$0xff] }
 0x195   : > { %v2186_v12 = vmul.f32 %v2101_v13, %v4617_v30  ;;  %v1647_v5 = vadd.f32 %v1615_v1, %v1547_v24  ;;  %v1347_v47 = vadd.f32 %v1315_v54, %v1247_v14  ;;  %v1516_v56 = vmul.f32 %v3892_v20, %v4758_v11 }
 0x196   : > { %v1616_v38 = vmul.f32 %v3897_v21, %v4765_v57  ;;  %v1716_v6 = vmul.f32 %v4476_v32, %v4754_v7  ;;  %v1148_v60 = vadd.f32 %v1116_v40, %v1048_v46  ;;  %v1316_v44 = vmul.f32 %v4731_v53, %v3830_v4 }
 0x197   : > { %3279 = vmatprep.mubr.msk.f32.mxu1 %vm768_vm2, %v2186_v12  ;;  %v2107_v30 = vpop.permute.xlu1 %2106  ;;  %v1747_v35 = vadd.f32 %v1715_v36, %v1647_v5  ;;  %v1447_v0 = vadd.f32 %v1415_v25, %v1347_v47  ;;  %v1416_v45 = vmul.f32 %v4721_v10, %v3842_v15  ;;  %v917_v8 = vmul.f32 %v4685_v3, %v3797_v41  ;;  %v4811_v47 = vld [vmem:[#allocation2 + $0x138] sm:$0xff] }
 0x198   : > { %v3553_v27 = vpop.eup %3552  ;;  %3280 = vmatmul.mubr.msk.f32.gmra.mrb[10].mxu1 %vm768_vm2, %v2187_v16  ;;  %3556 = vlog2.f32 %v1778_v55  ;;  %v1248_v26 = vadd.f32 %v1216_v31, %v1148_v60  ;;  %v1017_v34 = vmul.f32 %v4705_v50, %v3800_v42  ;;  %v1117_v51 = vmul.f32 %v4698_v62, %v3821_v61 }
 0x199   : > { %v3555_v1 = vpop.eup %3554  ;;  %v2105_v36 = vpop.permute.xlu0 %2104  ;;  %v2189_v22 = vmul.f32 %v2107_v30, %v4703_v29  ;;  %v1779_v3 = vadd.f32 1.1920929e-07, %v1747_v35  ;;  %v1548_v17 = vadd.f32 %v1516_v56, %v1447_v0  ;;  %v1517_v2 = vmul.f32 %v3892_v20, %v4779_v33  ;;  %v4813_v56 = vld [vmem:[#allocation2 + $0x13a] sm:$0xff] }
 0x19a   : > { %v2188_v54 = vmul.f32 %v2105_v36, %v4676_v19  ;;  %v1348_v52 = vadd.f32 %v1316_v44, %v1248_v26  ;;  %v1049_v58 = vadd.f32 %v1017_v34, %v917_v8  ;;  %v1217_v50 = vmul.f32 %v4758_v11, %v3850_v23 }
 0x19b   : > { %v4795_v37 = vmul.f32 0.6931472, %v3553_v27  ;;  %v1648_v62 = vadd.f32 %v1616_v38, %v1548_v17  ;;  %v1617_v29 = vmul.f32 %v3897_v21, %v4791_v9  ;;  %v1717_v40 = vmul.f32 %v4476_v32, %v4781_v39  ;;  %v4836_v17 = vld [vmem:[#allocation2 + $0x140] sm:$0xff] }
 0x19c   : > { %3282 = vmatprep.mubr.msk.f32.mxu1 %vm768_vm2, %v2188_v54  ;;  %v1827_v24 = vmul.f32 0.6931472, %v3555_v1  ;;  %v1448_v19 = vadd.f32 %v1416_v45, %v1348_v52  ;;  %v1149_v14 = vadd.f32 %v1117_v51, %v1049_v58  ;;  %v1317_v25 = vmul.f32 %v4765_v57, %v3830_v4  ;;  %v2111_v13 = vpop.permute.xlu1 %2110  ;;  %v4840_v54 = vld [vmem:[#allocation2 + $0x142] sm:$0xff] }
 0x19d   : > { %3283 = vmatmul.mubr.msk.f32.gmra.mrb[12].mxu1 %vm768_vm2, %v2189_v22  ;;  %3558 = vlog2.f32 %v1779_v3  ;;  %v1748_v16 = vadd.f32 %v1716_v6, %v1648_v62  ;;  %v918_v55 = vmul.f32 %v4719_v18, %v3797_v41  ;;  %v1018_v46 = vmul.f32 %v4731_v53, %v3800_v42  ;;  %v4819_v18 = vld [vmem:[#allocation2 + $0x139] sm:$0xff] }
 0x19e   : > { %v1549_v31 = vadd.f32 %v1517_v2, %v1448_v19  ;;  %v1249_v12 = vadd.f32 %v1217_v50, %v1149_v14  ;;  %v1417_v5 = vmul.f32 %v4754_v7, %v3842_v15  ;;  %v1118_v38 = vmul.f32 %v4721_v10, %v3821_v61  ;;  %v4838_v2 = vld [vmem:[#allocation2 + $0x141] sm:$0xff] }
 0x19f   : > { %v1780_v60 = vadd.f32 1.1920929e-07, %v1748_v16  ;;  %v1518_v6 = vmul.f32 %v3892_v20, %v4811_v47  ;;  %v1050_v44 = vadd.f32 %v1018_v46, %v918_v55  ;;  %v1218_v53 = vmul.f32 %v4779_v33, %v3850_v23 }
 0x1a0   : > { %v2109_v30 = vpop.permute.xlu0 %2108  ;;  %v2191_v35 = vmul.f32 %v2111_v13, %v4750_v49  ;;  %v1649_v0 = vadd.f32 %v1617_v29, %v1549_v31  ;;  %v1349_v45 = vadd.f32 %v1317_v25, %v1249_v12  ;;  %v1618_v8 = vmul.f32 %v3897_v21, %v4819_v18 }
 0x1a1   : > { %v2190_v10 = vmul.f32 %v2109_v30, %v4727_v28  ;;  %v1718_v27 = vmul.f32 %v4476_v32, %v4813_v56  ;;  %v1150_v26 = vadd.f32 %v1118_v38, %v1050_v44  ;;  %v1318_v34 = vmul.f32 %v4791_v9, %v3830_v4 }
 0x1a2   : > { %v3557_v51 = vpop.eup %3556  ;;  %v1749_v1 = vadd.f32 %v1717_v40, %v1649_v0  ;;  %v1449_v36 = vadd.f32 %v1417_v5, %v1349_v45  ;;  %v1418_v49 = vmul.f32 %v4781_v39, %v3842_v15  ;;  %v919_v22 = vmul.f32 %v4758_v11, %v3797_v41 }
 0x1a3   : > { %3285 = vmatprep.mubr.msk.f32.mxu1 %vm768_vm2, %v2190_v10  ;;  %v2115_v3 = vpop.permute.xlu1 %2114  ;;  %3560 = vlog2.f32 %v1780_v60  ;;  %v1250_v28 = vadd.f32 %v1218_v53, %v1150_v26  ;;  %v1019_v52 = vmul.f32 %v4765_v57, %v3800_v42  ;;  %v1119_v58 = vmul.f32 %v4754_v7, %v3821_v61  ;;  %v4873_v10 = vld [vmem:[#allocation2 + $0x151] sm:$0xff] }
 0x1a4   : > { %3286 = vmatmul.mubr.msk.f32.gmra.mrb[14].mxu1 %vm768_vm2, %v2191_v35  ;;  %v1781_v11 = vadd.f32 1.1920929e-07, %v1749_v1  ;;  %v1550_v50 = vadd.f32 %v1518_v6, %v1449_v36  ;;  %v1519_v62 = vmul.f32 %v3892_v20, %v4836_v17  ;;  %v1619_v29 = vmul.f32 %v3897_v21, %v4838_v2  ;;  %v4860_v6 = vld [vmem:[#allocation2 + $0x150] sm:$0xff] }
 0x1a5   : > { %v1829_v40 = vmul.f32 0.6931472, %v3557_v51  ;;  %v1350_v19 = vadd.f32 %v1318_v34, %v1250_v28  ;;  %v1051_v14 = vadd.f32 %v1019_v52, %v919_v22  ;;  %v1219_v25 = vmul.f32 %v4811_v47, %v3850_v23 }
 0x1a6   : > { %v2193_v57 = vmul.f32 %v2115_v3, %v1827_v24  ;;  %3562 = vlog2.f32 %v1781_v11  ;;  %v1650_v13 = vadd.f32 %v1618_v8, %v1550_v50  ;;  %v1719_v7 = vmul.f32 %v4476_v32, %v4840_v54  ;;  %v4862_v24 = vld [vmem:[#allocation2 + $0x152] sm:$0xff] }
 0x1a7   : > { %v3559_v16 = vpop.eup %3558  ;;  %v2113_v55 = vpop.permute.xlu0 %2112  ;;  %v1450_v46 = vadd.f32 %v1418_v49, %v1350_v19  ;;  %v1151_v31 = vadd.f32 %v1119_v58, %v1051_v14  ;;  %v1319_v12 = vmul.f32 %v4819_v18, %v3830_v4  ;;  %v920_v5 = vmul.f32 %v4779_v33, %v3797_v41  ;;  %v4890_v19 = vld [vmem:[#allocation2 + $0x159] sm:$0xff] }
 0x1a8   : > { %v2192_v38 = vmul.f32 %v2113_v55, %v4795_v37  ;;  %v1750_v60 = vadd.f32 %v1718_v27, %v1650_v13  ;;  %v1020_v44 = vmul.f32 %v4791_v9, %v3800_v42  ;;  %v1120_v53 = vmul.f32 %v4781_v39, %v3821_v61 }
 0x1a9   : > { %v1551_v30 = vadd.f32 %v1519_v62, %v1450_v46  ;;  %v1251_v35 = vadd.f32 %v1219_v25, %v1151_v31  ;;  %v1419_v0 = vmul.f32 %v4813_v56, %v3842_v15  ;;  %v1520_v33 = vmul.f32 %v3892_v20, %v4860_v6 }
 0x1aa   : > { %3288 = vmatprep.mubr.msk.f32.mxu1 %vm768_vm2, %v2192_v38  ;;  %v1831_v37 = vmul.f32 0.6931472, %v3559_v16  ;;  %v2119_v45 = vpop.permute.xlu1 %2118  ;;  %v1782_v8 = vadd.f32 1.1920929e-07, %v1750_v60  ;;  %v1052_v27 = vadd.f32 %v1020_v44, %v920_v5  ;;  %v1220_v9 = vmul.f32 %v4836_v17, %v3850_v23  ;;  %v1685_v44 = vld [vmem:[#allocation2 + $0x15a] sm:$0xff] }
 0x1ab   : > { %3289 = vmatmul.mubr.msk.f32.gmra.mrb[16].mxu1 %vm768_vm2, %v2193_v57  ;;  %v1651_v39 = vadd.f32 %v1619_v29, %v1551_v30  ;;  %v1351_v26 = vadd.f32 %v1319_v12, %v1251_v35  ;;  %v1620_v34 = vmul.f32 %v3897_v21, %v4873_v10  ;;  %v1720_v51 = vmul.f32 %v4476_v32, %v4862_v24  ;;  %v4888_v29 = vld [vmem:[#allocation2 + $0x158] sm:$0xff] }
 0x1ac   : > { %v2117_v1 = vpop.permute.xlu0 %2116  ;;  %v2195_v36 = vmul.f32 %v2119_v45, %v1831_v37  ;;  %3564 = vlog2.f32 %v1782_v8  ;;  %v1152_v49 = vadd.f32 %v1120_v53, %v1052_v27  ;;  %v1320_v22 = vmul.f32 %v4838_v2, %v3830_v4 }
 0x1ad   : > { %v3561_v3 = vpop.eup %3560  ;;  %v2194_v28 = vmul.f32 %v2117_v1, %v1829_v40  ;;  %v1751_v52 = vadd.f32 %v1719_v7, %v1651_v39  ;;  %v1451_v58 = vadd.f32 %v1419_v0, %v1351_v26  ;;  %v921_v11 = vmul.f32 %v4811_v47, %v3797_v41 }
 0x1ae   : > { %v1252_v50 = vadd.f32 %v1220_v9, %v1152_v49  ;;  %v1420_v62 = vmul.f32 %v4840_v54, %v3842_v15  ;;  %v1021_v14 = vmul.f32 %v4819_v18, %v3800_v42  ;;  %v1121_v25 = vmul.f32 %v4813_v56, %v3821_v61  ;;  %v4912_v9 = vld [vmem:[#allocation2 + $0x168] sm:$0xff] }
 0x1af   : > { %3291 = vmatprep.mubr.msk.f32.mxu1 %vm768_vm2, %v2194_v28  ;;  %v1783_v40 = vadd.f32 1.1920929e-07, %v1751_v52  ;;  %v1552_v57 = vadd.f32 %v1520_v33, %v1451_v58  ;;  %v1521_v47 = vmul.f32 %v3892_v20, %v4888_v29  ;;  %v1621_v13 = vmul.f32 %v3897_v21, %v4890_v19  ;;  %v2123_v55 = vpop.permute.xlu1 %2122  ;;  %v4923_v49 = vld [vmem:[#allocation2 + $0x169] sm:$0xff] }
 0x1b0   : > { %v3563_v7 = vpop.eup %3562  ;;  %v1833_v16 = vmul.f32 0.6931472, %v3561_v3  ;;  %3292 = vmatmul.mubr.msk.f32.gmra.mrb[18].mxu1 %vm768_vm2, %v2195_v36  ;;  %v1352_v46 = vadd.f32 %v1320_v22, %v1252_v50  ;;  %v1053_v18 = vadd.f32 %v1021_v14, %v921_v11  ;;  %v1221_v56 = vmul.f32 %v4860_v6, %v3850_v23  ;;  %v1686_v14 = vld [vmem:[#allocation2 + $0x16a] sm:$0xff] }
 0x1b1   : > { %v1835_v31 = vmul.f32 0.6931472, %v3563_v7  ;;  %3566 = vlog2.f32 %v1783_v40  ;;  %v1652_v12 = vadd.f32 %v1620_v34, %v1552_v57  ;;  %v1321_v5 = vmul.f32 %v4873_v10, %v3830_v4  ;;  %v4931_v40 = vld [vmem:[#allocation2 + $0x170] sm:$0xff] }
 0x1b2   : > { %v2121_v38 = vpop.permute.xlu0 %2120  ;;  %v1452_v60 = vadd.f32 %v1420_v62, %v1352_v46  ;;  %v1153_v53 = vadd.f32 %v1121_v25, %v1053_v18  ;;  %v922_v30 = vmul.f32 %v4836_v17, %v3797_v41  ;;  %v1022_v35 = vmul.f32 %v4838_v2, %v3800_v42 }
 0x1b3   : > { %v2196_v0 = vmul.f32 %v2121_v38, %v1833_v16  ;;  %v2197_v33 = vmul.f32 %v2123_v55, %v1835_v31  ;;  %v1752_v37 = vadd.f32 %v1720_v51, %v1652_v12  ;;  %v1122_v45 = vmul.f32 %v4840_v54, %v3821_v61 }
 0x1b4   : > { %v1553_v8 = vadd.f32 %v1521_v47, %v1452_v60  ;;  %v1253_v27 = vadd.f32 %v1221_v56, %v1153_v53  ;;  %v1054_v39 = vadd.f32 %v1022_v35, %v922_v30  ;;  %v1222_v26 = vmul.f32 %v4888_v29, %v3850_v23  ;;  %v4946_v53 = vld [vmem:[#allocation2 + $0x172] sm:$0xff] }
 0x1b5   : > { %3294 = vmatprep.mubr.msk.f32.mxu1 %vm768_vm2, %v2196_v0  ;;  %v1784_v17 = vadd.f32 1.1920929e-07, %v1752_v37  ;;  %v1721_v34 = vmul.f32 %v4476_v32, %v1685_v44  ;;  %v1421_v2 = vmul.f32 %v4862_v24, %v3842_v15  ;;  %v1522_v51 = vmul.f32 %v3892_v20, %v4912_v9  ;;  %v2127_v31 = vpop.permute.xlu1 %2126  ;;  %v1587_v30 = vld [vmem:[#allocation2 + $0x171] sm:$0xff] }
 0x1b6   : > { %v3565_v54 = vpop.eup %3564  ;;  %3295 = vmatmul.mubr.msk.f32.gmra.mrb[20].mxu1 %vm768_vm2, %v2197_v33  ;;  %v1653_v1 = vadd.f32 %v1621_v13, %v1553_v8  ;;  %v1353_v36 = vadd.f32 %v1321_v5, %v1253_v27  ;;  %v1154_v22 = vadd.f32 %v1122_v45, %v1054_v39  ;;  %v1322_v3 = vmul.f32 %v4890_v19, %v3830_v4  ;;  %v4957_v39 = vld [vmem:[%s5356_s3 + $0x8] ss:$0 sm:$0xff] }
 0x1b7   : > { %v1837_v28 = vmul.f32 0.6931472, %v3565_v54  ;;  %3568 = vlog2.f32 %v1784_v17  ;;  %v1622_v52 = vmul.f32 %v3897_v21, %v4923_v49  ;;  %v923_v58 = vmul.f32 %v4860_v6, %v3797_v41 }
 0x1b8   : > { %v2125_v11 = vpop.permute.xlu0 %2124  ;;  %v1753_v50 = vadd.f32 %v1721_v34, %v1653_v1  ;;  %v1453_v62 = vadd.f32 %v1421_v2, %v1353_v36  ;;  %v1254_v25 = vadd.f32 %v1222_v26, %v1154_v22  ;;  %v1023_v57 = vmul.f32 %v4873_v10, %v3800_v42  ;;  %v1588_v1 = vld [vmem:[#allocation2 + $0x181] sm:$0xff] }
 0x1b9   : > { %v2198_v47 = vmul.f32 %v2125_v11, %v1837_v28  ;;  %v1422_v13 = vmul.f32 %v1685_v44, %v3842_v15  ;;  %v1523_v7 = vmul.f32 %v3892_v20, %v4931_v40  ;;  %v1123_v16 = vmul.f32 %v4862_v24, %v3821_v61 }
 0x1ba   : > { %v1785_v6 = vadd.f32 1.1920929e-07, %v1753_v50  ;;  %v1554_v55 = vadd.f32 %v1522_v51, %v1453_v62  ;;  %v1354_v46 = vadd.f32 %v1322_v3, %v1254_v25  ;;  %v1055_v18 = vadd.f32 %v1023_v57, %v923_v58 }
 0x1bb   : > { %v3567_v56 = vpop.eup %3566  ;;  %3297 = vmatprep.mubr.msk.f32.mxu1 %vm768_vm2, %v2198_v47  ;;  %v1722_v12 = vmul.f32 %v4476_v32, %v1686_v14  ;;  %v1223_v10 = vmul.f32 %v4912_v9, %v3850_v23  ;;  %v1323_v5 = vmul.f32 %v4923_v49, %v3830_v4  ;;  %v924_v0 = vmul.f32 %v4888_v29, %v3797_v41  ;;  %v1488_v29 = vld [vmem:[#allocation2 + $0x180] sm:$0xff] }
 0x1bc   : > { %v1839_v38 = vmul.f32 0.6931472, %v3567_v56  ;;  %3570 = vlog2.f32 %v1785_v6  ;;  %v1654_v60 = vadd.f32 %v1622_v52, %v1554_v55  ;;  %v1454_v24 = vadd.f32 %v1422_v13, %v1354_v46  ;;  %v1688_v47 = vld [vmem:[#allocation2 + $0x182] sm:$0xff] }
 0x1bd   : > { %v1155_v35 = vadd.f32 %v1123_v16, %v1055_v18  ;;  %v1024_v32 = vmul.f32 %v4890_v19, %v3800_v42  ;;  %v1124_v33 = vmul.f32 %v1685_v44, %v3821_v61  ;;  %v1623_v27 = vmul.f32 %v3897_v21, %v1587_v30  ;;  %v1489_v55 = vld [vmem:[#allocation2 + $0x188] sm:$0xff] }
 0x1be   : > { %v2199_v37 = vmul.f32 %v2127_v31, %v1839_v38  ;;  %v1754_v45 = vadd.f32 %v1722_v12, %v1654_v60  ;;  %v1555_v8 = vadd.f32 %v1523_v7, %v1454_v24  ;;  %v1723_v26 = vmul.f32 %v4957_v39, %v4946_v53  ;;  %v2129_v22 = vpop.permute.xlu0 %2128  ;;  %v1589_v12 = vld [vmem:[#allocation2 + $0x189] sm:$0xff] }
 0x1bf   : > { %v1255_v17 = vadd.f32 %v1223_v10, %v1155_v35  ;;  %v1056_v34 = vadd.f32 %v1024_v32, %v924_v0  ;;  %v1224_v19 = vmul.f32 %v4931_v40, %v3850_v23  ;;  %v1423_v51 = vmul.f32 %v1686_v14, %v3842_v15  ;;  %v1490_v32 = vld [vmem:[#allocation2 + $0x198] sm:$0xff] }
 0x1c0   : > { %3298 = vmatmul.mubr.msk.f32.gmra.mrb[22].mxu1 %vm768_vm2, %v2199_v37  ;;  %v1786_v44 = vadd.f32 1.1920929e-07, %v1754_v45  ;;  %v1655_v2 = vadd.f32 %v1623_v27, %v1555_v8  ;;  %v1524_v54 = vmul.f32 %v3892_v20, %v1488_v29  ;;  %v1324_v52 = vmul.f32 %v1587_v30, %v3830_v4  ;;  %v1689_v45 = vld [vmem:[#allocation2 + $0x18a] sm:$0xff] }
 0x1c1   : > { %v3569_v36 = vpop.eup %3568  ;;  %v1355_v3 = vadd.f32 %v1323_v5, %v1255_v17  ;;  %v1156_v28 = vadd.f32 %v1124_v33, %v1056_v34  ;;  %v925_v58 = vmul.f32 %v4912_v9, %v3797_v41  ;;  %v1025_v62 = vmul.f32 %v4923_v49, %v3800_v42  ;;  %v2131_v5 = vpop.permute.xlu1 %2130 }
 0x1c2   : > { %v1841_v11 = vmul.f32 0.6931472, %v3569_v36  ;;  %3572 = vlog2.f32 %v1786_v44  ;;  %v1755_v50 = vadd.f32 %v1723_v26, %v1655_v2  ;;  %v1624_v57 = vmul.f32 %v3897_v21, %v1588_v1  ;;  %v1590_v44 = vld [vmem:[#allocation2 + $0x199] sm:$0xff] }
 0x1c3   : > { %v1455_v25 = vadd.f32 %v1423_v51, %v1355_v3  ;;  %v1256_v13 = vadd.f32 %v1224_v19, %v1156_v28  ;;  %v1125_v7 = vmul.f32 %v1686_v14, %v3821_v61  ;;  %v1057_v46 = vadd.f32 %v1025_v62, %v925_v58 }
 0x1c4   : > { %v2200_v16 = vmul.f32 %v2129_v22, %v1841_v11  ;;  %v1787_v6 = vadd.f32 1.1920929e-07, %v1755_v50  ;;  %v1225_v18 = vmul.f32 %v1488_v29, %v3850_v23  ;;  %v1424_v31 = vmul.f32 %v4946_v53, %v3842_v15  ;;  %v1491_v11 = vld [vmem:[#allocation2 + $0x1a0] sm:$0xff] }
 0x1c5   : > { %v1556_v9 = vadd.f32 %v1524_v54, %v1455_v25  ;;  %v1356_v56 = vadd.f32 %v1324_v52, %v1256_v13  ;;  %v1525_v49 = vmul.f32 %v3892_v20, %v1489_v55  ;;  %v1724_v14 = vmul.f32 %v4957_v39, %v1688_v47 }
 0x1c6   : > { %v3571_v10 = vpop.eup %3570  ;;  %3300 = vmatprep.mubr.msk.f32.mxu1 %vm768_vm2, %v2200_v16  ;;  %3574 = vlog2.f32 %v1787_v6  ;;  %v1157_v38 = vadd.f32 %v1125_v7, %v1057_v46  ;;  %v1325_v60 = vmul.f32 %v1588_v1, %v3830_v4  ;;  %v926_v33 = vmul.f32 %v4931_v40, %v3797_v41  ;;  %v2135_v7 = vpop.permute.xlu1 %2134 }
 0x1c7   : > { %v1843_v24 = vmul.f32 0.6931472, %v3571_v10  ;;  %v1656_v35 = vadd.f32 %v1624_v57, %v1556_v9  ;;  %v1456_v0 = vadd.f32 %v1424_v31, %v1356_v56  ;;  %v1625_v37 = vmul.f32 %v3897_v21, %v1589_v12 }
 0x1c8   : > { %v1257_v8 = vadd.f32 %v1225_v18, %v1157_v38  ;;  %v1026_v27 = vmul.f32 %v1587_v30, %v3800_v42  ;;  %v1126_v26 = vmul.f32 %v4946_v53, %v3821_v61  ;;  %v1425_v19 = vmul.f32 %v1688_v47, %v3842_v15  ;;  %v1690_v30 = vld [vmem:[#allocation2 + $0x19a] sm:$0xff]  ;;  %v2133_v53 = vpop.permute.xlu0 %2132  ;;  %v1691_v18 = vld [vmem:[#allocation2 + $0x1a2] sm:$0xff] }
 0x1c9   : > { %v2201_v17 = vmul.f32 %v2131_v5, %v1843_v24  ;;  %v1756_v29 = vadd.f32 %v1724_v14, %v1656_v35  ;;  %v1557_v34 = vadd.f32 %v1525_v49, %v1456_v0  ;;  %v1526_v51 = vmul.f32 %v3892_v20, %v1490_v32  ;;  %v1591_v47 = vld [vmem:[#allocation2 + $0x1a1] sm:$0xff] }
 0x1ca   : > { %v1357_v2 = vadd.f32 %v1325_v60, %v1257_v8  ;;  %v1058_v54 = vadd.f32 %v1026_v27, %v926_v33  ;;  %v1226_v41 = vmul.f32 %v1489_v55, %v3850_v23  ;;  %v1725_v42 = vmul.f32 %v4957_v39, %v1689_v45  ;;  %v2139_v32 = vpop.permute.xlu1 %2138 }
 0x1cb   : > { %3301 = vmatmul.mubr.msk.f32.gmra.mrb[24].mxu1 %vm768_vm2, %v2201_v17  ;;  %v1788_v40 = vadd.f32 1.1920929e-07, %v1756_v29  ;;  %v1657_v1 = vadd.f32 %v1625_v37, %v1557_v34  ;;  %v1626_v22 = vmul.f32 %v3897_v21, %v1590_v44  ;;  %v1326_v28 = vmul.f32 %v1589_v12, %v3830_v4  ;;  %v5007_v34 = vld [vmem:[%s5358_s5] ss:$0 sm:$0xff] }
 0x1cc   : > { %v3573_v61 = vpop.eup %3572  ;;  %v1457_v36 = vadd.f32 %v1425_v19, %v1357_v2  ;;  %v1158_v3 = vadd.f32 %v1126_v26, %v1058_v54  ;;  %v1726_v50 = vmul.f32 %v4957_v39, %v1690_v30  ;;  %v1426_v55 = vmul.f32 %v1689_v45, %v3842_v15 }
 0x1cd   : > { %v1845_v52 = vmul.f32 0.6931472, %v3573_v61  ;;  %3576 = vlog2.f32 %v1788_v40  ;;  %v1757_v58 = vadd.f32 %v1725_v42, %v1657_v1  ;;  %v1527_v46 = vmul.f32 %v3892_v20, %v1491_v11  ;;  %v2137_v20 = vpop.permute.xlu0 %2136 }
 0x1ce   : > { %v1558_v23 = vadd.f32 %v1526_v51, %v1457_v36  ;;  %v1258_v62 = vadd.f32 %v1226_v41, %v1158_v3  ;;  %v1627_v31 = vmul.f32 %v3897_v21, %v1591_v47  ;;  %v1727_v5 = vmul.f32 %v4957_v39, %v1691_v18  ;;  %v2143_v26 = vpop.permute.xlu1 %2142 }
 0x1cf   : > { %v2202_v25 = vmul.f32 %v2133_v53, %v1845_v52  ;;  %v1789_v57 = vadd.f32 1.1920929e-07, %v1757_v58 }
 0x1d0   : > { %v3575_v13 = vpop.eup %3574  ;;  %v1658_v16 = vadd.f32 %v1626_v22, %v1558_v23  ;;  %v1358_v6 = vadd.f32 %v1326_v28, %v1258_v62 }
 0x1d1   : > { %v1847_v4 = vmul.f32 0.6931472, %v3575_v13  ;;  %3303 = vmatprep.mubr.msk.f32.mxu1 %vm768_vm2, %v2202_v25  ;;  %3578 = vlog2.f32 %v1789_v57  ;;  %v2141_v45 = vpop.permute.xlu0 %2140 }
 0x1d2   : > { %v1758_v9 = vadd.f32 %v1726_v50, %v1658_v16  ;;  %v1458_v56 = vadd.f32 %v1426_v55, %v1358_v6 }
 0x1d3   : > { %v2203_v49 = vmul.f32 %v2135_v7, %v1847_v4 }
 0x1d4   : > { %v1790_v12 = vadd.f32 1.1920929e-07, %v1758_v9  ;;  %v1559_v10 = vadd.f32 %v1527_v46, %v1458_v56 }
 0x1d5   : > { %3304 = vmatmul.mubr.msk.f32.gmra.mrb[26].mxu1 %vm768_vm2, %v2203_v49 }
 0x1d6   : > { %3580 = vlog2.f32 %v1790_v12  ;;  %v1659_v15 = vadd.f32 %v1627_v31, %v1559_v10 }
 0x1d7   : > { %v3577_v14 = vpop.eup %3576 }
 0x1d8   : > { %v1849_v38 = vmul.f32 0.6931472, %v3577_v14  ;;  %v1759_v60 = vadd.f32 %v1727_v5, %v1659_v15 }
 0x1da   : > { %v2204_v24 = vmul.f32 %v2137_v20, %v1849_v38  ;;  %v1791_v35 = vadd.f32 1.1920929e-07, %v1759_v60 }
 0x1db   : > { %v3579_v0 = vpop.eup %3578 }
 0x1dc   : > { %v1851_v33 = vmul.f32 0.6931472, %v3579_v0  ;;  %3306 = vmatprep.mubr.msk.f32.mxu1 %vm768_vm2, %v2204_v24  ;;  %3582 = vlog2.f32 %v1791_v35 }
 0x1de   : > { %v2205_v21 = vmul.f32 %v2139_v32, %v1851_v33 }
 0x1e0   : > { %v3581_v37 = vpop.eup %3580  ;;  %3307 = vmatmul.mubr.msk.f32.gmra.mrb[28].mxu1 %vm768_vm2, %v2205_v21 }
 0x1e1   : > { %v1853_v39 = vmul.f32 0.6931472, %v3581_v37 }
 0x1e3   : > { %v2206_v8 = vmul.f32 %v2141_v45, %v1853_v39 }
 0x1e5   : > { %3309 = vmatprep.mubr.msk.f32.mxu1 %vm768_vm2, %v2206_v8 }
 0x1e6   : > { %v3583_v27 = vpop.eup %3582 }
 0x1e7   : > { %v1855_v17 = vmul.f32 0.6931472, %v3583_v27 }
 0x1e9   : > { %v2207_v29 = vmul.f32 %v2143_v26, %v1855_v17 }
 0x1eb   : > { %3310 = vmatmul.mubr.msk.f32.gmra.mrb[30].mxu1 %vm768_vm2, %v2207_v29 }
 0x251   : > { %v3266_v19 = vpop.f32.mrb[0].mxu1 }
 0x252   : > { %v2385_v44 = vadd.f32 %v3266_v19, %v5007_v34  ;;  %v2379_v2 = vpop.f32.mrb[1].mxu1 }
 0x253   : > { %v2380_v51 = vadd.f32 %v5007_v34, %v2379_v2 }
 0x254   : > { %2572 = vrot.lane.b32.xlu1 %v2385_v44, %s3596_s11 }
 0x255   : > { %2570 = vrot.lane.b32.xlu0 %v2380_v51, %s3596_s11  ;;  %v3269_v54 = vpop.f32.mrb[2].mxu1 }
 0x256   : > { %v2395_v41 = vadd.f32 %v3269_v54, %v5007_v34  ;;  %v2389_v40 = vpop.f32.mrb[3].mxu1 }
 0x257   : > { %v2390_v1 = vadd.f32 %v5007_v34, %v2389_v40  ;;  %v3137_v40 = vld [vmem:[%s5359_s6] ss:$0 sm:$0xff] }
 0x258   : > { %2576 = vrot.lane.b32.xlu1 %v2395_v41, %s3596_s11  ;;  %v3138_v41 = vld [vmem:[%s5360_s7] ss:$0 sm:$0xff] }
 0x259   : > { %v3272_v42 = vpop.f32.mrb[4].mxu1  ;;  %2574 = vrot.lane.b32.xlu0 %v2390_v1, %s3596_s11 }
 0x25a   : > { %v2405_v30 = vadd.f32 %v3272_v42, %v5007_v34  ;;  %v2399_v61 = vpop.f32.mrb[5].mxu1 }
 0x25b   : > { %v2400_v53 = vadd.f32 %v5007_v34, %v2399_v61 }
 0x25c   : > { %2580 = vrot.lane.b32.xlu1 %v2405_v30, %s3596_s11 }
 0x25d   : > { %2578 = vrot.lane.b32.xlu0 %v2400_v53, %s3596_s11 }
 0x260   : > { %v3275_v36 = vpop.f32.mrb[6].mxu1 }
 0x261   : > { %v2415_v22 = vadd.f32 %v3275_v36, %v5007_v34  ;;  %v2409_v3 = vpop.f32.mrb[7].mxu1 }
 0x262   : > { %v2410_v28 = vadd.f32 %v5007_v34, %v2409_v3 }
 0x263   : > { %2584 = vrot.lane.b32.xlu1 %v2415_v22, %s3596_s11 }
 0x264   : > { %2582 = vrot.lane.b32.xlu0 %v2410_v28, %s3596_s11 }
 0x267   : > { %v3278_v52 = vpop.f32.mrb[8].mxu1 }
 0x268   : > { %v2425_v58 = vadd.f32 %v3278_v52, %v5007_v34  ;;  %v2419_v11 = vpop.f32.mrb[9].mxu1 }
 0x269   : > { %v2420_v23 = vadd.f32 %v5007_v34, %v2419_v11 }
 0x26a   : > { %2588 = vrot.lane.b32.xlu1 %v2425_v58, %s3596_s11 }
 0x26b   : > { %v3281_v50 = vpop.f32.mrb[10].mxu1  ;;  %2586 = vrot.lane.b32.xlu0 %v2420_v23, %s3596_s11 }
 0x26c   : > { %v2435_v62 = vadd.f32 %v3281_v50, %v5007_v34  ;;  %v2429_v25 = vpop.f32.mrb[11].mxu1 }
 0x26d   : > { %v2430_v57 = vadd.f32 %v5007_v34, %v2429_v25 }
 0x26e   : > { %2592 = vrot.lane.b32.xlu1 %v2435_v62, %s3596_s11 }
 0x26f   : > { %2590 = vrot.lane.b32.xlu0 %v2430_v57, %s3596_s11 }
 0x270   : > { %v3284_v47 = vpop.f32.mrb[12].mxu1 }
 0x271   : > { %v2445_v13 = vadd.f32 %v3284_v47, %v5007_v34  ;;  %v2439_v7 = vpop.f32.mrb[13].mxu1 }
 0x272   : > { %v2440_v16 = vadd.f32 %v5007_v34, %v2439_v7 }
 0x273   : > { %2596 = vrot.lane.b32.xlu1 %v2445_v13, %s3596_s11 }
 0x274   : > { %2594 = vrot.lane.b32.xlu0 %v2440_v16, %s3596_s11 }
 0x277   : > { %v3287_v6 = vpop.f32.mrb[14].mxu1 }
 0x278   : > { %v2455_v55 = vadd.f32 %v3287_v6, %v5007_v34  ;;  %v2449_v46 = vpop.f32.mrb[15].mxu1 }
 0x279   : > { %v2450_v4 = vadd.f32 %v5007_v34, %v2449_v46 }
 0x27a   : > { %2600 = vrot.lane.b32.xlu1 %v2455_v55, %s3596_s11 }
 0x27b   : > { %2598 = vrot.lane.b32.xlu0 %v2450_v4, %s3596_s11 }
 0x27e   : > { %v3290_v18 = vpop.f32.mrb[16].mxu1 }
 0x27f   : > { %v2465_v9 = vadd.f32 %v3290_v18, %v5007_v34  ;;  %v2459_v56 = vpop.f32.mrb[17].mxu1 }
 0x280   : > { %v2460_v31 = vadd.f32 %v5007_v34, %v2459_v56 }
 0x281   : > { %2604 = vrot.lane.b32.xlu1 %v2465_v9, %s3596_s11 }
 0x282   : > { %2602 = vrot.lane.b32.xlu0 %v2460_v31, %s3596_s11 }
 0x283   : > { %v3293_v49 = vpop.f32.mrb[18].mxu1 }
 0x284   : > { %v2475_v12 = vadd.f32 %v3293_v49, %v5007_v34  ;;  %v2469_v10 = vpop.f32.mrb[19].mxu1 }
 0x285   : > { %v2470_v5 = vadd.f32 %v5007_v34, %v2469_v10 }
 0x286   : > { %2608 = vrot.lane.b32.xlu1 %v2475_v12, %s3596_s11 }
 0x287   : > { %2606 = vrot.lane.b32.xlu0 %v2470_v5, %s3596_s11 }
 0x289   : > { %v3296_v15 = vpop.f32.mrb[20].mxu1 }
 0x28a   : > { %v2485_v14 = vadd.f32 %v3296_v15, %v5007_v34  ;;  %v2479_v20 = vpop.f32.mrb[21].mxu1 }
 0x28b   : > { %v2480_v38 = vadd.f32 %v5007_v34, %v2479_v20 }
 0x28c   : > { %2612 = vrot.lane.b32.xlu1 %v2485_v14, %s3596_s11 }
 0x28d   : > { %2610 = vrot.lane.b32.xlu0 %v2480_v38, %s3596_s11 }
 0x293   : > { %v3299_v60 = vpop.f32.mrb[22].mxu1 }
 0x294   : > { %v2495_v24 = vadd.f32 %v3299_v60, %v5007_v34  ;;  %v2489_v35 = vpop.f32.mrb[23].mxu1 }
 0x295   : > { %v2490_v0 = vadd.f32 %v5007_v34, %v2489_v35 }
 0x296   : > { %2616 = vrot.lane.b32.xlu1 %v2495_v24, %s3596_s11 }
 0x297   : > { %2614 = vrot.lane.b32.xlu0 %v2490_v0, %s3596_s11 }
 0x29e   : > { %v3302_v32 = vpop.f32.mrb[24].mxu1 }
 0x29f   : > { %v2505_v33 = vadd.f32 %v3302_v32, %v5007_v34  ;;  %v2499_v21 = vpop.f32.mrb[25].mxu1  ;;  %v5418_v32 = vld [vmem:[#allocation3_spill] sm:$0xff] }
 0x2a0   : > { %v2500_v37 = vadd.f32 %v5007_v34, %v2499_v21 }
 0x2a1   : > { %2620 = vrot.lane.b32.xlu1 %v2505_v33, %s3596_s11  ;;  %v5419_v33 = vld [vmem:[#allocation4_spill] sm:$0xff] }
 0x2a2   : > { %2618 = vrot.lane.b32.xlu0 %v2500_v37, %s3596_s11 }
 0x2a8   : > { %v3305_v45 = vpop.f32.mrb[26].mxu1 }
 0x2a9   : > { %v2515_v39 = vadd.f32 %v3305_v45, %v5007_v34  ;;  %v2509_v8 = vpop.f32.mrb[27].mxu1 }
 0x2aa   : > { %v2510_v27 = vadd.f32 %v5007_v34, %v2509_v8 }
 0x2ab   : > { %2624 = vrot.lane.b32.xlu1 %v2515_v39, %s3596_s11 }
 0x2ac   : > { %2622 = vrot.lane.b32.xlu0 %v2510_v27, %s3596_s11 }
 0x2b3   : > { %v3308_v26 = vpop.f32.mrb[28].mxu1 }
 0x2b4   : > { %v2525_v17 = vadd.f32 %v3308_v26, %v5007_v34  ;;  %v2519_v29 = vpop.f32.mrb[29].mxu1  ;;  %v5420_v26 = vld [vmem:[#allocation5_spill] sm:$0xff] }
 0x2b5   : > { %v2520_v19 = vadd.f32 %v5007_v34, %v2519_v29  ;;  %v5421_v29 = vld [vmem:[#allocation6_spill] sm:$0xff] }
 0x2b6   : > { %2628 = vrot.lane.b32.xlu1 %v2525_v17, %s3596_s11 }
 0x2b7   : > { %2626 = vrot.lane.b32.xlu0 %v2520_v19, %s3596_s11 }
 0x2be   : > { %v3311_v44 = vpop.f32.mrb[30].mxu1 }
 0x2bf   : > { %v2535_v2 = vadd.f32 %v3311_v44, %v5007_v34  ;;  %v2529_v51 = vpop.f32.mrb[31].mxu1 }
 0x2c0   : > { %v2530_v54 = vadd.f32 %v5007_v34, %v2529_v51 }
 0x2c1   : > { %2632 = vrot.lane.b32.xlu1 %v2535_v2, %s3596_s11 }
 0x2c2   : > { %2630 = vrot.lane.b32.xlu0 %v2530_v54, %s3596_s11 }
 0x2c5   : > { %2745 = vrot.lane.b32.xlu1 %v3138_v41, %s3596_s11 }
 0x2c6   : > { %2704 = vrot.lane.b32.xlu0 %v3137_v40, %s3596_s11  ;;  %v2573_v1 = vpop.permute.xlu1 %2572 }
 0x2c7   : > { %v2571_v42 = vpop.permute.xlu0 %2570  ;;  %v2667_v10 = vadd.f32 %v2573_v1, %v3803_v43  ;;  %v5422_v1 = vld [vmem:[#allocation7_spill] sm:$0xff] }
 0x2c8   : > { %v2666_v5 = vadd.f32 %v2571_v42, %v3807_v48 }
 0x2ca   : > { %v2577_v30 = vpop.permute.xlu1 %2576 }
 0x2cb   : > { %v2575_v34 = vpop.permute.xlu0 %2574  ;;  %v2669_v15 = vadd.f32 %v2577_v30, %v3818_v59  ;;  %v5423_v30 = vld [vmem:[#allocation8_spill] sm:$0xff] }
 0x2cc   : > { %v2668_v14 = vadd.f32 %v2575_v34, %v3824_v63 }
 0x2ce   : > { %v2581_v61 = vpop.permute.xlu1 %2580 }
 0x2cf   : > { %v2579_v53 = vpop.permute.xlu0 %2578  ;;  %v2671_v43 = vadd.f32 %v2581_v61, %v5418_v32 }
 0x2d0   : > { %v2670_v48 = vadd.f32 %v2579_v53, %v5419_v33  ;;  %v5426_v33 = vld [vmem:[#allocation11_spill] sm:$0xff] }
 0x2d5   : > { %v2585_v36 = vpop.permute.xlu1 %2584 }
 0x2d6   : > { %v2583_v22 = vpop.permute.xlu0 %2582  ;;  %v2673_v17 = vadd.f32 %v2585_v36, %v5420_v26 }
 0x2d7   : > { %v2672_v19 = vadd.f32 %v2583_v22, %v5421_v29 }
 0x2dc   : > { %v2589_v3 = vpop.permute.xlu1 %2588 }
 0x2dd   : > { %v2587_v28 = vpop.permute.xlu0 %2586  ;;  %v2675_v42 = vadd.f32 %v2589_v3, %v5422_v1  ;;  %v5425_v3 = vld [vmem:[#allocation10_spill] sm:$0xff] }
 0x2de   : > { %v2674_v34 = vadd.f32 %v2587_v28, %v5423_v30 }
 0x2e0   : > { %v5081_v52 = vpop.permute.xlu1 %2592 }
 0x2e1   : > { %v5083_v58 = vpop.permute.xlu0 %2590 }
 0x2e2   : > { %v2676_v28 = vadd.f32 %v5083_v58, %v5425_v3  ;;  %v5434_v3 = vld [vmem:[#allocation19_spill] sm:$0xff] }
 0x2e5   : > { %v5085_v11 = vpop.permute.xlu1 %2596 }
 0x2e6   : > { %v5087_v23 = vpop.permute.xlu0 %2594 }
 0x2ec   : > { %v5089_v50 = vpop.permute.xlu1 %2600 }
 0x2ed   : > { %v5091_v62 = vpop.permute.xlu0 %2598 }
 0x2f3   : > { %v5093_v25 = vpop.permute.xlu1 %2604 }
 0x2f4   : > { %v5095_v57 = vpop.permute.xlu0 %2602 }
 0x2f8   : > { %v5097_v47 = vpop.permute.xlu1 %2608 }
 0x2f9   : > { %v5099_v13 = vpop.permute.xlu0 %2606 }
 0x2fe   : > { %v5101_v7 = vpop.permute.xlu1 %2612 }
 0x2ff   : > { %v5103_v16 = vpop.permute.xlu0 %2610 }
 0x308   : > { %v5105_v6 = vpop.permute.xlu1 %2616 }
 0x309   : > { %v5107_v55 = vpop.permute.xlu0 %2614 }
 0x313   : > { %v5109_v46 = vpop.permute.xlu1 %2620 }
 0x314   : > { %v5111_v4 = vpop.permute.xlu0 %2618 }
 0x31d   : > { %v5113_v18 = vpop.permute.xlu1 %2624 }
 0x31e   : > { %v5115_v9 = vpop.permute.xlu0 %2622 }
 0x328   : > { %v5117_v56 = vpop.permute.xlu1 %2628 }
 0x329   : > { %v5119_v31 = vpop.permute.xlu0 %2626 }
 0x333   : > { %v5121_v49 = vpop.permute.xlu1 %2632 }
 0x334   : > { %v5123_v12 = vpop.permute.xlu0 %2630 }
 0x337   : > { %v5131_v38 = vpop.permute.xlu1 %2745 }
 0x338   : > { %v5129_v20 = vpop.permute.xlu0 %2704 }
 0x339   : > { %v2708_v60 = vmul.f32 %v5129_v20, %v2667_v10  ;;  %v2707_v24 = vmul.f32 %v5129_v20, %v2666_v5  ;;  %v2710_v35 = vmul.f32 %v5129_v20, %v2669_v15  ;;  %v2709_v0 = vmul.f32 %v5129_v20, %v2668_v14  ;;  %v5424_v15 = vld [vmem:[#allocation9_spill] sm:$0xff] }
 0x33a   : > { %v2712_v21 = vmul.f32 %v5129_v20, %v2671_v43  ;;  %v2711_v37 = vmul.f32 %v5129_v20, %v2670_v48  ;;  %v2714_v44 = vmul.f32 %v5129_v20, %v2673_v17  ;;  %v2713_v2 = vmul.f32 %v5129_v20, %v2672_v19  ;;  %v5427_v48 = vld [vmem:[#allocation12_spill] sm:$0xff] }
 0x33b   : > { %v2749_v59 = vadd.f32 %v5131_v38, %v2708_v60  ;;  %v2748_v63 = vadd.f32 %v5131_v38, %v2707_v24  ;;  %v2751_v8 = vadd.f32 %v5131_v38, %v2710_v35  ;;  %v2750_v27 = vadd.f32 %v5131_v38, %v2709_v0 }
 0x33c   : > { %v2753_v41 = vadd.f32 %v5131_v38, %v2712_v21  ;;  %v2752_v40 = vadd.f32 %v5131_v38, %v2711_v37  ;;  %v2755_v61 = vadd.f32 %v5131_v38, %v2714_v44  ;;  %v2754_v53 = vadd.f32 %v5131_v38, %v2713_v2 }
 0x33d   : > { %v2781_v45 = vmax.f32 %v2749_v59, 0.0  ;;  %v2780_v39 = vmax.f32 %v2748_v63, 0.0  ;;  %v2783_v51 = vmax.f32 %v2751_v8, 0.0  ;;  %v2782_v54 = vmax.f32 %v2750_v27, 0.0  ;;  %v5428_v8 = vld [vmem:[#allocation13_spill] sm:$0xff]  ;;  %v5429_v27 = vld [vmem:[#allocation14_spill] sm:$0xff] }
 0x33e   : > { %v2785_v36 = vmax.f32 %v2753_v41, 0.0  ;;  %v2784_v22 = vmax.f32 %v2752_v40, 0.0  ;;  %v2716_v10 = vmul.f32 %v5129_v20, %v2675_v42  ;;  %v2715_v5 = vmul.f32 %v5129_v20, %v2674_v34 }
 0x33f   : > { %2846 = vrot.lane.b32.xlu1 %v2781_v45, %s3597_s16  ;;  %2844 = vrot.lane.b32.xlu0 %v2780_v39, %s3597_s16  ;;  %v2677_v14 = vadd.f32 %v5081_v52, %v5424_v15  ;;  %v2787_v60 = vmax.f32 %v2755_v61, 0.0  ;;  %v2786_v24 = vmax.f32 %v2754_v53, 0.0  ;;  %v2717_v43 = vmul.f32 %v5129_v20, %v2676_v28  ;;  %v5432_v61 = vld [vmem:[#allocation17_spill] sm:$0xff]  ;;  %v5433_v53 = vld [vmem:[#allocation18_spill] sm:$0xff]  ;;  %v5435_v28 = vld [vmem:[#allocation20_spill] sm:$0xff] }
 0x340   : > { %v2757_v35 = vadd.f32 %v5131_v38, %v2716_v10  ;;  %v2756_v0 = vadd.f32 %v5131_v38, %v2715_v5  ;;  %v2679_v52 = vadd.f32 %v5085_v11, %v5426_v33  ;;  %v2678_v58 = vadd.f32 %v5087_v23, %v5427_v48  ;;  %v5436_v33 = vld [vmem:[#allocation21_spill] sm:$0xff] }
 0x341   : > { %v2718_v32 = vmul.f32 %v5129_v20, %v2677_v14  ;;  %v2758_v39 = vadd.f32 %v5131_v38, %v2717_v43  ;;  %v2681_v11 = vadd.f32 %v5089_v50, %v5428_v8  ;;  %v2680_v23 = vadd.f32 %v5091_v62, %v5429_v27 }
 0x342   : > { %v2720_v59 = vmul.f32 %v5129_v20, %v2679_v52  ;;  %v2719_v63 = vmul.f32 %v5129_v20, %v2678_v58  ;;  %v2789_v21 = vmax.f32 %v2757_v35, 0.0  ;;  %v2788_v37 = vmax.f32 %v2756_v0, 0.0  ;;  %v5437_v52 = vld [vmem:[#allocation22_spill] sm:$0xff] }
 0x343   : > { %2850 = vrot.lane.b32.xlu1 %v2783_v51, %s3597_s16  ;;  %2848 = vrot.lane.b32.xlu0 %v2782_v54, %s3597_s16  ;;  %v2759_v45 = vadd.f32 %v5131_v38, %v2718_v32  ;;  %v2722_v26 = vmul.f32 %v5129_v20, %v2681_v11  ;;  %v2721_v17 = vmul.f32 %v5129_v20, %v2680_v23  ;;  %v2790_v19 = vmax.f32 %v2758_v39, 0.0  ;;  %v5430_v51 = vld [vmem:[#allocation15_spill] sm:$0xff]  ;;  %v5431_v54 = vld [vmem:[#allocation16_spill] sm:$0xff] }
 0x344   : > { %v2761_v44 = vadd.f32 %v5131_v38, %v2720_v59  ;;  %v2760_v2 = vadd.f32 %v5131_v38, %v2719_v63  ;;  %v2683_v50 = vadd.f32 %v5093_v25, %v5430_v51  ;;  %v2682_v62 = vadd.f32 %v5095_v57, %v5431_v54  ;;  %v5439_v39 = vld [vmem:[#allocation24_spill] sm:$0xff] }
 0x345   : > { %v2791_v29 = vmax.f32 %v2759_v45, 0.0  ;;  %v2763_v41 = vadd.f32 %v5131_v38, %v2722_v26  ;;  %v2762_v40 = vadd.f32 %v5131_v38, %v2721_v17  ;;  %v2685_v25 = vadd.f32 %v5097_v47, %v5432_v61  ;;  %v5438_v45 = vld [vmem:[#allocation23_spill] sm:$0xff] }
 0x346   : > { %v2793_v1 = vmax.f32 %v2761_v44, 0.0  ;;  %v2792_v42 = vmax.f32 %v2760_v2, 0.0  ;;  %v2724_v30 = vmul.f32 %v5129_v20, %v2683_v50  ;;  %v2723_v34 = vmul.f32 %v5129_v20, %v2682_v62 }
 0x347   : > { %2854 = vrot.lane.b32.xlu1 %v2785_v36, %s3597_s16  ;;  %2852 = vrot.lane.b32.xlu0 %v2784_v22, %s3597_s16  ;;  %v2684_v57 = vadd.f32 %v5099_v13, %v5433_v53  ;;  %v2795_v36 = vmax.f32 %v2763_v41, 0.0  ;;  %v2794_v22 = vmax.f32 %v2762_v40, 0.0  ;;  %v2726_v15 = vmul.f32 %v5129_v20, %v2685_v25  ;;  %v5442_v41 = vld [vmem:[#allocation27_spill] sm:$0xff]  ;;  %v5443_v40 = vld [vmem:[#allocation28_spill] sm:$0xff]  ;;  %v5444_v53 = vld [vmem:[#allocation29_spill] sm:$0xff] }
 0x348   : > { %v2765_v10 = vadd.f32 %v5131_v38, %v2724_v30  ;;  %v2764_v5 = vadd.f32 %v5131_v38, %v2723_v34  ;;  %v2687_v47 = vadd.f32 %v5101_v7, %v5434_v3  ;;  %v2686_v13 = vadd.f32 %v5103_v16, %v5435_v28 }
 0x349   : > { %v2725_v14 = vmul.f32 %v5129_v20, %v2684_v57  ;;  %v2767_v32 = vadd.f32 %v5131_v38, %v2726_v15  ;;  %v2689_v7 = vadd.f32 %v5105_v6, %v5436_v33  ;;  %v2688_v16 = vadd.f32 %v5107_v55, %v5437_v52  ;;  %v5445_v57 = vld [vmem:[#allocation30_spill] sm:$0xff] }
 0x34a   : > { %v2797_v35 = vmax.f32 %v2765_v10, 0.0  ;;  %v2796_v0 = vmax.f32 %v2764_v5, 0.0  ;;  %v2691_v6 = vadd.f32 %v5109_v46, %v5438_v45  ;;  %v2690_v55 = vadd.f32 %v5111_v4, %v5439_v39 }
 0x34b   : > { %2858 = vrot.lane.b32.xlu1 %v2787_v60, %s3597_s16  ;;  %2856 = vrot.lane.b32.xlu0 %v2786_v24, %s3597_s16  ;;  %v2728_v60 = vmul.f32 %v5129_v20, %v2687_v47  ;;  %v2727_v24 = vmul.f32 %v5129_v20, %v2686_v13  ;;  %v2766_v43 = vadd.f32 %v5131_v38, %v2725_v14  ;;  %v2799_v59 = vmax.f32 %v2767_v32, 0.0 }
 0x34c   : > { %v2730_v58 = vmul.f32 %v5129_v20, %v2689_v7  ;;  %v2732_v26 = vmul.f32 %v5129_v20, %v2691_v6  ;;  %v2731_v17 = vmul.f32 %v5129_v20, %v2690_v55 }
 0x34d   : > { %v2769_v48 = vadd.f32 %v5131_v38, %v2728_v60  ;;  %v2798_v63 = vmax.f32 %v2766_v43, 0.0 }
 0x34e   : > { %v2771_v11 = vadd.f32 %v5131_v38, %v2730_v58  ;;  %v2773_v50 = vadd.f32 %v5131_v38, %v2732_v26  ;;  %v2772_v54 = vadd.f32 %v5131_v38, %v2731_v17 }
 0x34f   : > { %2862 = vrot.lane.b32.xlu1 %v2789_v21, %s3597_s16  ;;  %2860 = vrot.lane.b32.xlu0 %v2788_v37, %s3597_s16  ;;  %v2768_v21 = vadd.f32 %v5131_v38, %v2727_v24  ;;  %v2729_v37 = vmul.f32 %v5129_v20, %v2688_v16  ;;  %v2801_v8 = vmax.f32 %v2769_v48, 0.0 }
 0x350   : > { %v2803_v44 = vmax.f32 %v2771_v11, 0.0  ;;  %v2805_v30 = vmax.f32 %v2773_v50, 0.0  ;;  %v2804_v34 = vmax.f32 %v2772_v54, 0.0 }
 0x351   : > { %v2800_v27 = vmax.f32 %v2768_v21, 0.0  ;;  %v2770_v23 = vadd.f32 %v5131_v38, %v2729_v37 }
 0x353   : > { %2866 = vrot.lane.b32.xlu1 %v2791_v29, %s3597_s16  ;;  %2864 = vrot.lane.b32.xlu0 %v2790_v19, %s3597_s16  ;;  %v5440_v29 = vld [vmem:[#allocation25_spill] sm:$0xff]  ;;  %v5441_v19 = vld [vmem:[#allocation26_spill] sm:$0xff]  ;;  %v2802_v51 = vmax.f32 %v2770_v23, 0.0 }
 0x354   : > { %v2693_v46 = vadd.f32 %v5113_v18, %v5440_v29  ;;  %v2692_v4 = vadd.f32 %v5115_v9, %v5441_v19  ;;  %v2695_v18 = vadd.f32 %v5117_v56, %v5442_v41  ;;  %v2694_v9 = vadd.f32 %v5119_v31, %v5443_v40 }
 0x355   : > { %v2697_v56 = vadd.f32 %v5121_v49, %v5444_v53  ;;  %v2696_v31 = vadd.f32 %v5123_v12, %v5445_v57 }
 0x356   : > { %v2734_v2 = vmul.f32 %v5129_v20, %v2693_v46  ;;  %v2733_v62 = vmul.f32 %v5129_v20, %v2692_v4 }
 0x357   : > { %2870 = vrot.lane.b32.xlu1 %v2793_v1, %s3597_s16  ;;  %2868 = vrot.lane.b32.xlu0 %v2792_v42, %s3597_s16  ;;  %v2736_v1 = vmul.f32 %v5129_v20, %v2695_v18  ;;  %v2735_v42 = vmul.f32 %v5129_v20, %v2694_v9  ;;  %v2737_v14 = vmul.f32 %v5129_v20, %v2696_v31 }
 0x358   : > { %v2775_v61 = vadd.f32 %v5131_v38, %v2734_v2  ;;  %v2774_v25 = vadd.f32 %v5131_v38, %v2733_v62 }
 0x359   : > { %v2776_v15 = vadd.f32 %v5131_v38, %v2735_v42  ;;  %v2778_v47 = vadd.f32 %v5131_v38, %v2737_v14 }
 0x35a   : > { %v2807_v10 = vmax.f32 %v2775_v61, 0.0  ;;  %v2806_v5 = vmax.f32 %v2774_v25, 0.0 }
 0x35b   : > { %2874 = vrot.lane.b32.xlu1 %v2795_v36, %s3597_s16  ;;  %2872 = vrot.lane.b32.xlu0 %v2794_v22, %s3597_s16  ;;  %v2777_v36 = vadd.f32 %v5131_v38, %v2736_v1  ;;  %v2738_v22 = vmul.f32 %v5129_v20, %v2697_v56  ;;  %v2808_v12 = vmax.f32 %v2776_v15, 0.0  ;;  %v2810_v13 = vmax.f32 %v2778_v47, 0.0 }
 0x35d   : > { %v2809_v49 = vmax.f32 %v2777_v36, 0.0  ;;  %v2779_v3 = vadd.f32 %v5131_v38, %v2738_v22 }
 0x35f   : > { %2878 = vrot.lane.b32.xlu1 %v2797_v35, %s3597_s16  ;;  %2876 = vrot.lane.b32.xlu0 %v2796_v0, %s3597_s16  ;;  %v2811_v28 = vmax.f32 %v2779_v3, 0.0 }
 0x363   : > { %2882 = vrot.lane.b32.xlu1 %v2799_v59, %s3597_s16  ;;  %2880 = vrot.lane.b32.xlu0 %v2798_v63, %s3597_s16 }
 0x367   : > { %2886 = vrot.lane.b32.xlu1 %v2801_v8, %s3597_s16  ;;  %2884 = vrot.lane.b32.xlu0 %v2800_v27, %s3597_s16 }
 0x36b   : > { %2890 = vrot.lane.b32.xlu1 %v2803_v44, %s3597_s16  ;;  %2888 = vrot.lane.b32.xlu0 %v2802_v51, %s3597_s16 }
 0x36f   : > { %2894 = vrot.lane.b32.xlu1 %v2805_v30, %s3597_s16  ;;  %2892 = vrot.lane.b32.xlu0 %v2804_v34, %s3597_s16 }
 0x373   : > { %2898 = vrot.lane.b32.xlu1 %v2807_v10, %s3597_s16  ;;  %2896 = vrot.lane.b32.xlu0 %v2806_v5, %s3597_s16 }
 0x377   : > { %2902 = vrot.lane.b32.xlu1 %v2809_v49, %s3597_s16  ;;  %2900 = vrot.lane.b32.xlu0 %v2808_v12, %s3597_s16 }
 0x37b   : > { %2906 = vrot.lane.b32.xlu1 %v2811_v28, %s3597_s16  ;;  %2904 = vrot.lane.b32.xlu0 %v2810_v13, %s3597_s16 }
 0x3b1   : > { %v2847_v20 = vpop.permute.xlu1 %2846  ;;  %v2845_v38 = vpop.permute.xlu0 %2844 }
 0x3b2   : > { %2942 = vst.msk [vmem:[%s5284_s19 + $0x8] sm:$0xff] %vm2940_vm4, %v2847_v20  ;;  %2941 = vst.msk [vmem:[%s5284_s19] sm:$0xff] %vm2940_vm4, %v2845_v38 }
 0x3b5   : > { %v2851_v60 = vpop.permute.xlu1 %2850  ;;  %v2849_v24 = vpop.permute.xlu0 %2848 }
 0x3b6   : > { %2944 = vst.msk [vmem:[%s5284_s19 + $0x18] sm:$0xff] %vm2940_vm4, %v2851_v60  ;;  %2943 = vst.msk [vmem:[%s5284_s19 + $0x10] sm:$0xff] %vm2940_vm4, %v2849_v24 }
 0x3b9   : > { %v2855_v35 = vpop.permute.xlu1 %2854  ;;  %v2853_v0 = vpop.permute.xlu0 %2852 }
 0x3ba   : > { %2946 = vst.msk [vmem:[%s5284_s19 + $0x28] sm:$0xff] %vm2940_vm4, %v2855_v35  ;;  %2945 = vst.msk [vmem:[%s5284_s19 + $0x20] sm:$0xff] %vm2940_vm4, %v2853_v0 }
 0x3bd   : > { %v2859_v32 = vpop.permute.xlu1 %2858  ;;  %v2857_v43 = vpop.permute.xlu0 %2856 }
 0x3be   : > { %2948 = vst.msk [vmem:[%s5284_s19 + $0x38] sm:$0xff] %vm2940_vm4, %v2859_v32  ;;  %2947 = vst.msk [vmem:[%s5284_s19 + $0x30] sm:$0xff] %vm2940_vm4, %v2857_v43 }
 0x3c1   : > { %v2863_v33 = vpop.permute.xlu1 %2862  ;;  %v2861_v7 = vpop.permute.xlu0 %2860 }
 0x3c2   : > { %2950 = vst.msk [vmem:[%s5284_s19 + $0x48] sm:$0xff] %vm2940_vm4, %v2863_v33  ;;  %2949 = vst.msk [vmem:[%s5284_s19 + $0x40] sm:$0xff] %vm2940_vm4, %v2861_v7 }
 0x3c5   : > { %v2867_v52 = vpop.permute.xlu1 %2866  ;;  %v2865_v16 = vpop.permute.xlu0 %2864 }
 0x3c6   : > { %2952 = vst.msk [vmem:[%s5284_s19 + $0x58] sm:$0xff] %vm2940_vm4, %v2867_v52  ;;  %2951 = vst.msk [vmem:[%s5284_s19 + $0x50] sm:$0xff] %vm2940_vm4, %v2865_v16 }
 0x3c9   : > { %v2871_v48 = vpop.permute.xlu1 %2870  ;;  %v2869_v58 = vpop.permute.xlu0 %2868 }
 0x3ca   : > { %2954 = vst.msk [vmem:[%s5284_s19 + $0x68] sm:$0xff] %vm2940_vm4, %v2871_v48  ;;  %2953 = vst.msk [vmem:[%s5284_s19 + $0x60] sm:$0xff] %vm2940_vm4, %v2869_v58 }
 0x3cd   : > { %v2875_v59 = vpop.permute.xlu1 %2874  ;;  %v2873_v63 = vpop.permute.xlu0 %2872 }
 0x3ce   : > { %2956 = vst.msk [vmem:[%s5284_s19 + $0x78] sm:$0xff] %vm2940_vm4, %v2875_v59  ;;  %2955 = vst.msk [vmem:[%s5284_s19 + $0x70] sm:$0xff] %vm2940_vm4, %v2873_v63 }
 0x3d1   : > { %v2879_v21 = vpop.permute.xlu1 %2878  ;;  %v2877_v37 = vpop.permute.xlu0 %2876 }
 0x3d2   : > { %2958 = vst.msk [vmem:[%s5284_s19 + $0x88] sm:$0xff] %vm2940_vm4, %v2879_v21  ;;  %2957 = vst.msk [vmem:[%s5284_s19 + $0x80] sm:$0xff] %vm2940_vm4, %v2877_v37 }
 0x3d5   : > { %v2883_v45 = vpop.permute.xlu1 %2882  ;;  %v2881_v6 = vpop.permute.xlu0 %2880 }
 0x3d6   : > { %2960 = vst.msk [vmem:[%s5284_s19 + $0x98] sm:$0xff] %vm2940_vm4, %v2883_v45  ;;  %2959 = vst.msk [vmem:[%s5284_s19 + $0x90] sm:$0xff] %vm2940_vm4, %v2881_v6 }
 0x3d9   : > { %v2887_v39 = vpop.permute.xlu1 %2886  ;;  %v2885_v55 = vpop.permute.xlu0 %2884 }
 0x3da   : > { %2962 = vst.msk [vmem:[%s5284_s19 + $0xa8] sm:$0xff] %vm2940_vm4, %v2887_v39  ;;  %2961 = vst.msk [vmem:[%s5284_s19 + $0xa0] sm:$0xff] %vm2940_vm4, %v2885_v55 }
 0x3dd   : > { %v2891_v8 = vpop.permute.xlu1 %2890  ;;  %v2889_v11 = vpop.permute.xlu0 %2888 }
 0x3de   : > { %2964 = vst.msk [vmem:[%s5284_s19 + $0xb8] sm:$0xff] %vm2940_vm4, %v2891_v8  ;;  %2963 = vst.msk [vmem:[%s5284_s19 + $0xb0] sm:$0xff] %vm2940_vm4, %v2889_v11 }
 0x3e1   : > { %v2895_v27 = vpop.permute.xlu1 %2894  ;;  %v2893_v23 = vpop.permute.xlu0 %2892 }
 0x3e2   : > { %2966 = vst.msk [vmem:[%s5284_s19 + $0xc8] sm:$0xff] %vm2940_vm4, %v2895_v27  ;;  %2965 = vst.msk [vmem:[%s5284_s19 + $0xc0] sm:$0xff] %vm2940_vm4, %v2893_v23 }
 0x3e5   : > { %v2899_v26 = vpop.permute.xlu1 %2898  ;;  %v2897_v17 = vpop.permute.xlu0 %2896 }
 0x3e6   : > { %2968 = vst.msk [vmem:[%s5284_s19 + $0xd8] sm:$0xff] %vm2940_vm4, %v2899_v26  ;;  %2967 = vst.msk [vmem:[%s5284_s19 + $0xd0] sm:$0xff] %vm2940_vm4, %v2897_v17 }
 0x3e9   : > { %v2903_v29 = vpop.permute.xlu1 %2902  ;;  %v2901_v46 = vpop.permute.xlu0 %2900 }
 0x3ea   : > { %2970 = vst.msk [vmem:[%s5284_s19 + $0xe8] sm:$0xff] %vm2940_vm4, %v2903_v29  ;;  %2969 = vst.msk [vmem:[%s5284_s19 + $0xe0] sm:$0xff] %vm2940_vm4, %v2901_v46 }
 0x3ed   : > { %v2907_v19 = vpop.permute.xlu1 %2906  ;;  %v2905_v4 = vpop.permute.xlu0 %2904 }
 0x3ee   : > { %2972 = vst.msk [vmem:[%s5284_s19 + $0xf8] sm:$0xff] %vm2940_vm4, %v2907_v19  ;;  %2971 = vst.msk [vmem:[%s5284_s19 + $0xf0] sm:$0xff] %vm2940_vm4, %v2905_v4 }
 0x3ef PF: > { %s18_s27 = sadd.s32 1, %s3592_s27  }
 0x3f0   : > { %p15_p4 = scmp.ge.s32.totalorder %s18_s27, 4  }
 0x3f2   :  { %17 = sbr.rel (!%p15_p4) target bundleno = 1 (0x1), region = 84 }

</bundles_post_ra>
